<compile_context>
chip_gen: v7x
topology: tpu7x:2x2x1
jax: 0.10.0
libtpu: 0.0.40
codegen_flags: <defaults>
</compile_context>

<pallas_src>
import numpy as np
import jax
import jax.numpy as jnp
from jax import lax
from jax.experimental import pallas as pl
from jax.experimental.pallas import tpu as pltpu

EMBED = 128                  # image H == nn.MultiheadAttention embed_dim
HEADS = 8
HEAD_DIM = EMBED // HEADS    # 16
KQK = 16                     # convQ / convK kernel size (convV folded in too)
K4 = 4                       # convV / conv1 / conv2 kernel size
LO4 = (K4 - 1) // 2          # 1
COUT = 32                    # conv1 output channels
# conv1 output channels produced per inner step. CG=8 keeps the live conv1
# result at one (128,128) f32 tile (16 vregs) -> no register spills on any chip.
# TODO(synk): sweep CG=16 on v6e/v7x (256-row MXU) per perf review; keep 8 on v5e.
CG = 8


# --------------------------------------------------------------------------- host-side weight glue
def build_lqkv(wQ, wK, wV, W):
    """(3W, 16W) left-matrix so convQ/convK/convV become ONE matmul against the
    16-way lane-shifted input stack (row a*W + w' = x shifted along H by a-7)."""
    convs = [(np.asarray(wQ, np.float32)[0, 0], 7),
             (np.asarray(wK, np.float32)[0, 0], 7),
             (np.asarray(wV, np.float32)[0, 0], 1)]
    L = np.zeros((3, W, KQK, W), np.float32)
    for idx, (wgt, lo) in enumerate(convs):
        K = wgt.shape[0]
        for a in range(K):
            sidx = a - lo + 7                     # row block in the shift stack
            for b in range(K):
                for wi in range(W):
                    wp = wi + b - lo
                    if 0 <= wp < W:
                        L[idx, wi, sidx, wp] = wgt[a, b]
    return L.reshape(3 * W, KQK * W)


def build_conv1_left(w, W):
    """Conv2d(1, Cout, 4, 'same'):  out = L @ ysh_stack, ysh row = a*W + w'."""
    w = np.asarray(w, np.float32)                 # (Cout, 1, 4, 4)
    Cout, _, K, _ = w.shape
    lo = (K - 1) // 2
    L = np.zeros((Cout, W, K, W), np.float32)
    for co in range(Cout):
        for a in range(K):
            for b in range(K):
                for wi in range(W):
                    wp = wi + b - lo
                    if 0 <= wp < W:
                        L[co, wi, a, wp] = w[co, 0, a, b]
    return L.reshape(Cout * W, K * W)


def build_conv2_left(w, W):
    """Conv2d(Cin, 1, 4, 'same'):  M_stack = L @ z_flat (rows a*W+w, cols ci*W+w')."""
    w = np.asarray(w, np.float32)                 # (1, Cin, 4, 4)
    _, Cin, K, _ = w.shape
    lo = (K - 1) // 2
    L = np.zeros((K, W, Cin, W), np.float32)
    for ci in range(Cin):
        for a in range(K):
            for b in range(K):
                for wi in range(W):
                    wp = wi + b - lo
                    if 0 <= wp < W:
                        L[a, wi, ci, wp] = w[0, ci, a, b]
    return L.reshape(K * W, Cin * W)


def _const_spec(a):
    nd = a.ndim
    return pl.BlockSpec(tuple(a.shape), lambda n, _z=(0,) * nd: _z)


# --------------------------------------------------------------------------- kernel
def _fused_block_kernel(x_ref,
                        lqkv_ref,
                        wq_ref, bq_ref, wk_ref, bk_ref, wv_ref, bv_ref,
                        wo_ref, bo_ref, hm_ref,
                        l1_ref, b1_ref, l2_ref, b2_ref,
                        out_ref):
    f32, bf16 = jnp.float32, jnp.bfloat16
    W = x_ref.shape[1]                       # 16
    H = x_ref.shape[2]                       # 128
    GROUP = CG * W                           # 128 (lane-aligned conv2 col groups)
    n_groups = out_ref.shape[1] // GROUP     # 4

    hidx = lax.broadcasted_iota(jnp.int32, (W, H), 1)

    def hshift(t, s):
        """y[w, h] = t[w, h + s] with zeros outside [0, H).  roll = XLU (slack),
        mask = one VPU select.  Replaces the old f32 shift-matrix matmuls."""
        if s == 0:
            return t
        r = pltpu.roll(t, (-s) % H, axis=1)
        if s > 0:
            return jnp.where(hidx < H - s, r, 0.0)
        return jnp.where(hidx >= -s, r, 0.0)

    x = x_ref[0]                                                     # (W, H) f32

    # ---- convQ/convK/convV: in-kernel 16-way H-shift stack + ONE matmul ------
    xs = jnp.concatenate([hshift(x, a - 7).astype(bf16) for a in range(KQK)],
                         axis=0)                                     # (16W, H) bf16
    qkv = jnp.dot(lqkv_ref[...], xs, preferred_element_type=f32)     # (3W, H) f32
    qc = qkv[0 * W:1 * W, :]     # convQ(x)
    kc = qkv[1 * W:2 * W, :]     # convK(x)
    vc = qkv[2 * W:3 * W, :]     # convV(x)

    # ---- attention in_proj: three full-lane (W,128)@(128,128) dots -----------
    # (query <- convQ out, key <- convV out, value <- convK out; matches att(Q,V,K))
    q = jnp.dot(qc.astype(bf16), wq_ref[...], preferred_element_type=f32) + bq_ref[...]
    k = jnp.dot(vc.astype(bf16), wk_ref[...], preferred_element_type=f32) + bk_ref[...]
    v = jnp.dot(kc.astype(bf16), wv_ref[...], preferred_element_type=f32) + bv_ref[...]

    # ---- lane-dense scores / softmax / PV ------------------------------------
    # hm is the 0/1 block-diagonal head mask (128,128) bf16; k_exp[j=h*W+kk, c] =
    # k[kk, c] inside head block h, zero elsewhere (same for v_exp).
    hm = hm_ref[...]
    k_exp = jnp.concatenate([k.astype(bf16)] * HEADS, axis=0) * hm   # (128,128) bf16
    v_exp = jnp.concatenate([v.astype(bf16)] * HEADS, axis=0) * hm   # (128,128) bf16

    s = jnp.einsum('qc,jc->qj', q.astype(bf16), k_exp,
                   preferred_element_type=f32)                       # (W, 128) f32
    # full-row max == shared per-query constant -> softmax unchanged, lane-dense
    s = s - jnp.max(s, axis=-1, keepdims=True)
    p = jnp.exp(s).astype(bf16)                                      # (W, 128) bf16
    den = jnp.dot(p, hm, preferred_element_type=f32)                 # per-head sums
    o_un = jnp.dot(p, v_exp, preferred_element_type=f32)             # (W, 128) f32
    o = o_un * pl.reciprocal(den, approx=True)                       # normalized
    att = jnp.dot(o.astype(bf16), wo_ref[...],
                  preferred_element_type=f32) + bo_ref[...]          # (W, H) f32

    y1 = 2.0 * x + att                    # x = ModifierBlock(x) + x  (f32 residual)

    # ---- conv1(1->32)+x, ReLU+x, conv2(32->1)+x, ReLU+x (all fused) -----------
    ysh = jnp.concatenate([hshift(y1, a - LO4).astype(bf16) for a in range(K4)],
                          axis=0)                                    # (4W, H) bf16

    m_acc = jnp.zeros((K4 * W, H), f32)      # conv2 partials (before lane shift)
    for g in range(n_groups):                # CG output channels of conv1 at a time
        r0 = g * GROUP
        t = jnp.dot(l1_ref[r0:r0 + GROUP, :], ysh, preferred_element_type=f32)
        t = t + b1_ref[r0:r0 + GROUP, :]                             # conv1 bias
        t = (t.reshape(CG, W, H) + y1[None]).reshape(GROUP, H)       # + x (f32)
        z = jnp.maximum(t, 0.0) + t                                  # ReLU(x) + x
        out_ref[0, r0:r0 + GROUP, :] = z                             # stash
        m_acc = m_acc + jnp.dot(l2_ref[:, r0:r0 + GROUP], z.astype(bf16),
                                preferred_element_type=f32)

    conv2 = b2_ref[...] + m_acc[LO4 * W:(LO4 + 1) * W, :]            # (W, H)
    for a in range(K4):
        if a != LO4:
            conv2 = conv2 + hshift(m_acc[a * W:(a + 1) * W, :], a - LO4)

    for g in range(n_groups):                # conv2(x)+x then ReLU(x)+x
        r0 = g * GROUP
        z = out_ref[0, r0:r0 + GROUP, :]
        t2 = (z.reshape(CG, W, H) + conv2[None]).reshape(GROUP, H)
        out_ref[0, r0:r0 + GROUP, :] = jnp.maximum(t2, 0.0) + t2


# --------------------------------------------------------------------------- wrappers
def fused_block_call(x_res, kp):
    N, W, H = x_res.shape
    assert H == EMBED
    assert (CG * W) % 128 == 0 and COUT % CG == 0    # lane-aligned column groups

    const_args = (kp["lqkv"],
                  kp["wq_t"], kp["bq_row"], kp["wk_t"], kp["bk_row"],
                  kp["wv_t"], kp["bv_row"], kp["wo_t"], kp["bo_row"],
                  kp["headmask"],
                  kp["l1"], kp["b1col"], kp["l2"], kp["b2row"])
    in_specs = ([pl.BlockSpec((1, W, H), lambda n: (n, 0, 0))]
                + [_const_spec(a) for a in const_args])

    macs_per_img = (3 * W * KQK * W * H      # fused convQ/K/V
                    + 3 * W * H * H          # q/k/v in_proj
                    + W * H * H              # scores
                    + 2 * W * H * H          # softmax denominators + P@V
                    + W * H * H              # out_proj
                    + COUT * W * K4 * W * H  # conv1
                    + K4 * W * COUT * W * H)  # conv2
    const_bytes = sum(int(a.size) * a.dtype.itemsize for a in const_args)
    ce = pl.CostEstimate(
        flops=2 * N * macs_per_img,
        transcendentals=N * 2 * W * H,
        bytes_accessed=N * (W * H * 4 + COUT * W * H * 4) + const_bytes)

    # grid=(N,) parallel over batch: with N>=2 both v7x TensorCores stay busy.
    return pl.pallas_call(
        _fused_block_kernel,
        out_shape=jax.ShapeDtypeStruct((N, COUT * W, H), jnp.float32),
        grid=(N,),
        in_specs=in_specs,
        out_specs=pl.BlockSpec((1, COUT * W, H), lambda n: (n, 0, 0)),
        compiler_params=pltpu.CompilerParams(dimension_semantics=("parallel",)),
        cost_estimate=ce,
    )(x_res, *const_args)


def modifier_forward(x_nchw, kparams_list):
    # x_nchw: (N, 1, 128, W) PyTorch NCHW -> kernel layout (N, 1, W, 128)
    x = jnp.transpose(x_nchw.astype(jnp.float32), (0, 1, 3, 2))
    N, C, W, H = x.shape
    assert H == EMBED and (CG * W) % 128 == 0
    for kp in kparams_list:
        # TODO(synk): the reference Modifier with repetition > 1 is ill-formed —
        # the next ModifierBlock's Conv2d(1,1,16) would receive a 32-channel
        # tensor and raise in PyTorch — so only repetition == 1 is supported.
        assert C == 1
        y = fused_block_call(x[:, 0], kp)              # (N, 32W, H)
        x = y.reshape(N, COUT, W, H)
        C = COUT
    return jnp.transpose(x, (0, 1, 3, 2))              # back to NCHW


# --------------------------------------------------------------------------- params
def init_params(key, repetition=1):
    def normal(k, shape, scale=0.05):
        return scale * jax.random.normal(k, shape, jnp.float32)

    params = []
    for r in range(repetition):
        ks = jax.random.split(jax.random.fold_in(key, r), 14)
        params.append({
            "convQ_w": normal(ks[0], (1, 1, 16, 16)), "convQ_b": normal(ks[1], (1,)),
            "convK_w": normal(ks[2], (1, 1, 16, 16)), "convK_b": normal(ks[3], (1,)),
            "convV_w": normal(ks[4], (1, 1, 4, 4)),   "convV_b": normal(ks[5], (1,)),
            "in_proj_w": normal(ks[6], (3 * EMBED, EMBED)),
            "in_proj_b": normal(ks[7], (3 * EMBED,)),
            "out_proj_w": normal(ks[8], (EMBED, EMBED)),
            "out_proj_b": normal(ks[9], (EMBED,)),
            "conv1_w": normal(ks[10], (32, 1, 4, 4)), "conv1_b": normal(ks[11], (32,)),
            "conv2_w": normal(ks[12], (1, 32, 4, 4)), "conv2_b": normal(ks[13], (1,)),
        })
    return params


def prepare_params(p, seq_w):
    """PyTorch-layout parameters -> kernel-ready arrays (pure glue, f32 math)."""
    W = seq_w
    f32, bf16 = jnp.float32, jnp.bfloat16
    Wq = np.asarray(p["in_proj_w"], np.float32)[0:EMBED]
    Wk = np.asarray(p["in_proj_w"], np.float32)[EMBED:2 * EMBED]
    Wv = np.asarray(p["in_proj_w"], np.float32)[2 * EMBED:3 * EMBED]
    bq = np.asarray(p["in_proj_b"], np.float32)[0:EMBED]
    bk = np.asarray(p["in_proj_b"], np.float32)[EMBED:2 * EMBED]
    bv = np.asarray(p["in_proj_b"], np.float32)[2 * EMBED:3 * EMBED]
    bQ = float(np.asarray(p["convQ_b"])[0])
    bK = float(np.asarray(p["convK_b"])[0])
    bV = float(np.asarray(p["convV_b"])[0])
    scale = 1.0 / np.sqrt(HEAD_DIM)
    # fold the scalar conv biases into the attention input-projection biases
    # (query <- convQ out, key <- convV out, value <- convK out), scale into q.
    bq_eff = (bq + bQ * Wq.sum(axis=1)) * scale
    bk_eff = bk + bV * Wk.sum(axis=1)
    bv_eff = bv + bK * Wv.sum(axis=1)
    Wo = np.asarray(p["out_proj_w"], np.float32)
    bo = np.asarray(p["out_proj_b"], np.float32)
    # 0/1 block-diagonal head mask; also serves as the per-head-sum matrix.
    heads = np.arange(EMBED) // HEAD_DIM
    hm = (heads[:, None] == heads[None, :]).astype(np.float32)
    return {
        "lqkv": jnp.asarray(build_lqkv(p["convQ_w"], p["convK_w"], p["convV_w"], W), bf16),
        "wq_t": jnp.asarray((Wq * scale).T, bf16),                  # right-multiply
        "bq_row": jnp.asarray(bq_eff.reshape(1, EMBED), f32),
        "wk_t": jnp.asarray(Wk.T, bf16),
        "bk_row": jnp.asarray(bk_eff.reshape(1, EMBED), f32),
        "wv_t": jnp.asarray(Wv.T, bf16),
        "bv_row": jnp.asarray(bv_eff.reshape(1, EMBED), f32),
        "wo_t": jnp.asarray(Wo.T, bf16),
        "bo_row": jnp.asarray(bo.reshape(1, EMBED), f32),
        "headmask": jnp.asarray(hm, bf16),                          # (128, 128)
        "l1": jnp.asarray(build_conv1_left(p["conv1_w"], W), bf16),  # (32W, 4W)
        "b1col": jnp.asarray(np.repeat(np.asarray(p["conv1_b"], np.float32), W)
                             .reshape(-1, 1), f32),                  # (32W, 1)
        "l2": jnp.asarray(build_conv2_left(p["conv2_w"], W), bf16),  # (4W, 32W)
        "b2row": jnp.asarray(np.full((1, EMBED), np.asarray(p["conv2_b"])[0],
                                     np.float32), f32),
    }


# --------------------------------------------------------------------------- reference (self-check)
def _reference_mha(q, k, v, p):
    E, Hh, D = EMBED, HEADS, HEAD_DIM
    wq, wk, wv = (p["in_proj_w"][i * E:(i + 1) * E] for i in range(3))
    bq, bk, bv = (p["in_proj_b"][i * E:(i + 1) * E] for i in range(3))
    qp, kp_, vp = q @ wq.T + bq, k @ wk.T + bk, v @ wv.T + bv
    N, W, _ = qp.shape
    split = lambda t: t.reshape(N, W, Hh, D).transpose(0, 2, 1, 3)
    qh, kh, vh = split(qp), split(kp_), split(vp)
    s = jnp.einsum('nhqd,nhkd->nhqk', qh, kh) / np.sqrt(D)
    a = jax.nn.softmax(s, axis=-1)
    o = jnp.einsum('nhqk,nhkd->nhqd', a, vh).transpose(0, 2, 1, 3).reshape(N, W, E)
    return o @ p["out_proj_w"].T + p["out_proj_b"]


def _reference_forward(x_nchw, raw_params):
    x = x_nchw.astype(jnp.float32)
    conv = lambda inp, w, b: lax.conv_general_dilated(
        inp, w, (1, 1), 'SAME',
        dimension_numbers=('NCHW', 'OIHW', 'NCHW')) + b.reshape(1, -1, 1, 1)
    for p in raw_params:
        N, C, H, W = x.shape
        Q = conv(x, p["convQ_w"], p["convQ_b"])[:, 0].transpose(0, 2, 1)
        K = conv(x, p["convK_w"], p["convK_b"])[:, 0].transpose(0, 2, 1)
        V = conv(x, p["convV_w"], p["convV_b"])[:, 0].transpose(0, 2, 1)
        att = _reference_mha(Q, V, K, p).transpose(0, 2, 1).reshape(N, 1, H, W)
        x = (x + att) + x
        x = conv(x, p["conv1_w"], p["conv1_b"]) + x
        x = jax.nn.relu(x) + x
        x = conv(x, p["conv2_w"], p["conv2_b"]) + x
        x = jax.nn.relu(x) + x
    return x


# --------------------------------------------------------------------------- main
if __name__ == "__main__":
    key = jax.random.PRNGKey(0)
    N, C, H, W = 2, 1, 128, 16      # H must be 128: it is the attention embed_dim
    x = jax.random.normal(jax.random.fold_in(key, 12345), (N, C, H, W), jnp.float32)

    raw_params = init_params(key, repetition=1)
    kparams = [prepare_params(p, W) for p in raw_params]

    fwd = jax.jit(modifier_forward)
    out = jax.block_until_ready(fwd(x, kparams))

    assert out.shape == (N, 32, H, W), out.shape
    assert bool(jnp.all(jnp.isfinite(out)))

    # numerical self-check against a pure-JAX (f32) mirror of the PyTorch module
    ref = jax.block_until_ready(jax.jit(_reference_forward)(x, raw_params))
    err = float(jnp.max(jnp.abs(out - ref)))
    scl = float(jnp.max(jnp.abs(ref))) + 1e-6
    assert err <= 0.05 * scl + 0.1, (err, scl)   # generous: bf16 MXU operands

    print("KERNEL_OK")
</pallas_src>

<mosaic_0001>
module attributes {stable_mosaic.version = 11 : i64} {
  func.func @_fused_block_kernel(%arg0: i32, %arg1: memref<1x16x128xf32, #tpu.memory_space<vmem>>, %arg2: memref<48x256xbf16, #tpu.memory_space<vmem>>, %arg3: memref<128x128xbf16, #tpu.memory_space<vmem>>, %arg4: memref<1x128xf32, #tpu.memory_space<vmem>>, %arg5: memref<128x128xbf16, #tpu.memory_space<vmem>>, %arg6: memref<1x128xf32, #tpu.memory_space<vmem>>, %arg7: memref<128x128xbf16, #tpu.memory_space<vmem>>, %arg8: memref<1x128xf32, #tpu.memory_space<vmem>>, %arg9: memref<128x128xbf16, #tpu.memory_space<vmem>>, %arg10: memref<1x128xf32, #tpu.memory_space<vmem>>, %arg11: memref<128x128xbf16, #tpu.memory_space<vmem>>, %arg12: memref<512x64xbf16, #tpu.memory_space<vmem>>, %arg13: memref<512x1xf32, #tpu.memory_space<vmem>>, %arg14: memref<64x512xbf16, #tpu.memory_space<vmem>>, %arg15: memref<1x128xf32, #tpu.memory_space<vmem>>, %arg16: memref<1x512x128xf32, #tpu.memory_space<vmem>>) attributes {dimension_semantics = [#tpu.dimension_semantics<parallel>], iteration_bounds = array<i64: 2>, scalar_prefetch = 0 : i64, scratch_operands = 0 : i64, tpu.core_type = #tpu.core_type<tc>, window_params = [{transform_indices = @transform_0, window_bounds = array<i64: 1, 16, 128>}, {pipeline_mode = #tpu.pipeline_mode<synchronous>, transform_indices = @transform_1, window_bounds = array<i64: 48, 256>}, {pipeline_mode = #tpu.pipeline_mode<synchronous>, transform_indices = @transform_2, window_bounds = array<i64: 128, 128>}, {pipeline_mode = #tpu.pipeline_mode<synchronous>, transform_indices = @transform_3, window_bounds = array<i64: 1, 128>}, {pipeline_mode = #tpu.pipeline_mode<synchronous>, transform_indices = @transform_4, window_bounds = array<i64: 128, 128>}, {pipeline_mode = #tpu.pipeline_mode<synchronous>, transform_indices = @transform_5, window_bounds = array<i64: 1, 128>}, {pipeline_mode = #tpu.pipeline_mode<synchronous>, transform_indices = @transform_6, window_bounds = array<i64: 128, 128>}, {pipeline_mode = #tpu.pipeline_mode<synchronous>, transform_indices = @transform_7, window_bounds = array<i64: 1, 128>}, {pipeline_mode = #tpu.pipeline_mode<synchronous>, transform_indices = @transform_8, window_bounds = array<i64: 128, 128>}, {pipeline_mode = #tpu.pipeline_mode<synchronous>, transform_indices = @transform_9, window_bounds = array<i64: 1, 128>}, {pipeline_mode = #tpu.pipeline_mode<synchronous>, transform_indices = @transform_10, window_bounds = array<i64: 128, 128>}, {pipeline_mode = #tpu.pipeline_mode<synchronous>, transform_indices = @transform_11, window_bounds = array<i64: 512, 64>}, {pipeline_mode = #tpu.pipeline_mode<synchronous>, transform_indices = @transform_12, window_bounds = array<i64: 512, 1>}, {pipeline_mode = #tpu.pipeline_mode<synchronous>, transform_indices = @transform_13, window_bounds = array<i64: 64, 512>}, {pipeline_mode = #tpu.pipeline_mode<synchronous>, transform_indices = @transform_14, window_bounds = array<i64: 1, 128>}, {transform_indices = @transform_15, window_bounds = array<i64: 1, 512, 128>}]} {
    %0 = tpu.iota {dimensions = array<i32: 1>} : vector<16x128xi32>
    %c0 = arith.constant 0 : index
    %c0_0 = arith.constant 0 : index
    %c0_1 = arith.constant 0 : index
    %1 = vector.load %arg1[%c0, %c0_0, %c0_1] : memref<1x16x128xf32, #tpu.memory_space<vmem>>, vector<1x16x128xf32>
    %2 = vector.shape_cast %1 : vector<1x16x128xf32> to vector<16x128xf32>
    %c7_i32 = arith.constant 7 : i32
    %3 = tpu.dynamic_rotate %2 by %c7_i32 dim 1 : vector<16x128xf32>, i32 -> vector<16x128xf32>
    %c7_i32_2 = arith.constant 7 : i32
    %4 = vector.broadcast %c7_i32_2 : i32 to vector<16x128xi32>
    %5 = arith.cmpi sge, %0, %4 : vector<16x128xi32>
    %cst = arith.constant 0.000000e+00 : f32
    %6 = vector.broadcast %cst : f32 to vector<16x128xf32>
    %7 = arith.select %5, %3, %6 : vector<16x128xi1>, vector<16x128xf32>
    %8 = arith.truncf %7 : vector<16x128xf32> to vector<16x128xbf16>
    %c6_i32 = arith.constant 6 : i32
    %9 = tpu.dynamic_rotate %2 by %c6_i32 dim 1 : vector<16x128xf32>, i32 -> vector<16x128xf32>
    %c6_i32_3 = arith.constant 6 : i32
    %10 = vector.broadcast %c6_i32_3 : i32 to vector<16x128xi32>
    %11 = arith.cmpi sge, %0, %10 : vector<16x128xi32>
    %cst_4 = arith.constant 0.000000e+00 : f32
    %12 = vector.broadcast %cst_4 : f32 to vector<16x128xf32>
    %13 = arith.select %11, %9, %12 : vector<16x128xi1>, vector<16x128xf32>
    %14 = arith.truncf %13 : vector<16x128xf32> to vector<16x128xbf16>
    %c5_i32 = arith.constant 5 : i32
    %15 = tpu.dynamic_rotate %2 by %c5_i32 dim 1 : vector<16x128xf32>, i32 -> vector<16x128xf32>
    %c5_i32_5 = arith.constant 5 : i32
    %16 = vector.broadcast %c5_i32_5 : i32 to vector<16x128xi32>
    %17 = arith.cmpi sge, %0, %16 : vector<16x128xi32>
    %cst_6 = arith.constant 0.000000e+00 : f32
    %18 = vector.broadcast %cst_6 : f32 to vector<16x128xf32>
    %19 = arith.select %17, %15, %18 : vector<16x128xi1>, vector<16x128xf32>
    %20 = arith.truncf %19 : vector<16x128xf32> to vector<16x128xbf16>
    %c4_i32 = arith.constant 4 : i32
    %21 = tpu.dynamic_rotate %2 by %c4_i32 dim 1 : vector<16x128xf32>, i32 -> vector<16x128xf32>
    %c4_i32_7 = arith.constant 4 : i32
    %22 = vector.broadcast %c4_i32_7 : i32 to vector<16x128xi32>
    %23 = arith.cmpi sge, %0, %22 : vector<16x128xi32>
    %cst_8 = arith.constant 0.000000e+00 : f32
    %24 = vector.broadcast %cst_8 : f32 to vector<16x128xf32>
    %25 = arith.select %23, %21, %24 : vector<16x128xi1>, vector<16x128xf32>
    %26 = arith.truncf %25 : vector<16x128xf32> to vector<16x128xbf16>
    %c3_i32 = arith.constant 3 : i32
    %27 = tpu.dynamic_rotate %2 by %c3_i32 dim 1 : vector<16x128xf32>, i32 -> vector<16x128xf32>
    %c3_i32_9 = arith.constant 3 : i32
    %28 = vector.broadcast %c3_i32_9 : i32 to vector<16x128xi32>
    %29 = arith.cmpi sge, %0, %28 : vector<16x128xi32>
    %cst_10 = arith.constant 0.000000e+00 : f32
    %30 = vector.broadcast %cst_10 : f32 to vector<16x128xf32>
    %31 = arith.select %29, %27, %30 : vector<16x128xi1>, vector<16x128xf32>
    %32 = arith.truncf %31 : vector<16x128xf32> to vector<16x128xbf16>
    %c2_i32 = arith.constant 2 : i32
    %33 = tpu.dynamic_rotate %2 by %c2_i32 dim 1 : vector<16x128xf32>, i32 -> vector<16x128xf32>
    %c2_i32_11 = arith.constant 2 : i32
    %34 = vector.broadcast %c2_i32_11 : i32 to vector<16x128xi32>
    %35 = arith.cmpi sge, %0, %34 : vector<16x128xi32>
    %cst_12 = arith.constant 0.000000e+00 : f32
    %36 = vector.broadcast %cst_12 : f32 to vector<16x128xf32>
    %37 = arith.select %35, %33, %36 : vector<16x128xi1>, vector<16x128xf32>
    %38 = arith.truncf %37 : vector<16x128xf32> to vector<16x128xbf16>
    %c1_i32 = arith.constant 1 : i32
    %39 = tpu.dynamic_rotate %2 by %c1_i32 dim 1 : vector<16x128xf32>, i32 -> vector<16x128xf32>
    %c1_i32_13 = arith.constant 1 : i32
    %40 = vector.broadcast %c1_i32_13 : i32 to vector<16x128xi32>
    %41 = arith.cmpi sge, %0, %40 : vector<16x128xi32>
    %cst_14 = arith.constant 0.000000e+00 : f32
    %42 = vector.broadcast %cst_14 : f32 to vector<16x128xf32>
    %43 = arith.select %41, %39, %42 : vector<16x128xi1>, vector<16x128xf32>
    %44 = arith.truncf %43 : vector<16x128xf32> to vector<16x128xbf16>
    %45 = arith.truncf %2 : vector<16x128xf32> to vector<16x128xbf16>
    %c127_i32 = arith.constant 127 : i32
    %46 = tpu.dynamic_rotate %2 by %c127_i32 dim 1 : vector<16x128xf32>, i32 -> vector<16x128xf32>
    %c127_i32_15 = arith.constant 127 : i32
    %47 = vector.broadcast %c127_i32_15 : i32 to vector<16x128xi32>
    %48 = arith.cmpi slt, %0, %47 : vector<16x128xi32>
    %cst_16 = arith.constant 0.000000e+00 : f32
    %49 = vector.broadcast %cst_16 : f32 to vector<16x128xf32>
    %50 = arith.select %48, %46, %49 : vector<16x128xi1>, vector<16x128xf32>
    %51 = arith.truncf %50 : vector<16x128xf32> to vector<16x128xbf16>
    %c126_i32 = arith.constant 126 : i32
    %52 = tpu.dynamic_rotate %2 by %c126_i32 dim 1 : vector<16x128xf32>, i32 -> vector<16x128xf32>
    %c126_i32_17 = arith.constant 126 : i32
    %53 = vector.broadcast %c126_i32_17 : i32 to vector<16x128xi32>
    %54 = arith.cmpi slt, %0, %53 : vector<16x128xi32>
    %cst_18 = arith.constant 0.000000e+00 : f32
    %55 = vector.broadcast %cst_18 : f32 to vector<16x128xf32>
    %56 = arith.select %54, %52, %55 : vector<16x128xi1>, vector<16x128xf32>
    %57 = arith.truncf %56 : vector<16x128xf32> to vector<16x128xbf16>
    %c125_i32 = arith.constant 125 : i32
    %58 = tpu.dynamic_rotate %2 by %c125_i32 dim 1 : vector<16x128xf32>, i32 -> vector<16x128xf32>
    %c125_i32_19 = arith.constant 125 : i32
    %59 = vector.broadcast %c125_i32_19 : i32 to vector<16x128xi32>
    %60 = arith.cmpi slt, %0, %59 : vector<16x128xi32>
    %cst_20 = arith.constant 0.000000e+00 : f32
    %61 = vector.broadcast %cst_20 : f32 to vector<16x128xf32>
    %62 = arith.select %60, %58, %61 : vector<16x128xi1>, vector<16x128xf32>
    %63 = arith.truncf %62 : vector<16x128xf32> to vector<16x128xbf16>
    %c124_i32 = arith.constant 124 : i32
    %64 = tpu.dynamic_rotate %2 by %c124_i32 dim 1 : vector<16x128xf32>, i32 -> vector<16x128xf32>
    %c124_i32_21 = arith.constant 124 : i32
    %65 = vector.broadcast %c124_i32_21 : i32 to vector<16x128xi32>
    %66 = arith.cmpi slt, %0, %65 : vector<16x128xi32>
    %cst_22 = arith.constant 0.000000e+00 : f32
    %67 = vector.broadcast %cst_22 : f32 to vector<16x128xf32>
    %68 = arith.select %66, %64, %67 : vector<16x128xi1>, vector<16x128xf32>
    %69 = arith.truncf %68 : vector<16x128xf32> to vector<16x128xbf16>
    %c123_i32 = arith.constant 123 : i32
    %70 = tpu.dynamic_rotate %2 by %c123_i32 dim 1 : vector<16x128xf32>, i32 -> vector<16x128xf32>
    %c123_i32_23 = arith.constant 123 : i32
    %71 = vector.broadcast %c123_i32_23 : i32 to vector<16x128xi32>
    %72 = arith.cmpi slt, %0, %71 : vector<16x128xi32>
    %cst_24 = arith.constant 0.000000e+00 : f32
    %73 = vector.broadcast %cst_24 : f32 to vector<16x128xf32>
    %74 = arith.select %72, %70, %73 : vector<16x128xi1>, vector<16x128xf32>
    %75 = arith.truncf %74 : vector<16x128xf32> to vector<16x128xbf16>
    %c122_i32 = arith.constant 122 : i32
    %76 = tpu.dynamic_rotate %2 by %c122_i32 dim 1 : vector<16x128xf32>, i32 -> vector<16x128xf32>
    %c122_i32_25 = arith.constant 122 : i32
    %77 = vector.broadcast %c122_i32_25 : i32 to vector<16x128xi32>
    %78 = arith.cmpi slt, %0, %77 : vector<16x128xi32>
    %cst_26 = arith.constant 0.000000e+00 : f32
    %79 = vector.broadcast %cst_26 : f32 to vector<16x128xf32>
    %80 = arith.select %78, %76, %79 : vector<16x128xi1>, vector<16x128xf32>
    %81 = arith.truncf %80 : vector<16x128xf32> to vector<16x128xbf16>
    %c121_i32 = arith.constant 121 : i32
    %82 = tpu.dynamic_rotate %2 by %c121_i32 dim 1 : vector<16x128xf32>, i32 -> vector<16x128xf32>
    %c121_i32_27 = arith.constant 121 : i32
    %83 = vector.broadcast %c121_i32_27 : i32 to vector<16x128xi32>
    %84 = arith.cmpi slt, %0, %83 : vector<16x128xi32>
    %cst_28 = arith.constant 0.000000e+00 : f32
    %85 = vector.broadcast %cst_28 : f32 to vector<16x128xf32>
    %86 = arith.select %84, %82, %85 : vector<16x128xi1>, vector<16x128xf32>
    %87 = arith.truncf %86 : vector<16x128xf32> to vector<16x128xbf16>
    %c120_i32 = arith.constant 120 : i32
    %88 = tpu.dynamic_rotate %2 by %c120_i32 dim 1 : vector<16x128xf32>, i32 -> vector<16x128xf32>
    %c120_i32_29 = arith.constant 120 : i32
    %89 = vector.broadcast %c120_i32_29 : i32 to vector<16x128xi32>
    %90 = arith.cmpi slt, %0, %89 : vector<16x128xi32>
    %cst_30 = arith.constant 0.000000e+00 : f32
    %91 = vector.broadcast %cst_30 : f32 to vector<16x128xf32>
    %92 = arith.select %90, %88, %91 : vector<16x128xi1>, vector<16x128xf32>
    %93 = arith.truncf %92 : vector<16x128xf32> to vector<16x128xbf16>
    %94 = tpu.concatenate %8, %14, %20, %26, %32, %38, %44, %45, %51, %57, %63, %69, %75, %81, %87, %93 in 0 : vector<16x128xbf16>, vector<16x128xbf16>, vector<16x128xbf16>, vector<16x128xbf16>, vector<16x128xbf16>, vector<16x128xbf16>, vector<16x128xbf16>, vector<16x128xbf16>, vector<16x128xbf16>, vector<16x128xbf16>, vector<16x128xbf16>, vector<16x128xbf16>, vector<16x128xbf16>, vector<16x128xbf16>, vector<16x128xbf16>, vector<16x128xbf16> -> vector<256x128xbf16>
    %c0_31 = arith.constant 0 : index
    %c0_32 = arith.constant 0 : index
    %95 = vector.load %arg2[%c0_31, %c0_32] : memref<48x256xbf16, #tpu.memory_space<vmem>>, vector<48x256xbf16>
    %cst_33 = arith.constant dense<0.000000e+00> : vector<48x128xf32>
    %96 = tpu.matmul %95, %94, %cst_33 {dimension_numbers = #tpu.dot_dimension_numbers<[1], [0], [0], [1], [0, 0, 1, 1], [], []>} : vector<48x256xbf16>, vector<256x128xbf16>, vector<48x128xf32> -> vector<48x128xf32>
    %97 = vector.extract_strided_slice %96 {offsets = [0, 0], sizes = [16, 128], strides = [1, 1]} : vector<48x128xf32> to vector<16x128xf32>
    %98 = vector.extract_strided_slice %96 {offsets = [16, 0], sizes = [16, 128], strides = [1, 1]} : vector<48x128xf32> to vector<16x128xf32>
    %99 = vector.extract_strided_slice %96 {offsets = [32, 0], sizes = [16, 128], strides = [1, 1]} : vector<48x128xf32> to vector<16x128xf32>
    %100 = arith.truncf %97 : vector<16x128xf32> to vector<16x128xbf16>
    %c0_34 = arith.constant 0 : index
    %c0_35 = arith.constant 0 : index
    %101 = vector.load %arg3[%c0_34, %c0_35] : memref<128x128xbf16, #tpu.memory_space<vmem>>, vector<128x128xbf16>
    %cst_36 = arith.constant dense<0.000000e+00> : vector<16x128xf32>
    %102 = tpu.matmul %100, %101, %cst_36 {dimension_numbers = #tpu.dot_dimension_numbers<[1], [0], [0], [1], [0, 0, 1, 1], [], []>} : vector<16x128xbf16>, vector<128x128xbf16>, vector<16x128xf32> -> vector<16x128xf32>
    %c0_37 = arith.constant 0 : index
    %c0_38 = arith.constant 0 : index
    %103 = vector.load %arg4[%c0_37, %c0_38] : memref<1x128xf32, #tpu.memory_space<vmem>>, vector<1x128xf32>
    %104 = vector.broadcast %103 : vector<1x128xf32> to vector<16x128xf32>
    %105 = arith.addf %102, %104 : vector<16x128xf32>
    %106 = arith.truncf %99 : vector<16x128xf32> to vector<16x128xbf16>
    %c0_39 = arith.constant 0 : index
    %c0_40 = arith.constant 0 : index
    %107 = vector.load %arg5[%c0_39, %c0_40] : memref<128x128xbf16, #tpu.memory_space<vmem>>, vector<128x128xbf16>
    %cst_41 = arith.constant dense<0.000000e+00> : vector<16x128xf32>
    %108 = tpu.matmul %106, %107, %cst_41 {dimension_numbers = #tpu.dot_dimension_numbers<[1], [0], [0], [1], [0, 0, 1, 1], [], []>} : vector<16x128xbf16>, vector<128x128xbf16>, vector<16x128xf32> -> vector<16x128xf32>
    %c0_42 = arith.constant 0 : index
    %c0_43 = arith.constant 0 : index
    %109 = vector.load %arg6[%c0_42, %c0_43] : memref<1x128xf32, #tpu.memory_space<vmem>>, vector<1x128xf32>
    %110 = vector.broadcast %109 : vector<1x128xf32> to vector<16x128xf32>
    %111 = arith.addf %108, %110 : vector<16x128xf32>
    %112 = arith.truncf %98 : vector<16x128xf32> to vector<16x128xbf16>
    %c0_44 = arith.constant 0 : index
    %c0_45 = arith.constant 0 : index
    %113 = vector.load %arg7[%c0_44, %c0_45] : memref<128x128xbf16, #tpu.memory_space<vmem>>, vector<128x128xbf16>
    %cst_46 = arith.constant dense<0.000000e+00> : vector<16x128xf32>
    %114 = tpu.matmul %112, %113, %cst_46 {dimension_numbers = #tpu.dot_dimension_numbers<[1], [0], [0], [1], [0, 0, 1, 1], [], []>} : vector<16x128xbf16>, vector<128x128xbf16>, vector<16x128xf32> -> vector<16x128xf32>
    %c0_47 = arith.constant 0 : index
    %c0_48 = arith.constant 0 : index
    %115 = vector.load %arg8[%c0_47, %c0_48] : memref<1x128xf32, #tpu.memory_space<vmem>>, vector<1x128xf32>
    %116 = vector.broadcast %115 : vector<1x128xf32> to vector<16x128xf32>
    %117 = arith.addf %114, %116 : vector<16x128xf32>
    %c0_49 = arith.constant 0 : index
    %c0_50 = arith.constant 0 : index
    %118 = vector.load %arg11[%c0_49, %c0_50] : memref<128x128xbf16, #tpu.memory_space<vmem>>, vector<128x128xbf16>
    %119 = arith.truncf %111 : vector<16x128xf32> to vector<16x128xbf16>
    %120 = tpu.concatenate %119, %119, %119, %119, %119, %119, %119, %119 in 0 : vector<16x128xbf16>, vector<16x128xbf16>, vector<16x128xbf16>, vector<16x128xbf16>, vector<16x128xbf16>, vector<16x128xbf16>, vector<16x128xbf16>, vector<16x128xbf16> -> vector<128x128xbf16>
    %121 = arith.mulf %120, %118 : vector<128x128xbf16>
    %122 = arith.truncf %117 : vector<16x128xf32> to vector<16x128xbf16>
    %123 = tpu.concatenate %122, %122, %122, %122, %122, %122, %122, %122 in 0 : vector<16x128xbf16>, vector<16x128xbf16>, vector<16x128xbf16>, vector<16x128xbf16>, vector<16x128xbf16>, vector<16x128xbf16>, vector<16x128xbf16>, vector<16x128xbf16> -> vector<128x128xbf16>
    %124 = arith.mulf %123, %118 : vector<128x128xbf16>
    %125 = arith.truncf %105 : vector<16x128xf32> to vector<16x128xbf16>
    "tpu.trace_start"() <{level = 10 : i32, message = "qc,jc->qj"}> : () -> ()
    %cst_51 = arith.constant dense<0.000000e+00> : vector<16x128xf32>
    %126 = tpu.matmul %125, %121, %cst_51 {dimension_numbers = #tpu.dot_dimension_numbers<[1], [1], [0], [0], [0, 0, 1, 0], [], []>} : vector<16x128xbf16>, vector<128x128xbf16>, vector<16x128xf32> -> vector<16x128xf32>
    "tpu.trace_stop"() : () -> ()
    %cst_52 = arith.constant dense<0xFF800000> : vector<16xf32>
    %127 = vector.multi_reduction <maximumf>, %126, %cst_52 [1] : vector<16x128xf32> to vector<16xf32>
    %128 = vector.shape_cast %127 : vector<16xf32> to vector<16x1xf32>
    %129 = vector.broadcast %128 : vector<16x1xf32> to vector<16x128xf32>
    %130 = arith.subf %126, %129 : vector<16x128xf32>
    %131 = math.exp %130 : vector<16x128xf32>
    %132 = arith.truncf %131 : vector<16x128xf32> to vector<16x128xbf16>
    %cst_53 = arith.constant dense<0.000000e+00> : vector<16x128xf32>
    %133 = tpu.matmul %132, %118, %cst_53 {dimension_numbers = #tpu.dot_dimension_numbers<[1], [0], [0], [1], [0, 0, 1, 1], [], []>} : vector<16x128xbf16>, vector<128x128xbf16>, vector<16x128xf32> -> vector<16x128xf32>
    %cst_54 = arith.constant dense<0.000000e+00> : vector<16x128xf32>
    %134 = tpu.matmul %132, %124, %cst_54 {dimension_numbers = #tpu.dot_dimension_numbers<[1], [0], [0], [1], [0, 0, 1, 1], [], []>} : vector<16x128xbf16>, vector<128x128xbf16>, vector<16x128xf32> -> vector<16x128xf32>
    %135 = tpu.reciprocal %133 {approx = true} : vector<16x128xf32> -> vector<16x128xf32>
    %136 = arith.mulf %134, %135 : vector<16x128xf32>
    %137 = arith.truncf %136 : vector<16x128xf32> to vector<16x128xbf16>
    %c0_55 = arith.constant 0 : index
    %c0_56 = arith.constant 0 : index
    %138 = vector.load %arg9[%c0_55, %c0_56] : memref<128x128xbf16, #tpu.memory_space<vmem>>, vector<128x128xbf16>
    %cst_57 = arith.constant dense<0.000000e+00> : vector<16x128xf32>
    %139 = tpu.matmul %137, %138, %cst_57 {dimension_numbers = #tpu.dot_dimension_numbers<[1], [0], [0], [1], [0, 0, 1, 1], [], []>} : vector<16x128xbf16>, vector<128x128xbf16>, vector<16x128xf32> -> vector<16x128xf32>
    %c0_58 = arith.constant 0 : index
    %c0_59 = arith.constant 0 : index
    %140 = vector.load %arg10[%c0_58, %c0_59] : memref<1x128xf32, #tpu.memory_space<vmem>>, vector<1x128xf32>
    %141 = vector.broadcast %140 : vector<1x128xf32> to vector<16x128xf32>
    %142 = arith.addf %139, %141 : vector<16x128xf32>
    %cst_60 = arith.constant 2.000000e+00 : f32
    %143 = vector.broadcast %cst_60 : f32 to vector<16x128xf32>
    %144 = arith.mulf %143, %2 : vector<16x128xf32>
    %145 = arith.addf %144, %142 : vector<16x128xf32>
    %c1_i32_61 = arith.constant 1 : i32
    %146 = tpu.dynamic_rotate %145 by %c1_i32_61 dim 1 : vector<16x128xf32>, i32 -> vector<16x128xf32>
    %c1_i32_62 = arith.constant 1 : i32
    %147 = vector.broadcast %c1_i32_62 : i32 to vector<16x128xi32>
    %148 = arith.cmpi sge, %0, %147 : vector<16x128xi32>
    %cst_63 = arith.constant 0.000000e+00 : f32
    %149 = vector.broadcast %cst_63 : f32 to vector<16x128xf32>
    %150 = arith.select %148, %146, %149 : vector<16x128xi1>, vector<16x128xf32>
    %151 = arith.truncf %150 : vector<16x128xf32> to vector<16x128xbf16>
    %152 = arith.truncf %145 : vector<16x128xf32> to vector<16x128xbf16>
    %c127_i32_64 = arith.constant 127 : i32
    %153 = tpu.dynamic_rotate %145 by %c127_i32_64 dim 1 : vector<16x128xf32>, i32 -> vector<16x128xf32>
    %c127_i32_65 = arith.constant 127 : i32
    %154 = vector.broadcast %c127_i32_65 : i32 to vector<16x128xi32>
    %155 = arith.cmpi slt, %0, %154 : vector<16x128xi32>
    %cst_66 = arith.constant 0.000000e+00 : f32
    %156 = vector.broadcast %cst_66 : f32 to vector<16x128xf32>
    %157 = arith.select %155, %153, %156 : vector<16x128xi1>, vector<16x128xf32>
    %158 = arith.truncf %157 : vector<16x128xf32> to vector<16x128xbf16>
    %c126_i32_67 = arith.constant 126 : i32
    %159 = tpu.dynamic_rotate %145 by %c126_i32_67 dim 1 : vector<16x128xf32>, i32 -> vector<16x128xf32>
    %c126_i32_68 = arith.constant 126 : i32
    %160 = vector.broadcast %c126_i32_68 : i32 to vector<16x128xi32>
    %161 = arith.cmpi slt, %0, %160 : vector<16x128xi32>
    %cst_69 = arith.constant 0.000000e+00 : f32
    %162 = vector.broadcast %cst_69 : f32 to vector<16x128xf32>
    %163 = arith.select %161, %159, %162 : vector<16x128xi1>, vector<16x128xf32>
    %164 = arith.truncf %163 : vector<16x128xf32> to vector<16x128xbf16>
    %165 = tpu.concatenate %151, %152, %158, %164 in 0 : vector<16x128xbf16>, vector<16x128xbf16>, vector<16x128xbf16>, vector<16x128xbf16> -> vector<64x128xbf16>
    %cst_70 = arith.constant 0.000000e+00 : f32
    %166 = vector.broadcast %cst_70 : f32 to vector<64x128xf32>
    %c0_71 = arith.constant 0 : index
    %c0_72 = arith.constant 0 : index
    %167 = vector.load %arg12[%c0_71, %c0_72] : memref<512x64xbf16, #tpu.memory_space<vmem>>, vector<128x64xbf16>
    %cst_73 = arith.constant dense<0.000000e+00> : vector<128x128xf32>
    %168 = tpu.matmul %167, %165, %cst_73 {dimension_numbers = #tpu.dot_dimension_numbers<[1], [0], [0], [1], [0, 0, 1, 1], [], []>} : vector<128x64xbf16>, vector<64x128xbf16>, vector<128x128xf32> -> vector<128x128xf32>
    %c0_74 = arith.constant 0 : index
    %c0_75 = arith.constant 0 : index
    %169 = vector.load %arg13[%c0_74, %c0_75] : memref<512x1xf32, #tpu.memory_space<vmem>>, vector<128x1xf32>
    %170 = vector.broadcast %169 : vector<128x1xf32> to vector<128x128xf32>
    %171 = arith.addf %168, %170 : vector<128x128xf32>
    %172 = vector.shape_cast %171 : vector<128x128xf32> to vector<8x16x128xf32>
    %173 = vector.shape_cast %145 : vector<16x128xf32> to vector<1x16x128xf32>
    %174 = vector.broadcast %173 : vector<1x16x128xf32> to vector<8x16x128xf32>
    %175 = arith.addf %172, %174 : vector<8x16x128xf32>
    %176 = vector.shape_cast %175 : vector<8x16x128xf32> to vector<128x128xf32>
    %cst_76 = arith.constant 0.000000e+00 : f32
    %177 = vector.broadcast %cst_76 : f32 to vector<128x128xf32>
    %178 = arith.maximumf %176, %177 : vector<128x128xf32>
    %179 = arith.addf %178, %176 : vector<128x128xf32>
    %c0_77 = arith.constant 0 : index
    %c0_78 = arith.constant 0 : index
    %c0_79 = arith.constant 0 : index
    %180 = vector.load %arg16[%c0_77, %c0_78, %c0_79] : memref<1x512x128xf32, #tpu.memory_space<vmem>>, vector<1x128x128xf32>
    %181 = vector.shape_cast %180 : vector<1x128x128xf32> to vector<128x128xf32>
    %182 = vector.shape_cast %179 : vector<128x128xf32> to vector<1x128x128xf32>
    tpu.vector_store %arg16[%c0_77, %c0_78, %c0_79], %182 {strides = array<i32>} : memref<1x512x128xf32, #tpu.memory_space<vmem>>, vector<1x128x128xf32>,
    %c0_80 = arith.constant 0 : index
    %c0_81 = arith.constant 0 : index
    %183 = vector.load %arg14[%c0_80, %c0_81] : memref<64x512xbf16, #tpu.memory_space<vmem>>, vector<64x128xbf16>
    %184 = arith.truncf %179 : vector<128x128xf32> to vector<128x128xbf16>
    %cst_82 = arith.constant dense<0.000000e+00> : vector<64x128xf32>
    %185 = tpu.matmul %183, %184, %cst_82 {dimension_numbers = #tpu.dot_dimension_numbers<[1], [0], [0], [1], [0, 0, 1, 1], [], []>} : vector<64x128xbf16>, vector<128x128xbf16>, vector<64x128xf32> -> vector<64x128xf32>
    %186 = arith.addf %166, %185 : vector<64x128xf32>
    %c128 = arith.constant 128 : index
    %c0_83 = arith.constant 0 : index
    %187 = vector.load %arg12[%c128, %c0_83] : memref<512x64xbf16, #tpu.memory_space<vmem>>, vector<128x64xbf16>
    %cst_84 = arith.constant dense<0.000000e+00> : vector<128x128xf32>
    %188 = tpu.matmul %187, %165, %cst_84 {dimension_numbers = #tpu.dot_dimension_numbers<[1], [0], [0], [1], [0, 0, 1, 1], [], []>} : vector<128x64xbf16>, vector<64x128xbf16>, vector<128x128xf32> -> vector<128x128xf32>
    %c128_85 = arith.constant 128 : index
    %c0_86 = arith.constant 0 : index
    %189 = vector.load %arg13[%c128_85, %c0_86] : memref<512x1xf32, #tpu.memory_space<vmem>>, vector<128x1xf32>
    %190 = vector.broadcast %189 : vector<128x1xf32> to vector<128x128xf32>
    %191 = arith.addf %188, %190 : vector<128x128xf32>
    %192 = vector.shape_cast %191 : vector<128x128xf32> to vector<8x16x128xf32>
    %193 = vector.shape_cast %145 : vector<16x128xf32> to vector<1x16x128xf32>
    %194 = vector.broadcast %193 : vector<1x16x128xf32> to vector<8x16x128xf32>
    %195 = arith.addf %192, %194 : vector<8x16x128xf32>
    %196 = vector.shape_cast %195 : vector<8x16x128xf32> to vector<128x128xf32>
    %cst_87 = arith.constant 0.000000e+00 : f32
    %197 = vector.broadcast %cst_87 : f32 to vector<128x128xf32>
    %198 = arith.maximumf %196, %197 : vector<128x128xf32>
    %199 = arith.addf %198, %196 : vector<128x128xf32>
    %c0_88 = arith.constant 0 : index
    %c128_89 = arith.constant 128 : index
    %c0_90 = arith.constant 0 : index
    %200 = vector.load %arg16[%c0_88, %c128_89, %c0_90] : memref<1x512x128xf32, #tpu.memory_space<vmem>>, vector<1x128x128xf32>
    %201 = vector.shape_cast %200 : vector<1x128x128xf32> to vector<128x128xf32>
    %202 = vector.shape_cast %199 : vector<128x128xf32> to vector<1x128x128xf32>
    tpu.vector_store %arg16[%c0_88, %c128_89, %c0_90], %202 {strides = array<i32>} : memref<1x512x128xf32, #tpu.memory_space<vmem>>, vector<1x128x128xf32>,
    %c0_91 = arith.constant 0 : index
    %c128_92 = arith.constant 128 : index
    %203 = vector.load %arg14[%c0_91, %c128_92] : memref<64x512xbf16, #tpu.memory_space<vmem>>, vector<64x128xbf16>
    %204 = arith.truncf %199 : vector<128x128xf32> to vector<128x128xbf16>
    %cst_93 = arith.constant dense<0.000000e+00> : vector<64x128xf32>
    %205 = tpu.matmul %203, %204, %cst_93 {dimension_numbers = #tpu.dot_dimension_numbers<[1], [0], [0], [1], [0, 0, 1, 1], [], []>} : vector<64x128xbf16>, vector<128x128xbf16>, vector<64x128xf32> -> vector<64x128xf32>
    %206 = arith.addf %186, %205 : vector<64x128xf32>
    %c256 = arith.constant 256 : index
    %c0_94 = arith.constant 0 : index
    %207 = vector.load %arg12[%c256, %c0_94] : memref<512x64xbf16, #tpu.memory_space<vmem>>, vector<128x64xbf16>
    %cst_95 = arith.constant dense<0.000000e+00> : vector<128x128xf32>
    %208 = tpu.matmul %207, %165, %cst_95 {dimension_numbers = #tpu.dot_dimension_numbers<[1], [0], [0], [1], [0, 0, 1, 1], [], []>} : vector<128x64xbf16>, vector<64x128xbf16>, vector<128x128xf32> -> vector<128x128xf32>
    %c256_96 = arith.constant 256 : index
    %c0_97 = arith.constant 0 : index
    %209 = vector.load %arg13[%c256_96, %c0_97] : memref<512x1xf32, #tpu.memory_space<vmem>>, vector<128x1xf32>
    %210 = vector.broadcast %209 : vector<128x1xf32> to vector<128x128xf32>
    %211 = arith.addf %208, %210 : vector<128x128xf32>
    %212 = vector.shape_cast %211 : vector<128x128xf32> to vector<8x16x128xf32>
    %213 = vector.shape_cast %145 : vector<16x128xf32> to vector<1x16x128xf32>
    %214 = vector.broadcast %213 : vector<1x16x128xf32> to vector<8x16x128xf32>
    %215 = arith.addf %212, %214 : vector<8x16x128xf32>
    %216 = vector.shape_cast %215 : vector<8x16x128xf32> to vector<128x128xf32>
    %cst_98 = arith.constant 0.000000e+00 : f32
    %217 = vector.broadcast %cst_98 : f32 to vector<128x128xf32>
    %218 = arith.maximumf %216, %217 : vector<128x128xf32>
    %219 = arith.addf %218, %216 : vector<128x128xf32>
    %c0_99 = arith.constant 0 : index
    %c256_100 = arith.constant 256 : index
    %c0_101 = arith.constant 0 : index
    %220 = vector.load %arg16[%c0_99, %c256_100, %c0_101] : memref<1x512x128xf32, #tpu.memory_space<vmem>>, vector<1x128x128xf32>
    %221 = vector.shape_cast %220 : vector<1x128x128xf32> to vector<128x128xf32>
    %222 = vector.shape_cast %219 : vector<128x128xf32> to vector<1x128x128xf32>
    tpu.vector_store %arg16[%c0_99, %c256_100, %c0_101], %222 {strides = array<i32>} : memref<1x512x128xf32, #tpu.memory_space<vmem>>, vector<1x128x128xf32>,
    %c0_102 = arith.constant 0 : index
    %c256_103 = arith.constant 256 : index
    %223 = vector.load %arg14[%c0_102, %c256_103] : memref<64x512xbf16, #tpu.memory_space<vmem>>, vector<64x128xbf16>
    %224 = arith.truncf %219 : vector<128x128xf32> to vector<128x128xbf16>
    %cst_104 = arith.constant dense<0.000000e+00> : vector<64x128xf32>
    %225 = tpu.matmul %223, %224, %cst_104 {dimension_numbers = #tpu.dot_dimension_numbers<[1], [0], [0], [1], [0, 0, 1, 1], [], []>} : vector<64x128xbf16>, vector<128x128xbf16>, vector<64x128xf32> -> vector<64x128xf32>
    %226 = arith.addf %206, %225 : vector<64x128xf32>
    %c384 = arith.constant 384 : index
    %c0_105 = arith.constant 0 : index
    %227 = vector.load %arg12[%c384, %c0_105] : memref<512x64xbf16, #tpu.memory_space<vmem>>, vector<128x64xbf16>
    %cst_106 = arith.constant dense<0.000000e+00> : vector<128x128xf32>
    %228 = tpu.matmul %227, %165, %cst_106 {dimension_numbers = #tpu.dot_dimension_numbers<[1], [0], [0], [1], [0, 0, 1, 1], [], []>} : vector<128x64xbf16>, vector<64x128xbf16>, vector<128x128xf32> -> vector<128x128xf32>
    %c384_107 = arith.constant 384 : index
    %c0_108 = arith.constant 0 : index
    %229 = vector.load %arg13[%c384_107, %c0_108] : memref<512x1xf32, #tpu.memory_space<vmem>>, vector<128x1xf32>
    %230 = vector.broadcast %229 : vector<128x1xf32> to vector<128x128xf32>
    %231 = arith.addf %228, %230 : vector<128x128xf32>
    %232 = vector.shape_cast %231 : vector<128x128xf32> to vector<8x16x128xf32>
    %233 = vector.shape_cast %145 : vector<16x128xf32> to vector<1x16x128xf32>
    %234 = vector.broadcast %233 : vector<1x16x128xf32> to vector<8x16x128xf32>
    %235 = arith.addf %232, %234 : vector<8x16x128xf32>
    %236 = vector.shape_cast %235 : vector<8x16x128xf32> to vector<128x128xf32>
    %cst_109 = arith.constant 0.000000e+00 : f32
    %237 = vector.broadcast %cst_109 : f32 to vector<128x128xf32>
    %238 = arith.maximumf %236, %237 : vector<128x128xf32>
    %239 = arith.addf %238, %236 : vector<128x128xf32>
    %c0_110 = arith.constant 0 : index
    %c384_111 = arith.constant 384 : index
    %c0_112 = arith.constant 0 : index
    %240 = vector.load %arg16[%c0_110, %c384_111, %c0_112] : memref<1x512x128xf32, #tpu.memory_space<vmem>>, vector<1x128x128xf32>
    %241 = vector.shape_cast %240 : vector<1x128x128xf32> to vector<128x128xf32>
    %242 = vector.shape_cast %239 : vector<128x128xf32> to vector<1x128x128xf32>
    tpu.vector_store %arg16[%c0_110, %c384_111, %c0_112], %242 {strides = array<i32>} : memref<1x512x128xf32, #tpu.memory_space<vmem>>, vector<1x128x128xf32>,
    %c0_113 = arith.constant 0 : index
    %c384_114 = arith.constant 384 : index
    %243 = vector.load %arg14[%c0_113, %c384_114] : memref<64x512xbf16, #tpu.memory_space<vmem>>, vector<64x128xbf16>
    %244 = arith.truncf %239 : vector<128x128xf32> to vector<128x128xbf16>
    %cst_115 = arith.constant dense<0.000000e+00> : vector<64x128xf32>
    %245 = tpu.matmul %243, %244, %cst_115 {dimension_numbers = #tpu.dot_dimension_numbers<[1], [0], [0], [1], [0, 0, 1, 1], [], []>} : vector<64x128xbf16>, vector<128x128xbf16>, vector<64x128xf32> -> vector<64x128xf32>
    %246 = arith.addf %226, %245 : vector<64x128xf32>
    %c0_116 = arith.constant 0 : index
    %c0_117 = arith.constant 0 : index
    %247 = vector.load %arg15[%c0_116, %c0_117] : memref<1x128xf32, #tpu.memory_space<vmem>>, vector<1x128xf32>
    %248 = vector.extract_strided_slice %246 {offsets = [16, 0], sizes = [16, 128], strides = [1, 1]} : vector<64x128xf32> to vector<16x128xf32>
    %249 = vector.broadcast %247 : vector<1x128xf32> to vector<16x128xf32>
    %250 = arith.addf %249, %248 : vector<16x128xf32>
    %251 = vector.extract_strided_slice %246 {offsets = [0, 0], sizes = [16, 128], strides = [1, 1]} : vector<64x128xf32> to vector<16x128xf32>
    %c1_i32_118 = arith.constant 1 : i32
    %252 = tpu.dynamic_rotate %251 by %c1_i32_118 dim 1 : vector<16x128xf32>, i32 -> vector<16x128xf32>
    %c1_i32_119 = arith.constant 1 : i32
    %253 = vector.broadcast %c1_i32_119 : i32 to vector<16x128xi32>
    %254 = arith.cmpi sge, %0, %253 : vector<16x128xi32>
    %cst_120 = arith.constant 0.000000e+00 : f32
    %255 = vector.broadcast %cst_120 : f32 to vector<16x128xf32>
    %256 = arith.select %254, %252, %255 : vector<16x128xi1>, vector<16x128xf32>
    %257 = arith.addf %250, %256 : vector<16x128xf32>
    %258 = vector.extract_strided_slice %246 {offsets = [32, 0], sizes = [16, 128], strides = [1, 1]} : vector<64x128xf32> to vector<16x128xf32>
    %c127_i32_121 = arith.constant 127 : i32
    %259 = tpu.dynamic_rotate %258 by %c127_i32_121 dim 1 : vector<16x128xf32>, i32 -> vector<16x128xf32>
    %c127_i32_122 = arith.constant 127 : i32
    %260 = vector.broadcast %c127_i32_122 : i32 to vector<16x128xi32>
    %261 = arith.cmpi slt, %0, %260 : vector<16x128xi32>
    %cst_123 = arith.constant 0.000000e+00 : f32
    %262 = vector.broadcast %cst_123 : f32 to vector<16x128xf32>
    %263 = arith.select %261, %259, %262 : vector<16x128xi1>, vector<16x128xf32>
    %264 = arith.addf %257, %263 : vector<16x128xf32>
    %265 = vector.extract_strided_slice %246 {offsets = [48, 0], sizes = [16, 128], strides = [1, 1]} : vector<64x128xf32> to vector<16x128xf32>
    %c126_i32_124 = arith.constant 126 : i32
    %266 = tpu.dynamic_rotate %265 by %c126_i32_124 dim 1 : vector<16x128xf32>, i32 -> vector<16x128xf32>
    %c126_i32_125 = arith.constant 126 : i32
    %267 = vector.broadcast %c126_i32_125 : i32 to vector<16x128xi32>
    %268 = arith.cmpi slt, %0, %267 : vector<16x128xi32>
    %cst_126 = arith.constant 0.000000e+00 : f32
    %269 = vector.broadcast %cst_126 : f32 to vector<16x128xf32>
    %270 = arith.select %268, %266, %269 : vector<16x128xi1>, vector<16x128xf32>
    %271 = arith.addf %264, %270 : vector<16x128xf32>
    %c0_127 = arith.constant 0 : index
    %c0_128 = arith.constant 0 : index
    %c0_129 = arith.constant 0 : index
    %272 = vector.load %arg16[%c0_127, %c0_128, %c0_129] : memref<1x512x128xf32, #tpu.memory_space<vmem>>, vector<1x128x128xf32>
    %273 = vector.shape_cast %272 : vector<1x128x128xf32> to vector<128x128xf32>
    %274 = vector.shape_cast %273 : vector<128x128xf32> to vector<8x16x128xf32>
    %275 = vector.shape_cast %271 : vector<16x128xf32> to vector<1x16x128xf32>
    %276 = vector.broadcast %275 : vector<1x16x128xf32> to vector<8x16x128xf32>
    %277 = arith.addf %274, %276 : vector<8x16x128xf32>
    %278 = vector.shape_cast %277 : vector<8x16x128xf32> to vector<128x128xf32>
    %cst_130 = arith.constant 0.000000e+00 : f32
    %279 = vector.broadcast %cst_130 : f32 to vector<128x128xf32>
    %280 = arith.maximumf %278, %279 : vector<128x128xf32>
    %281 = arith.addf %280, %278 : vector<128x128xf32>
    %c0_131 = arith.constant 0 : index
    %c0_132 = arith.constant 0 : index
    %c0_133 = arith.constant 0 : index
    %282 = vector.load %arg16[%c0_131, %c0_132, %c0_133] : memref<1x512x128xf32, #tpu.memory_space<vmem>>, vector<1x128x128xf32>
    %283 = vector.shape_cast %282 : vector<1x128x128xf32> to vector<128x128xf32>
    %284 = vector.shape_cast %281 : vector<128x128xf32> to vector<1x128x128xf32>
    tpu.vector_store %arg16[%c0_131, %c0_132, %c0_133], %284 {strides = array<i32>} : memref<1x512x128xf32, #tpu.memory_space<vmem>>, vector<1x128x128xf32>,
    %c0_134 = arith.constant 0 : index
    %c128_135 = arith.constant 128 : index
    %c0_136 = arith.constant 0 : index
    %285 = vector.load %arg16[%c0_134, %c128_135, %c0_136] : memref<1x512x128xf32, #tpu.memory_space<vmem>>, vector<1x128x128xf32>
    %286 = vector.shape_cast %285 : vector<1x128x128xf32> to vector<128x128xf32>
    %287 = vector.shape_cast %286 : vector<128x128xf32> to vector<8x16x128xf32>
    %288 = vector.shape_cast %271 : vector<16x128xf32> to vector<1x16x128xf32>
    %289 = vector.broadcast %288 : vector<1x16x128xf32> to vector<8x16x128xf32>
    %290 = arith.addf %287, %289 : vector<8x16x128xf32>
    %291 = vector.shape_cast %290 : vector<8x16x128xf32> to vector<128x128xf32>
    %cst_137 = arith.constant 0.000000e+00 : f32
    %292 = vector.broadcast %cst_137 : f32 to vector<128x128xf32>
    %293 = arith.maximumf %291, %292 : vector<128x128xf32>
    %294 = arith.addf %293, %291 : vector<128x128xf32>
    %c0_138 = arith.constant 0 : index
    %c128_139 = arith.constant 128 : index
    %c0_140 = arith.constant 0 : index
    %295 = vector.load %arg16[%c0_138, %c128_139, %c0_140] : memref<1x512x128xf32, #tpu.memory_space<vmem>>, vector<1x128x128xf32>
    %296 = vector.shape_cast %295 : vector<1x128x128xf32> to vector<128x128xf32>
    %297 = vector.shape_cast %294 : vector<128x128xf32> to vector<1x128x128xf32>
    tpu.vector_store %arg16[%c0_138, %c128_139, %c0_140], %297 {strides = array<i32>} : memref<1x512x128xf32, #tpu.memory_space<vmem>>, vector<1x128x128xf32>,
    %c0_141 = arith.constant 0 : index
    %c256_142 = arith.constant 256 : index
    %c0_143 = arith.constant 0 : index
    %298 = vector.load %arg16[%c0_141, %c256_142, %c0_143] : memref<1x512x128xf32, #tpu.memory_space<vmem>>, vector<1x128x128xf32>
    %299 = vector.shape_cast %298 : vector<1x128x128xf32> to vector<128x128xf32>
    %300 = vector.shape_cast %299 : vector<128x128xf32> to vector<8x16x128xf32>
    %301 = vector.shape_cast %271 : vector<16x128xf32> to vector<1x16x128xf32>
    %302 = vector.broadcast %301 : vector<1x16x128xf32> to vector<8x16x128xf32>
    %303 = arith.addf %300, %302 : vector<8x16x128xf32>
    %304 = vector.shape_cast %303 : vector<8x16x128xf32> to vector<128x128xf32>
    %cst_144 = arith.constant 0.000000e+00 : f32
    %305 = vector.broadcast %cst_144 : f32 to vector<128x128xf32>
    %306 = arith.maximumf %304, %305 : vector<128x128xf32>
    %307 = arith.addf %306, %304 : vector<128x128xf32>
    %c0_145 = arith.constant 0 : index
    %c256_146 = arith.constant 256 : index
    %c0_147 = arith.constant 0 : index
    %308 = vector.load %arg16[%c0_145, %c256_146, %c0_147] : memref<1x512x128xf32, #tpu.memory_space<vmem>>, vector<1x128x128xf32>
    %309 = vector.shape_cast %308 : vector<1x128x128xf32> to vector<128x128xf32>
    %310 = vector.shape_cast %307 : vector<128x128xf32> to vector<1x128x128xf32>
    tpu.vector_store %arg16[%c0_145, %c256_146, %c0_147], %310 {strides = array<i32>} : memref<1x512x128xf32, #tpu.memory_space<vmem>>, vector<1x128x128xf32>,
    %c0_148 = arith.constant 0 : index
    %c384_149 = arith.constant 384 : index
    %c0_150 = arith.constant 0 : index
    %311 = vector.load %arg16[%c0_148, %c384_149, %c0_150] : memref<1x512x128xf32, #tpu.memory_space<vmem>>, vector<1x128x128xf32>
    %312 = vector.shape_cast %311 : vector<1x128x128xf32> to vector<128x128xf32>
    %313 = vector.shape_cast %312 : vector<128x128xf32> to vector<8x16x128xf32>
    %314 = vector.shape_cast %271 : vector<16x128xf32> to vector<1x16x128xf32>
    %315 = vector.broadcast %314 : vector<1x16x128xf32> to vector<8x16x128xf32>
    %316 = arith.addf %313, %315 : vector<8x16x128xf32>
    %317 = vector.shape_cast %316 : vector<8x16x128xf32> to vector<128x128xf32>
    %cst_151 = arith.constant 0.000000e+00 : f32
    %318 = vector.broadcast %cst_151 : f32 to vector<128x128xf32>
    %319 = arith.maximumf %317, %318 : vector<128x128xf32>
    %320 = arith.addf %319, %317 : vector<128x128xf32>
    %c0_152 = arith.constant 0 : index
    %c384_153 = arith.constant 384 : index
    %c0_154 = arith.constant 0 : index
    %321 = vector.load %arg16[%c0_152, %c384_153, %c0_154] : memref<1x512x128xf32, #tpu.memory_space<vmem>>, vector<1x128x128xf32>
    %322 = vector.shape_cast %321 : vector<1x128x128xf32> to vector<128x128xf32>
    %323 = vector.shape_cast %320 : vector<128x128xf32> to vector<1x128x128xf32>
    tpu.vector_store %arg16[%c0_152, %c384_153, %c0_154], %323 {strides = array<i32>} : memref<1x512x128xf32, #tpu.memory_space<vmem>>, vector<1x128x128xf32>,
    return
  }
  func.func @transform_0(%arg0: i32) -> (i32, i32, i32) {
    %c0_i32 = arith.constant 0 : i32
    %c0_i32_0 = arith.constant 0 : i32
    %c0_i32_1 = arith.constant 0 : i32
    return %arg0, %c0_i32, %c0_i32_0 : i32, i32, i32
  }
  func.func @transform_1(%arg0: i32) -> (i32, i32) {
    %c0_i32 = arith.constant 0 : i32
    %c0_i32_0 = arith.constant 0 : i32
    %c0_i32_1 = arith.constant 0 : i32
    return %c0_i32, %c0_i32_0 : i32, i32
  }
  func.func @transform_2(%arg0: i32) -> (i32, i32) {
    %c0_i32 = arith.constant 0 : i32
    %c0_i32_0 = arith.constant 0 : i32
    %c0_i32_1 = arith.constant 0 : i32
    return %c0_i32, %c0_i32_0 : i32, i32
  }
  func.func @transform_3(%arg0: i32) -> (i32, i32) {
    %c0_i32 = arith.constant 0 : i32
    %c0_i32_0 = arith.constant 0 : i32
    %c0_i32_1 = arith.constant 0 : i32
    return %c0_i32, %c0_i32_0 : i32, i32
  }
  func.func @transform_4(%arg0: i32) -> (i32, i32) {
    %c0_i32 = arith.constant 0 : i32
    %c0_i32_0 = arith.constant 0 : i32
    %c0_i32_1 = arith.constant 0 : i32
    return %c0_i32, %c0_i32_0 : i32, i32
  }
  func.func @transform_5(%arg0: i32) -> (i32, i32) {
    %c0_i32 = arith.constant 0 : i32
    %c0_i32_0 = arith.constant 0 : i32
    %c0_i32_1 = arith.constant 0 : i32
    return %c0_i32, %c0_i32_0 : i32, i32
  }
  func.func @transform_6(%arg0: i32) -> (i32, i32) {
    %c0_i32 = arith.constant 0 : i32
    %c0_i32_0 = arith.constant 0 : i32
    %c0_i32_1 = arith.constant 0 : i32
    return %c0_i32, %c0_i32_0 : i32, i32
  }
  func.func @transform_7(%arg0: i32) -> (i32, i32) {
    %c0_i32 = arith.constant 0 : i32
    %c0_i32_0 = arith.constant 0 : i32
    %c0_i32_1 = arith.constant 0 : i32
    return %c0_i32, %c0_i32_0 : i32, i32
  }
  func.func @transform_8(%arg0: i32) -> (i32, i32) {
    %c0_i32 = arith.constant 0 : i32
    %c0_i32_0 = arith.constant 0 : i32
    %c0_i32_1 = arith.constant 0 : i32
    return %c0_i32, %c0_i32_0 : i32, i32
  }
  func.func @transform_9(%arg0: i32) -> (i32, i32) {
    %c0_i32 = arith.constant 0 : i32
    %c0_i32_0 = arith.constant 0 : i32
    %c0_i32_1 = arith.constant 0 : i32
    return %c0_i32, %c0_i32_0 : i32, i32
  }
  func.func @transform_10(%arg0: i32) -> (i32, i32) {
    %c0_i32 = arith.constant 0 : i32
    %c0_i32_0 = arith.constant 0 : i32
    %c0_i32_1 = arith.constant 0 : i32
    return %c0_i32, %c0_i32_0 : i32, i32
  }
  func.func @transform_11(%arg0: i32) -> (i32, i32) {
    %c0_i32 = arith.constant 0 : i32
    %c0_i32_0 = arith.constant 0 : i32
    %c0_i32_1 = arith.constant 0 : i32
    return %c0_i32, %c0_i32_0 : i32, i32
  }
  func.func @transform_12(%arg0: i32) -> (i32, i32) {
    %c0_i32 = arith.constant 0 : i32
    %c0_i32_0 = arith.constant 0 : i32
    %c0_i32_1 = arith.constant 0 : i32
    return %c0_i32, %c0_i32_0 : i32, i32
  }
  func.func @transform_13(%arg0: i32) -> (i32, i32) {
    %c0_i32 = arith.constant 0 : i32
    %c0_i32_0 = arith.constant 0 : i32
    %c0_i32_1 = arith.constant 0 : i32
    return %c0_i32, %c0_i32_0 : i32, i32
  }
  func.func @transform_14(%arg0: i32) -> (i32, i32) {
    %c0_i32 = arith.constant 0 : i32
    %c0_i32_0 = arith.constant 0 : i32
    %c0_i32_1 = arith.constant 0 : i32
    return %c0_i32, %c0_i32_0 : i32, i32
  }
  func.func @transform_15(%arg0: i32) -> (i32, i32, i32) {
    %c0_i32 = arith.constant 0 : i32
    %c0_i32_0 = arith.constant 0 : i32
    %c0_i32_1 = arith.constant 0 : i32
    return %arg0, %c0_i32, %c0_i32_0 : i32, i32, i32
  }
}

</mosaic_0001>

<bundles_post_ra>
// kernel: modifier_forward.1
= control target key start
LH: loop header
LB: loop body
LE: loop exit
PB: predicated region body
PF: predicated region fallthrough
CT: control target
= control target key end

     0   :  { %s6762_s0 = inlined_call_operand.vmem [shape: f32[2,16,128], index: 0, kind: input, shape index: {}]   ;;  %s6763_s1 = inlined_call_operand.vmem [shape: bf16[48,256], index: 1, kind: input, shape index: {}]   ;;  %s6764_s2 = inlined_call_operand.vmem [shape: bf16[128,128], index: 2, kind: input, shape index: {}]   ;;  %s6765_s3 = inlined_call_operand.vmem [shape: f32[1,128], index: 3, kind: input, shape index: {}]   ;;  %s6766_s4 = inlined_call_operand.vmem [shape: bf16[128,128], index: 4, kind: input, shape index: {}]   ;;  %s6767_s5 = inlined_call_operand.vmem [shape: f32[1,128], index: 5, kind: input, shape index: {}]   ;;  %s6768_s6 = inlined_call_operand.vmem [shape: bf16[128,128], index: 6, kind: input, shape index: {}]   ;;  %s6769_s7 = inlined_call_operand.vmem [shape: f32[1,128], index: 7, kind: input, shape index: {}]   ;;  %s6770_s8 = inlined_call_operand.vmem [shape: bf16[128,128], index: 8, kind: input, shape index: {}]   ;;  %s6771_s9 = inlined_call_operand.vmem [shape: f32[1,128], index: 9, kind: input, shape index: {}]   ;;  %s6772_s10 = inlined_call_operand.vmem [shape: bf16[128,128], index: 10, kind: input, shape index: {}]   ;;  %s6773_s11 = inlined_call_operand.vmem [shape: bf16[512,64], index: 11, kind: input, shape index: {}]   ;;  %s6774_s12 = inlined_call_operand.vmem [shape: f32[512,1], index: 12, kind: input, shape index: {}]   ;;  %s6775_s13 = inlined_call_operand.vmem [shape: bf16[64,512], index: 13, kind: input, shape index: {}]   ;;  %s6776_s14 = inlined_call_operand.vmem [shape: f32[1,128], index: 14, kind: input, shape index: {}]   ;;  %s6777_s15 = inlined_call_operand.hbm [shape: f32[2,512,128], index: 15, kind: output, shape index: {}]  }
   0x1   :  { %6849 = sst [smem:[#allocation43_spill]] %s6762_s0 }
   0x2   :  { %20 = vsyncpa [#allocation3], 0 }
   0x3   :  { %22 = vsyncpa [#allocation3 + $0x1], 0  ;;  %s4839_s18 = smov 0   ;;  %s4841_s19 = smov 0  }
   0x4   :  { %s4843_s20 = smov 0   ;;  %s4845_s21 = smov 0  }
   0x5 LB: > { %6850 = sst [smem:[#allocation5_spill]] %s4724_s18  ;;  %s4860_s22 = sadd.s32 4294967295, %s4736_s21   ;;  %s4736_s21 = sphi %s4845_s21, %s7010_s21   ;;  %s4732_s20 = sphi %s4843_s20, %s7012_s20   ;;  %s4728_s19 = sphi %s4841_s19, %s7014_s19   ;;  %s4724_s18 = sphi %s4839_s18, %s7013_s18  }
   0x6   : > { %6851 = sst [smem:[#allocation6_spill]] %s4732_s20  ;;  %s3625_s23 = sadd.s32 4294967294, %s4736_s21  }
   0x7   : > { %s4864_s24 = sadd.s32 1, %s4736_s21   ;;  %s355_s25 = sadd.s32 1, %s4732_s20 }
   0x8   : > { %6852 = sst [smem:[#allocation7_spill]] %s4864_s24  ;;  %s352_s26 = ssub.s32 %s4736_s21, %s4864_s24 }
   0x9   : > { %p365_p0 = scmp.ne.s32.totalorder %s4732_s20, %s4728_s19  ;;  %p353_p1 = scmp.eq.s32.totalorder %s352_s26, 0 }
   0xa   : > { %p366_p2 = scmp.eq.s32.totalorder %s4860_s22, 1  ;;  %p371_p3 = scmp.ne.s32.totalorder %s4728_s19, %s4724_s18 }
   0xb   : > { %p372_p4 = scmp.eq.s32.totalorder %s3625_s23, 1  ;;  %p3628_p7 = scmp.ge.s32.totalorder %s4736_s21, 1 }
   0xc   : > { %s4875_s27 = scalar_select %p353_p1, %s4732_s20, %s355_s25  }
   0xd   : > { %p4877_p5 = por %p366_p2, %p365_p0  ;;  %p4881_p6 = por %p372_p4, %p371_p3 }
   0xe   : > { %6853 = sst [smem:[#allocation8_spill]] %s4875_s27  ;;  %p440_p8 = scmp.lt.s32.totalorder %s4736_s21, 3 }
   0xf   : > { %s6855_s29 = scalar_select %p4881_p6, 1, 0 }
  0x10   : > { %p441_p9 = pnand %p3628_p7, %p440_p8 }
  0x11   : > { %6856 = sst [smem:[#allocation9_spill]] %s6855_s29 }
  0x12   : > { %444 = sbr.rel (%p441_p9) target bundleno = 2444 (0x98c), region = 80 }
  0x19   : > { %p488_p10 = scmp.lt.s32.totalorder %s4860_s22, 1  ;;  %s6857_s0 = sld [smem:[#allocation43_spill]]  ;;  %v4569_v4 = vld [vmem:[%s6763_s1 + $0x4] ss:$8 sps:$4 sm:$0xff]   ;;  %v4753_v6 = vmov 0.0   ;;  %v4578_v8 = vld [vmem:[%s6764_s2 + $0x10] sm:$0xff]   ;;  %v494_v12 = vlaneseq }
  0x1a   : > { %s6782_s26 = smov 127   ;;  %s4739_s27 = smov 126   ;;  %687 = vmatprep.mubr.bf16.mxu0 %v4569_v4  ;;  %v4576_v5 = vld [vmem:[%s6764_s2] sm:$0xff]   ;;  %4044 = vmatprep.subr.bf16.mxu1 %v4753_v6  ;;  %v4577_v7 = vld [vmem:[%s6764_s2 + $0x8] sm:$0xff]   ;;  %v4579_v9 = vld [vmem:[%s6764_s2 + $0x18] sm:$0xff]  }
  0x1b   : > { %s489_s30 = scalar_select %p488_p10, %s4860_s22, 1  ;;  %4045 = vmatpush3.bf16.msra.mxu1 %v4576_v5  ;;  %v4580_v10 = vld [vmem:[%s6764_s2 + $0x20] sm:$0xff]   ;;  %v4582_v11 = vld [vmem:[%s6764_s2 + $0x28] sm:$0xff]   ;;  %v4935_v13 = vand.u32 127, %v494_v12  ;;  %v4639_v20 = vld [vmem:[%s6773_s11 + $0xb8] sm:$0xff]  }
  0x1c   : > { %s4741_s17 = smov 6   ;;  %s4743_s23 = smov 5   ;;  %4046 = vmatprep.subr.bf16.mxu1 %v4753_v6  ;;  %v4641_v30 = vld [vmem:[%s6773_s11 + $0xc8] sm:$0xff]  }
  0x1d   : > { %s3849_s16 = sshll.u32 %s489_s30, 4  ;;  %s4740_s30 = smov 7   ;;  %6858 = vst [vmem:[#allocation10_spill] sm:$0xff] %v4935_v13  ;;  %vm559_vm0 = vcmp.lt.s32.totalorder %v4935_v13, 127  ;;  %vm502_vm2 = vcmp.ge.s32.totalorder %v4935_v13, 7  ;;  %vm567_vm3 = vcmp.lt.s32.totalorder %v4935_v13, 126 }
  0x1e   : > { %s4745_s20 = smov 4   ;;  %s4746_s24 = smov 123   ;;  %vm4941_vm1 = vmpackc.low %vm559_vm0, %vm559_vm0  ;;  %vm510_vm6 = vcmp.ge.s32.totalorder %v4935_v13, 6  ;;  %vm575_vm7 = vcmp.lt.s32.totalorder %v4935_v13, 125  ;;  %vm518_vm10 = vcmp.ge.s32.totalorder %v4935_v13, 5  ;;  %vm583_vm11 = vcmp.lt.s32.totalorder %v4935_v13, 124 }
  0x1f   : > { %s4892_s25 = scalar_lea.vmem %s6857_s0, %s3849_s16  ;;  %s4742_s16 = smov 125   ;;  %4047 = vmatpush3.bf16.msra.mxu1 %v4577_v7  ;;  %vm3638_vm4 = vmpackc.low %vm502_vm2, %vm502_vm2  ;;  %vm526_vm14 = vcmp.ge.s32.totalorder %v4935_v13, 4  ;;  %vm591_vm15 = vcmp.lt.s32.totalorder %v4935_v13, 123 }
  0x20   : > { %v4895_v0 = vld [vmem:[%s4892_s25] sm:$0xff]  ;;  %v4898_v1 = vld [vmem:[%s4892_s25 + $0x8] sm:$0xff]  ;;  %s4744_s0 = smov 124   ;;  %s4747_s29 = smov 3   ;;  %4048 = vmatprep.subr.bf16.mxu1 %v4753_v6  ;;  %vm4952_vm5 = vmpackc.low %vm567_vm3, %vm567_vm3 }
  0x21   : > { %v4475_v2 = vpack.i.bf16 %v4898_v1, %v4895_v0  ;;  %s4749_s18 = smov 2   ;;  %v554_v3 = vpack.c.bf16 %v4898_v1, %v4895_v0  ;;  %vm3641_vm8 = vmpackc.low %vm510_vm6, %vm510_vm6  ;;  %vm534_vm6 = vcmp.ge.s32.totalorder %v4935_v13, 3  ;;  %v4572_v0 = vld [vmem:[%s6763_s1 + $0x10] ss:$8 sps:$4 sm:$0xff]   ;;  %v4573_v1 = vld [vmem:[%s6763_s1 + $0x24] ss:$8 sps:$4 sm:$0xff]  }
  0x22   : > { %vm3665_vm9 = vmpackc.low %vm575_vm7, %vm575_vm7  ;;  %vm599_vm7 = vcmp.lt.s32.totalorder %v4935_v13, 122 }
  0x23   : > { %4476 = vrot.lane.b32.xlu0 %v4475_v2, %s6782_s26  ;;  %4486 = vrot.lane.b32.xlu1 %v4475_v2, %s4739_s27  ;;  %s4748_s26 = smov 122   ;;  %vm3644_vm12 = vmpackc.low %vm518_vm10, %vm518_vm10  ;;  %vm542_vm10 = vcmp.ge.s32.totalorder %v4935_v13, 2 }
  0x24   : > { %4049 = vmatpush3.bf16.msra.mxu1 %v4578_v8  ;;  %vm3668_vm13 = vmpackc.low %vm583_vm11, %vm583_vm11  ;;  %vm607_vm11 = vcmp.lt.s32.totalorder %v4935_v13, 121 }
  0x25   : > { %4050 = vmatprep.subr.bf16.mxu1 %v4753_v6  ;;  %vm3647_vm2 = vmpackc.low %vm526_vm14, %vm526_vm14  ;;  %vm550_vm14 = vcmp.ge.s32.totalorder %v4935_v13, 1 }
  0x27   : > { %4481 = vrot.lane.b32.xlu0 %v4475_v2, %s4740_s30  ;;  %4491 = vrot.lane.b32.xlu1 %v4475_v2, %s4741_s17  ;;  %s3850_s17 = sshll.u32 %s4860_s22, 13 }
  0x28   : > { %4051 = vmatpush3.bf16.msra.mxu1 %v4579_v9 }
  0x29   : > { %4052 = vmatprep.subr.bf16.mxu1 %v4753_v6 }
  0x2b   : > { %4496 = vrot.lane.b32.xlu0 %v4475_v2, %s4742_s16  ;;  %4501 = vrot.lane.b32.xlu1 %v4475_v2, %s4743_s23  ;;  %s4750_s16 = smov 121  }
  0x2c   : > { %4053 = vmatpush3.bf16.msra.mxu1 %v4580_v10 }
  0x2d   : > { %4054 = vmatprep.subr.bf16.mxu1 %v4753_v6 }
  0x2f   : > { %4506 = vrot.lane.b32.xlu0 %v4475_v2, %s4744_s0  ;;  %4511 = vrot.lane.b32.xlu1 %v4475_v2, %s4745_s20  ;;  %s6785_s0 = smov 1   ;;  %s4752_s20 = smov 120  }
  0x30   : > { %4055 = vmatpush3.bf16.msra.mxu1 %v4582_v11 }
  0x31   : > { %4056 = vmatprep.subr.bf16.mxu1 %v4753_v6 }
  0x33   : > { %4516 = vrot.lane.b32.xlu0 %v4475_v2, %s4746_s24  ;;  %4521 = vrot.lane.b32.xlu1 %v4475_v2, %s4747_s29  ;;  %s6705_s29 = scalar_lea.hbm %s6777_s15, %s3850_s17 }
  0x37   : > { %4526 = vrot.lane.b32.xlu0 %v4475_v2, %s4748_s26  ;;  %4531 = vrot.lane.b32.xlu1 %v4475_v2, %s4749_s18  ;;  %s6907_s26 = smov 1  }
  0x3b   : > { %4536 = vrot.lane.b32.xlu0 %v4475_v2, %s4750_s16  ;;  %4541 = vrot.lane.b32.xlu1 %v4475_v2, %s6785_s0 }
  0x3f   : > { %4546 = vrot.lane.b32.xlu0 %v4475_v2, %s4752_s20  ;;  %s6865_s20 = smov 127  }
  0x95   : > { %v4477_v14 = vpop.permute.xlu0 %4476  ;;  %v4487_v15 = vpop.permute.xlu1 %4486 }
  0x96   : > { %v4479_v16 = vunpack.i.h.bf16 %v4477_v14  ;;  %v4478_v17 = vunpack.i.l.bf16 %v4477_v14  ;;  %v4489_v18 = vunpack.i.h.bf16 %v4487_v15  ;;  %v4488_v19 = vunpack.i.l.bf16 %v4487_v15 }
  0x98   : > { %v3660_v21 = vpack.c.bf16 %v4479_v16, %v4478_v17  ;;  %v3663_v28 = vpack.c.bf16 %v4489_v18, %v4488_v19  ;;  %v4567_v18 = vld [vmem:[%s6763_s1] ss:$8 sps:$4 sm:$0xff]   ;;  %v4570_v19 = vld [vmem:[%s6763_s1 + $0x14] ss:$8 sps:$4 sm:$0xff]  }
  0x99   : > { %v4482_v22 = vpop.permute.xlu0 %4481  ;;  %v4492_v23 = vpop.permute.xlu1 %4491  ;;  %v4637_v16 = vld [vmem:[%s6773_s11 + $0xa8] sm:$0xff]  }
  0x9a   : > { %v4484_v24 = vunpack.i.h.bf16 %v4482_v22  ;;  %v4483_v25 = vunpack.i.l.bf16 %v4482_v22  ;;  %3851 = vmatprep.subr.msk.bf16.mxu0 %vm4941_vm1, %v3660_v21  ;;  %v4494_v26 = vunpack.i.h.bf16 %v4492_v23  ;;  %v4493_v27 = vunpack.i.l.bf16 %v4492_v23  ;;  %v4581_v21 = vld [vmem:[%s6766_s4] sm:$0xff]   ;;  %v4583_v22 = vld [vmem:[%s6766_s4 + $0x8] sm:$0xff]   ;;  %v4584_v23 = vld [vmem:[%s6764_s2 + $0x30] sm:$0xff]  }
  0x9b   : > { %4057 = vmatpush3.bf16.msra.mxu1 %v4584_v23 }
  0x9c   : > { %v3639_v29 = vpack.c.bf16 %v4484_v24, %v4483_v25  ;;  %v3642_v31 = vpack.c.bf16 %v4494_v26, %v4493_v27  ;;  %v4585_v24 = vld [vmem:[%s6766_s4 + $0x10] sm:$0xff]   ;;  %4058 = vmatprep.subr.bf16.mxu1 %v4753_v6  ;;  %v4586_v25 = vld [vmem:[%s6764_s2 + $0x38] sm:$0xff]   ;;  %v4589_v27 = vld [vmem:[%s6766_s4 + $0x20] sm:$0xff]  }
  0x9d   : > { %v4497_v32 = vpop.permute.xlu0 %4496  ;;  %v4502_v33 = vpop.permute.xlu1 %4501  ;;  %v4587_v26 = vld [vmem:[%s6766_s4 + $0x18] sm:$0xff]  }
  0x9e   : > { %3852 = vmatpush3.bf16.msk.msra.mxu0 %vm3638_vm4, %v3639_v29  ;;  %v4499_v34 = vunpack.i.h.bf16 %v4497_v32  ;;  %v4498_v35 = vunpack.i.l.bf16 %v4497_v32  ;;  %v4504_v36 = vunpack.i.h.bf16 %v4502_v33  ;;  %v4503_v37 = vunpack.i.l.bf16 %v4502_v33  ;;  %vm3671_vm4 = vmpackc.low %vm591_vm15, %vm591_vm15  ;;  %v4593_v29 = vld [vmem:[%s6766_s4 + $0x30] sm:$0xff]  }
  0x9f   : > { %3853 = vmatprep.subr.msk.bf16.mxu0 %vm4952_vm5, %v3663_v28  ;;  %vm615_vm15 = vcmp.lt.s32.totalorder %v4935_v13, 120  ;;  %4059 = vmatpush3.bf16.msra.mxu1 %v4586_v25  ;;  %v4591_v28 = vld [vmem:[%s6766_s4 + $0x28] sm:$0xff]  }
  0xa0   : > { %v3666_v38 = vpack.c.bf16 %v4499_v34, %v4498_v35  ;;  %v3645_v39 = vpack.c.bf16 %v4504_v36, %v4503_v37  ;;  %4084 = vmatprep.subr.bf16.mxu1 %v4753_v6 }
  0xa1   : > { %v4507_v40 = vpop.permute.xlu0 %4506  ;;  %v4512_v41 = vpop.permute.xlu1 %4511 }
  0xa2   : > { %3854 = vmatpush3.bf16.msk.msra.mxu0 %vm3641_vm8, %v3642_v31  ;;  %v4509_v42 = vunpack.i.h.bf16 %v4507_v40  ;;  %v4508_v43 = vunpack.i.l.bf16 %v4507_v40  ;;  %v4514_v44 = vunpack.i.h.bf16 %v4512_v41  ;;  %v4513_v45 = vunpack.i.l.bf16 %v4512_v41  ;;  %vm3650_vm8 = vmpackc.low %vm534_vm6, %vm534_vm6  ;;  %v4595_v31 = vld [vmem:[%s6766_s4 + $0x38] sm:$0xff]  }
  0xa3   : > { %3855 = vmatprep.subr.msk.bf16.mxu0 %vm3665_vm9, %v3666_v38  ;;  %vm3674_vm9 = vmpackc.low %vm599_vm7, %vm599_vm7  ;;  %vm4754_vm6 = vmmov 0   ;;  %v4588_v38 = vld [vmem:[%s6768_s6] sm:$0xff]   ;;  %vm1563_vm7 = vcmask 523264  }
  0xa4   : > { %v3669_v46 = vpack.c.bf16 %v4509_v42, %v4508_v43  ;;  %v3648_v47 = vpack.c.bf16 %v4514_v44, %v4513_v45  ;;  %4060 = vmatprep.mubr.msk.bf16.mxu1 %vm4754_vm6, %v4753_v6  ;;  %v4590_v42 = vld [vmem:[%s6768_s6 + $0x8] sm:$0xff]  }
  0xa5   : > { %v4517_v48 = vpop.permute.xlu0 %4516  ;;  %v4522_v49 = vpop.permute.xlu1 %4521 }
  0xa6   : > { %3856 = vmatpush3.bf16.msk.msra.mxu0 %vm3644_vm12, %v3645_v39  ;;  %v4519_v50 = vunpack.i.h.bf16 %v4517_v48  ;;  %v4518_v51 = vunpack.i.l.bf16 %v4517_v48  ;;  %v4524_v52 = vunpack.i.h.bf16 %v4522_v49  ;;  %v4523_v53 = vunpack.i.l.bf16 %v4522_v49  ;;  %vm3653_vm12 = vmpackc.low %vm542_vm10, %vm542_vm10 }
  0xa7   : > { %3857 = vmatprep.subr.msk.bf16.mxu0 %vm3668_vm13, %v3669_v46  ;;  %vm3677_vm13 = vmpackc.low %vm607_vm11, %vm607_vm11 }
  0xa8   : > { %v3672_v54 = vpack.c.bf16 %v4519_v50, %v4518_v51  ;;  %v3651_v55 = vpack.c.bf16 %v4524_v52, %v4523_v53  ;;  %v4594_v51 = vld [vmem:[%s6768_s6 + $0x18] sm:$0xff]  }
  0xa9   : > { %v4527_v56 = vpop.permute.xlu0 %4526  ;;  %v4532_v57 = vpop.permute.xlu1 %4531 }
  0xaa   : > { %3858 = vmatpush3.bf16.msk.msra.mxu0 %vm3647_vm2, %v3648_v47  ;;  %v4529_v58 = vunpack.i.h.bf16 %v4527_v56  ;;  %v4528_v59 = vunpack.i.l.bf16 %v4527_v56  ;;  %v4534_v60 = vunpack.i.h.bf16 %v4532_v57  ;;  %v4533_v61 = vunpack.i.l.bf16 %v4532_v57  ;;  %vm4973_vm2 = vmpackc.low %vm550_vm14, %vm550_vm14  ;;  %v4592_v47 = vld [vmem:[%s6768_s6 + $0x10] sm:$0xff]   ;;  %v4596_v56 = vld [vmem:[%s6768_s6 + $0x20] sm:$0xff]  }
  0xab   : > { %3859 = vmatprep.subr.msk.bf16.mxu0 %vm3671_vm4, %v3672_v54  ;;  %vm3680_vm4 = vmpackc.low %vm615_vm15, %vm615_vm15 }
  0xac   : > { %v3675_v62 = vpack.c.bf16 %v4529_v58, %v4528_v59  ;;  %v3654_v63 = vpack.c.bf16 %v4534_v60, %v4533_v61  ;;  %v4597_v58 = vld [vmem:[%s6768_s6 + $0x28] sm:$0xff]   ;;  %v4598_v59 = vld [vmem:[%s6768_s6 + $0x30] sm:$0xff]   ;;  %v4599_v60 = vld [vmem:[%s6768_s6 + $0x38] sm:$0xff]  }
  0xad   : > { %v4537_v2 = vpop.permute.xlu0 %4536  ;;  %v4542_v4 = vpop.permute.xlu1 %4541  ;;  %v5083_v61 = vld [vmem:[%s6772_s10] sm:$0xff]  }
  0xae   : > { %3860 = vmatpush3.bf16.msk.msra.mxu0 %vm3650_vm8, %v3651_v55  ;;  %v4539_v5 = vunpack.i.h.bf16 %v4537_v2  ;;  %v4538_v7 = vunpack.i.l.bf16 %v4537_v2  ;;  %v4544_v8 = vunpack.i.h.bf16 %v4542_v4  ;;  %v4543_v9 = vunpack.i.l.bf16 %v4542_v4  ;;  %v5104_v2 = vld [vmem:[%s6772_s10 + $0x18] sm:$0xff]   ;;  %v5111_v4 = vld [vmem:[%s6772_s10 + $0x20] sm:$0xff]  }
  0xaf   : > { %3861 = vmatprep.subr.msk.bf16.mxu0 %vm3674_vm9, %v3675_v62  ;;  %v5090_v62 = vld [vmem:[%s6772_s10 + $0x8] sm:$0xff]  }
  0xb0   : > { %v3678_v10 = vpack.c.bf16 %v4539_v5, %v4538_v7  ;;  %v3657_v12 = vpack.c.bf16 %v4544_v8, %v4543_v9  ;;  %v5118_v5 = vld [vmem:[%s6772_s10 + $0x28] sm:$0xff]   ;;  %v5125_v7 = vld [vmem:[%s6772_s10 + $0x30] sm:$0xff]   ;;  %v5132_v8 = vld [vmem:[%s6772_s10 + $0x38] sm:$0xff]  }
  0xb1   : > { %v4547_v11 = vpop.permute.xlu0 %4546  ;;  %v3683_v9 = vld [vmem:[%s6765_s3] ss:$0 sm:$0xff] }
  0xb2   : > { %3862 = vmatpush3.bf16.msk.msra.mxu0 %vm3653_vm12, %v3654_v63  ;;  %v4549_v14 = vunpack.i.h.bf16 %v4547_v11  ;;  %v4548_v15 = vunpack.i.l.bf16 %v4547_v11  ;;  %v5097_v63 = vld [vmem:[%s6772_s10 + $0x10] sm:$0xff]  }
  0xb3   : > { %3863 = vmatprep.subr.msk.bf16.mxu0 %vm3677_vm13, %v3678_v10 }
  0xb4   : > { %v3681_v17 = vpack.c.bf16 %v4549_v14, %v4548_v15 }
  0xb6   : > { %3864 = vmatpush3.bf16.msk.msra.mxu0 %vm4973_vm2, %v3657_v12 }
  0xb7   : > { %3865 = vmatprep.subr.msk.bf16.mxu0 %vm3680_vm4, %v3681_v17 }
  0xba   : > { %3866 = vmatpush3.bf16.msra.mxu0 %v554_v3  ;;  %v4575_v3 = vld [vmem:[%s6763_s1 + $0x20] ss:$8 sps:$4 sm:$0xff]  }
  0xbb   : > { %4064 = vmatprep.subr.bf16.mxu0 %v4753_v6 }
  0xbd   : > { %688 = vmatmul.mubr.bf16.vlgmr.msra.gmra.mrb[0].mxu0 %v4567_v18 }
  0xbe   : > { %695 = vmatprep.mubr.bf16.mxu0 %v4570_v19  ;;  %4065 = vmatpush3.bf16.msra.mxu0 %v4581_v21  ;;  %v3692_v19 = vld [vmem:[%s6767_s5] ss:$0 sm:$0xff] }
  0xbf   : > { %4066 = vmatprep.subr.bf16.mxu0 %v4753_v6 }
  0xc2   : > { %4067 = vmatpush3.bf16.msra.mxu0 %v4583_v22 }
  0xc3   : > { %4068 = vmatprep.subr.bf16.mxu0 %v4753_v6 }
  0xc5   : > { %696 = vmatmul.mubr.bf16.gmra.mrb[4].mxu0 %v4572_v0 }
  0xc6   : > { %703 = vmatprep.mubr.bf16.mxu0 %v4573_v1  ;;  %4069 = vmatpush3.bf16.msra.mxu0 %v4585_v24 }
  0xc7   : > { %4070 = vmatprep.subr.bf16.mxu0 %v4753_v6 }
  0xca   : > { %4071 = vmatpush3.bf16.msra.mxu0 %v4587_v26 }
  0xcb   : > { %4072 = vmatprep.subr.bf16.mxu0 %v4753_v6 }
  0xcd   : > { %704 = vmatmul.mubr.bf16.gmra.mrb[8].mxu0 %v4575_v3 }
  0xce   : > { %4080 = vmatprep.mubr.msk.bf16.mxu0 %vm4754_vm6, %v4753_v6  ;;  %4073 = vmatpush3.bf16.msra.mxu0 %v4589_v27  ;;  %v3701_v27 = vld [vmem:[%s6769_s7] ss:$0 sm:$0xff] }
  0xcf   : > { %4074 = vmatprep.subr.bf16.mxu0 %v4753_v6 }
  0xd2   : > { %4075 = vmatpush3.bf16.msra.mxu0 %v4591_v28 }
  0xd3   : > { %4076 = vmatprep.subr.bf16.mxu0 %v4753_v6 }
  0xd6   : > { %4077 = vmatpush3.bf16.msra.mxu0 %v4593_v29 }
  0xd7   : > { %4078 = vmatprep.subr.bf16.mxu0 %v4753_v6 }
  0xda   : > { %4079 = vmatpush3.bf16.msra.mxu0 %v4595_v31 }
  0xdb   : > { %4104 = vmatprep.subr.bf16.mxu0 %v4753_v6 }
 0x190   : > { %v3867_v32 = vpop.f32.mrb[0].mxu0 }
 0x191   : > { %v3868_v33 = vpop.f32.mrb[1].mxu0 }
 0x192   : > { %v3869_v34 = vadd.f32 %v3868_v33, %v3867_v32  ;;  %v3870_v35 = vpop.f32.mrb[2].mxu0 }
 0x193   : > { %v3871_v36 = vpop.f32.mrb[3].mxu0 }
 0x194   : > { %v3872_v37 = vadd.f32 %v3871_v36, %v3870_v35 }
 0x196   : > { %v712_v39 = vpack.c.bf16 %v3872_v37, %v3869_v34 }
 0x198   : > { %v3873_v40 = vpop.f32.mrb[4].mxu0  ;;  %4061 = vmatmul.mubr.bf16.vlgmr.msra.gmra.mrb[0].mxu1 %v712_v39 }
 0x199   : > { %4085 = vmatpush3.bf16.msra.mxu1 %v4588_v38  ;;  %v3874_v41 = vpop.f32.mrb[5].mxu0  ;;  %4100 = vmatprep.mubr.msk.bf16.mxu1 %vm4754_vm6, %v4753_v6 }
 0x19a   : > { %v3875_v43 = vadd.f32 %v3874_v41, %v3873_v40  ;;  %v3876_v44 = vpop.f32.mrb[6].mxu0  ;;  %4086 = vmatprep.subr.bf16.mxu1 %v4753_v6 }
 0x19b   : > { %v3877_v45 = vpop.f32.mrb[7].mxu0 }
 0x19c   : > { %v3878_v46 = vadd.f32 %v3877_v45, %v3876_v44 }
 0x19d   : > { %4087 = vmatpush3.bf16.msra.mxu1 %v4590_v42 }
 0x19e   : > { %v938_v48 = vpack.c.bf16 %v3878_v46, %v3875_v43  ;;  %4088 = vmatprep.subr.bf16.mxu1 %v4753_v6 }
 0x1a0   : > { %v3879_v49 = vpop.f32.mrb[8].mxu0 }
 0x1a1   : > { %4089 = vmatpush3.bf16.msra.mxu1 %v4592_v47  ;;  %v3880_v50 = vpop.f32.mrb[9].mxu0 }
 0x1a2   : > { %v3881_v52 = vadd.f32 %v3880_v50, %v3879_v49  ;;  %v3882_v53 = vpop.f32.mrb[10].mxu0  ;;  %4090 = vmatprep.subr.bf16.mxu1 %v4753_v6 }
 0x1a3   : > { %v3883_v54 = vpop.f32.mrb[11].mxu0 }
 0x1a4   : > { %v3884_v55 = vadd.f32 %v3883_v54, %v3882_v53 }
 0x1a5   : > { %4091 = vmatpush3.bf16.msra.mxu1 %v4594_v51 }
 0x1a6   : > { %v825_v57 = vpack.c.bf16 %v3884_v55, %v3881_v52  ;;  %4092 = vmatprep.subr.bf16.mxu1 %v4753_v6 }
 0x1a8   : > { %4081 = vmatmul.mubr.bf16.vlgmr.msra.gmra.mrb[12].mxu0 %v825_v57 }
 0x1a9   : > { %4093 = vmatpush3.bf16.msra.mxu1 %v4596_v56  ;;  %4120 = vmatprep.mubr.msk.bf16.mxu0 %vm4754_vm6, %v4753_v6 }
 0x1aa   : > { %4094 = vmatprep.subr.bf16.mxu1 %v4753_v6 }
 0x1ad   : > { %4095 = vmatpush3.bf16.msra.mxu1 %v4597_v58 }
 0x1ae   : > { %4096 = vmatprep.subr.bf16.mxu1 %v4753_v6 }
 0x1b1   : > { %4097 = vmatpush3.bf16.msra.mxu1 %v4598_v59 }
 0x1b2   : > { %4098 = vmatprep.subr.bf16.mxu1 %v4753_v6 }
 0x1b5   : > { %4099 = vmatpush3.bf16.msra.mxu1 %v4599_v60 }
 0x1b6   : > { %4124 = vmatprep.subr.bf16.mxu1 %v4753_v6 }
 0x1b8   : > { %4101 = vmatmul.mubr.bf16.vlgmr.msra.gmra.mrb[4].mxu1 %v938_v48 }
 0x1b9   : > { %4140 = vmatprep.mubr.msk.bf16.mxu1 %vm4754_vm6, %v4753_v6  ;;  %4125 = vmatpush3.bf16.msra.mxu1 %v5083_v61 }
 0x1ba   : > { %4126 = vmatprep.subr.bf16.mxu1 %v4753_v6 }
 0x1bd   : > { %4127 = vmatpush3.bf16.msra.mxu1 %v5090_v62 }
 0x1be   : > { %4128 = vmatprep.subr.bf16.mxu1 %v4753_v6 }
 0x1c1   : > { %4129 = vmatpush3.bf16.msra.mxu1 %v5097_v63 }
 0x1c2   : > { %4130 = vmatprep.subr.bf16.mxu1 %v4753_v6 }
 0x1c5   : > { %4131 = vmatpush3.bf16.msra.mxu1 %v5104_v2 }
 0x1c6   : > { %4132 = vmatprep.subr.bf16.mxu1 %v4753_v6 }
 0x1c9   : > { %4133 = vmatpush3.bf16.msra.mxu1 %v5111_v4 }
 0x1ca   : > { %4134 = vmatprep.subr.bf16.mxu1 %v4753_v6 }
 0x1cd   : > { %4135 = vmatpush3.bf16.msra.mxu1 %v5118_v5 }
 0x1ce   : > { %4136 = vmatprep.subr.bf16.mxu1 %v4753_v6 }
 0x1d1   : > { %4137 = vmatpush3.bf16.msra.mxu1 %v5125_v7 }
 0x1d2   : > { %4138 = vmatprep.subr.bf16.mxu1 %v4753_v6 }
 0x1d5   : > { %4139 = vmatpush3.bf16.msra.mxu1 %v5132_v8 }
 0x1d6   : > { %4144 = vmatprep.subr.bf16.mxu1 %v4753_v6 }
 0x26b   : > { %v818_v10 = vpop.f32.mrb[0].mxu1 }
 0x26c   : > { %v4062_v11 = vpop.f32.mrb[1].mxu1  ;;  %v819_v14 = vadd.f32 %v3683_v9, %v818_v10  ;;  %v4615_v10 = vld [vmem:[%s6770_s8 + $0x38] sm:$0xff]  }
 0x26d   : > { %v821_v12 = vpop.f32.mrb[2].mxu1 }
 0x26e   : > { %v822_v15 = vadd.f32 %v3683_v9, %v821_v12  ;;  %v4063_v17 = vpop.f32.mrb[3].mxu1  ;;  %v4614_v9 = vld [vmem:[%s6770_s8 + $0x30] sm:$0xff]  }
 0x270   : > { %v1133_v18 = vpack.c.bf16 %v822_v15, %v819_v14 }
 0x27b   : > { %v931_v21 = vpop.f32.mrb[12].mxu0 }
 0x27c   : > { %v4082_v22 = vpop.f32.mrb[13].mxu0  ;;  %v932_v1 = vadd.f32 %v3692_v19, %v931_v21 }
 0x27d   : > { %v934_v0 = vpop.f32.mrb[14].mxu0 }
 0x27e   : > { %v935_v3 = vadd.f32 %v3692_v19, %v934_v0  ;;  %v4083_v23 = vpop.f32.mrb[15].mxu0 }
 0x27f   : > { %v4755_v23 = vmov 0  }
 0x280   : > { %v1067_v24 = vpack.c.bf16 %v935_v3, %v932_v1  ;;  %4566 = vset.pattern.permute.xlu1 %v4755_v23  ;;  %4565 = vset.pattern.permute.xlu0 %v4755_v23  ;;  %v2322_v23 = vld [vmem:[%s6774_s12 + $0x150] sm:$0xff] }
 0x282   : > { %v1116_v25 = vmul.bf16 %v5083_v61, %v1067_v24  ;;  %v1117_v26 = vmul.bf16 %v5090_v62, %v1067_v24  ;;  %v1118_v36 = vmul.bf16 %v5097_v63, %v1067_v24  ;;  %v1119_v37 = vmul.bf16 %v5104_v2, %v1067_v24 }
 0x283   : > { %v1120_v38 = vmul.bf16 %v5111_v4, %v1067_v24  ;;  %v1121_v39 = vmul.bf16 %v5118_v5, %v1067_v24  ;;  %v1122_v40 = vmul.bf16 %v5125_v7, %v1067_v24  ;;  %v1123_v41 = vmul.bf16 %v5132_v8, %v1067_v24  ;;  %v3718_v24 = vld [vmem:[%s6771_s9] ss:$0 sm:$0xff] }
 0x284   : > { %4105 = vmatpush3.bf16.xpose.msra.mxu0 %v1116_v25  ;;  %v4672_v25 = vld [vmem:[%s4892_s25] sm:$0xff] }
 0x285   : > { %4106 = vmatprep.subr.bf16.mxu0 %v4753_v6 }
 0x28b   : > { %v1044_v28 = vpop.f32.mrb[4].mxu1 }
 0x28c   : > { %v4102_v29 = vpop.f32.mrb[5].mxu1  ;;  %4107 = vmatpush3.bf16.xpose.msra.mxu0 %v1117_v26  ;;  %v1045_v32 = vadd.f32 %v3701_v27, %v1044_v28  ;;  %v1385_v26 = vmul.f32 2.0, %v4672_v25  ;;  %v4673_v28 = vld [vmem:[%s4892_s25 + $0x8] sm:$0xff]  ;;  %v2324_v25 = vld [vmem:[%s6774_s12 + $0x160] sm:$0xff] }
 0x28d   : > { %v1047_v31 = vpop.f32.mrb[6].mxu1  ;;  %4108 = vmatprep.subr.bf16.mxu0 %v4753_v6  ;;  %v1386_v29 = vmul.f32 2.0, %v4673_v28  ;;  %v2763_v28 = vld [vmem:[%s6774_s12 + $0x188] sm:$0xff] }
 0x28e   : > { %v1048_v33 = vadd.f32 %v3701_v27, %v1047_v31  ;;  %v4103_v34 = vpop.f32.mrb[7].mxu1 }
 0x290   : > { %v1124_v35 = vpack.c.bf16 %v1048_v33, %v1045_v32 }
 0x292   : > { %v1125_v55 = vmul.bf16 %v5083_v61, %v1124_v35  ;;  %v1126_v56 = vmul.bf16 %v5090_v62, %v1124_v35  ;;  %v1127_v57 = vmul.bf16 %v5097_v63, %v1124_v35  ;;  %v1128_v58 = vmul.bf16 %v5104_v2, %v1124_v35  ;;  %v4608_v63 = vld [vmem:[%s6770_s8] sm:$0xff]   ;;  %v4609_v2 = vld [vmem:[%s6770_s8 + $0x8] sm:$0xff]  }
 0x293   : > { %v1129_v59 = vmul.bf16 %v5111_v4, %v1124_v35  ;;  %v1130_v60 = vmul.bf16 %v5118_v5, %v1124_v35  ;;  %v1131_v61 = vmul.bf16 %v5125_v7, %v1124_v35  ;;  %v1132_v62 = vmul.bf16 %v5132_v8, %v1124_v35  ;;  %v4610_v4 = vld [vmem:[%s6770_s8 + $0x10] sm:$0xff]   ;;  %v4611_v5 = vld [vmem:[%s6770_s8 + $0x18] sm:$0xff]   ;;  %v4612_v7 = vld [vmem:[%s6770_s8 + $0x20] sm:$0xff]  }
 0x294   : > { %4109 = vmatpush3.bf16.xpose.msra.mxu0 %v1118_v36  ;;  %v4613_v8 = vld [vmem:[%s6770_s8 + $0x28] sm:$0xff]  }
 0x295   : > { %4110 = vmatprep.subr.bf16.mxu0 %v4753_v6 }
 0x29c   : > { %4111 = vmatpush3.bf16.xpose.msra.mxu0 %v1119_v37 }
 0x29d   : > { %4112 = vmatprep.subr.bf16.mxu0 %v4753_v6 }
 0x2a4   : > { %4113 = vmatpush3.bf16.xpose.msra.mxu0 %v1120_v38 }
 0x2a5   : > { %4114 = vmatprep.subr.bf16.mxu0 %v4753_v6 }
 0x2ac   : > { %4115 = vmatpush3.bf16.xpose.msra.mxu0 %v1121_v39  ;;  %v1781_v39 = vld [vmem:[%s6774_s12 + $0x80] sm:$0xff] }
 0x2ad   : > { %4116 = vmatprep.subr.bf16.mxu0 %v4753_v6 }
 0x2b4   : > { %4117 = vmatpush3.bf16.xpose.msra.mxu0 %v1122_v40  ;;  %v1782_v40 = vld [vmem:[%s6774_s12 + $0x88] sm:$0xff] }
 0x2b5   : > { %4118 = vmatprep.subr.bf16.mxu0 %v4753_v6 }
 0x2bc   : > { %4119 = vmatpush3.bf16.xpose.msra.mxu0 %v1123_v41  ;;  %v1784_v41 = vld [vmem:[%s6774_s12 + $0x98] sm:$0xff] }
 0x2bd   : > { %4164 = vmatprep.subr.bf16.mxu0 %v4753_v6 }
 0x2c3   : > { %4121 = vmatmul.mubr.bf16.vlgmr.msra.gmra.mrb[16].mxu0 %v1133_v18 }
 0x2c4   : > { %4180 = vmatprep.mubr.msk.bf16.mxu0 %vm4754_vm6, %v4753_v6  ;;  %4165 = vmatpush3.bf16.msra.mxu0 %v4608_v63  ;;  %v1434_v63 = vld [vmem:[%s6774_s12 + $0x38] sm:$0xff] }
 0x2c5   : > { %4166 = vmatprep.subr.bf16.mxu0 %v4753_v6 }
 0x2c8   : > { %4167 = vmatpush3.bf16.msra.mxu0 %v4609_v2  ;;  %v1433_v2 = vld [vmem:[%s6774_s12 + $0x30] sm:$0xff] }
 0x2c9   : > { %4168 = vmatprep.subr.bf16.mxu0 %v4753_v6 }
 0x2cc   : > { %4169 = vmatpush3.bf16.msra.mxu0 %v4610_v4  ;;  %v1436_v4 = vld [vmem:[%s6774_s12 + $0x48] sm:$0xff] }
 0x2cd   : > { %4170 = vmatprep.subr.bf16.mxu0 %v4753_v6 }
 0x2d0   : > { %4171 = vmatpush3.bf16.msra.mxu0 %v4611_v5  ;;  %v1435_v5 = vld [vmem:[%s6774_s12 + $0x40] sm:$0xff] }
 0x2d1   : > { %4172 = vmatprep.subr.bf16.mxu0 %v4753_v6 }
 0x2d4   : > { %4173 = vmatpush3.bf16.msra.mxu0 %v4612_v7  ;;  %v1438_v7 = vld [vmem:[%s6774_s12 + $0x58] sm:$0xff] }
 0x2d5   : > { %4174 = vmatprep.subr.bf16.mxu0 %v4753_v6 }
 0x2d8   : > { %4175 = vmatpush3.bf16.msra.mxu0 %v4613_v8  ;;  %v1437_v8 = vld [vmem:[%s6774_s12 + $0x50] sm:$0xff] }
 0x2d9   : > { %4176 = vmatprep.subr.bf16.mxu0 %v4753_v6 }
 0x2dc   : > { %4177 = vmatpush3.bf16.msra.mxu0 %v4614_v9  ;;  %v1440_v9 = vld [vmem:[%s6774_s12 + $0x68] sm:$0xff] }
 0x2dd   : > { %4178 = vmatprep.subr.bf16.mxu0 %v4753_v6 }
 0x2e0   : > { %4179 = vmatpush3.bf16.msra.mxu0 %v4615_v10  ;;  %v1439_v10 = vld [vmem:[%s6774_s12 + $0x60] sm:$0xff] }
 0x396   : > { %v1168_v42 = vpop.f32.mrb[16].mxu0 }
 0x397   : > { %1175 = vmax.xlane.f32.xlu1 %v1168_v42  ;;  %v4122_v43 = vpop.f32.mrb[17].mxu0 }
 0x398   : > { %v1171_v44 = vpop.f32.mrb[18].mxu0  ;;  %v4617_v43 = vld [vmem:[%s6773_s11 + $0x40] sm:$0xff]  }
 0x399   : > { %1177 = vmax.xlane.f32.xlu0 %v1171_v44  ;;  %v4123_v45 = vpop.f32.mrb[19].mxu0 }
 0x39a   : > { %v1786_v45 = vld [vmem:[%s6774_s12 + $0xa8] sm:$0xff] }
 0x424   : > { %v1176_v46 = vpop.xlane.xlu1 %1175 }
 0x425   : > { %v1179_v47 = vsub.f32 %v1168_v42, %v1176_v46  ;;  %v4616_v42 = vld [vmem:[%s6773_s11] sm:$0xff]  }
 0x426   : > { %v1178_v48 = vpop.xlane.xlu0 %1177  ;;  %v1785_v46 = vld [vmem:[%s6774_s12 + $0xa0] sm:$0xff] }
 0x427   : > { %v1181_v49 = vmul.f32 1.442695, %v1179_v47  ;;  %v1180_v50 = vsub.f32 %v1171_v44, %v1178_v48  ;;  %v1783_v44 = vld [vmem:[%s6774_s12 + $0x90] sm:$0xff]  ;;  %v1788_v47 = vld [vmem:[%s6774_s12 + $0xb8] sm:$0xff] }
 0x428   : > { %v1787_v48 = vld [vmem:[%s6774_s12 + $0xb0] sm:$0xff] }
 0x429   : > { %v1183_v51 = vmul.f32 1.442695, %v1180_v50  ;;  %4664 = vpow2.f32 %v1181_v49  ;;  %v1790_v49 = vld [vmem:[%s6774_s12 + $0xc8] sm:$0xff]  ;;  %v1789_v50 = vld [vmem:[%s6774_s12 + $0xc0] sm:$0xff] }
 0x42b   : > { %4666 = vpow2.f32 %v1183_v51  ;;  %v1792_v51 = vld [vmem:[%s6774_s12 + $0xd8] sm:$0xff] }
 0x433   : > { %v4665_v52 = vpop.eup %4664 }
 0x435   : > { %v4667_v53 = vpop.eup %4666 }
 0x436   : > { %v1185_v54 = vpack.c.bf16 %v4667_v53, %v4665_v52  ;;  %v1791_v52 = vld [vmem:[%s6774_s12 + $0xd0] sm:$0xff]  ;;  %v1794_v53 = vld [vmem:[%s6774_s12 + $0xe8] sm:$0xff] }
 0x438   : > { %4141 = vmatmul.mubr.bf16.vlgmr.msra.gmra.mrb[8].mxu1 %v1185_v54 }
 0x439   : > { %4145 = vmatpush3.bf16.msra.mxu1 %v1125_v55  ;;  %4160 = vmatprep.mubr.msk.bf16.mxu1 %vm4754_vm6, %v4753_v6  ;;  %v1796_v55 = vld [vmem:[%s6774_s12 + $0xf8] sm:$0xff] }
 0x43a   : > { %4146 = vmatprep.subr.bf16.mxu1 %v4753_v6 }
 0x43d   : > { %4147 = vmatpush3.bf16.msra.mxu1 %v1126_v56  ;;  %v1795_v56 = vld [vmem:[%s6774_s12 + $0xf0] sm:$0xff] }
 0x43e   : > { %4148 = vmatprep.subr.bf16.mxu1 %v4753_v6 }
 0x441   : > { %4149 = vmatpush3.bf16.msra.mxu1 %v1127_v57  ;;  %v1428_v57 = vld [vmem:[%s6774_s12 + $0x8] sm:$0xff] }
 0x442   : > { %4150 = vmatprep.subr.bf16.mxu1 %v4753_v6 }
 0x445   : > { %4151 = vmatpush3.bf16.msra.mxu1 %v1128_v58  ;;  %v1427_v58 = vld [vmem:[%s6774_s12] sm:$0xff] }
 0x446   : > { %4152 = vmatprep.subr.bf16.mxu1 %v4753_v6 }
 0x449   : > { %4153 = vmatpush3.bf16.msra.mxu1 %v1129_v59  ;;  %v1430_v59 = vld [vmem:[%s6774_s12 + $0x18] sm:$0xff] }
 0x44a   : > { %4154 = vmatprep.subr.bf16.mxu1 %v4753_v6 }
 0x44d   : > { %4155 = vmatpush3.bf16.msra.mxu1 %v1130_v60  ;;  %v1429_v60 = vld [vmem:[%s6774_s12 + $0x10] sm:$0xff] }
 0x44e   : > { %4156 = vmatprep.subr.bf16.mxu1 %v4753_v6 }
 0x451   : > { %4157 = vmatpush3.bf16.msra.mxu1 %v1131_v61  ;;  %v1432_v61 = vld [vmem:[%s6774_s12 + $0x28] sm:$0xff] }
 0x452   : > { %4158 = vmatprep.subr.bf16.mxu1 %v4753_v6 }
 0x455   : > { %4159 = vmatpush3.bf16.msra.mxu1 %v1132_v62  ;;  %v1431_v62 = vld [vmem:[%s6774_s12 + $0x20] sm:$0xff] }
 0x458   : > { %4161 = vmatmul.mubr.bf16.vlgmr.msra.gmra.mrb[12].mxu1 %v1185_v54  ;;  %v1793_v54 = vld [vmem:[%s6774_s12 + $0xe0] sm:$0xff] }
 0x459   : > { %4192 = vmatprep.mubr.msk.bf16.mxu1 %vm1563_vm7, %v4616_v42 }
 0x50b   : > { %v1220_v11 = vpop.f32.mrb[8].mxu1 }
 0x50c   : > { %v4142_v12 = vpop.f32.mrb[9].mxu1  ;;  %4668 = vrcp.f32 %v1220_v11  ;;  %v1442_v11 = vld [vmem:[%s6774_s12 + $0x78] sm:$0xff] }
 0x50d   : > { %v1223_v14 = vpop.f32.mrb[10].mxu1  ;;  %v1441_v12 = vld [vmem:[%s6774_s12 + $0x70] sm:$0xff] }
 0x50e   : > { %v4143_v15 = vpop.f32.mrb[11].mxu1  ;;  %4670 = vrcp.f32 %v1223_v14  ;;  %v2313_v14 = vld [vmem:[%s6774_s12 + $0x108] sm:$0xff] }
 0x50f   : > { %v2312_v15 = vld [vmem:[%s6774_s12 + $0x100] sm:$0xff] }
 0x516   : > { %v4669_v17 = vpop.eup %4668 }
 0x518   : > { %v4671_v22 = vpop.eup %4670 }
 0x52b   : > { %v1261_v18 = vpop.f32.mrb[12].mxu1 }
 0x52c   : > { %v1270_v19 = vmul.f32 %v4669_v17, %v1261_v18  ;;  %v4162_v21 = vpop.f32.mrb[13].mxu1  ;;  %v2315_v17 = vld [vmem:[%s6774_s12 + $0x118] sm:$0xff]  ;;  %v2314_v18 = vld [vmem:[%s6774_s12 + $0x110] sm:$0xff] }
 0x52d   : > { %v1264_v0 = vpop.f32.mrb[14].mxu1  ;;  %v2316_v21 = vld [vmem:[%s6774_s12 + $0x120] sm:$0xff] }
 0x52e   : > { %v1271_v6 = vmul.f32 %v4671_v22, %v1264_v0  ;;  %v4163_v1 = vpop.f32.mrb[15].mxu1  ;;  %v2319_v22 = vld [vmem:[%s6774_s12 + $0x138] sm:$0xff]  ;;  %v2318_v0 = vld [vmem:[%s6774_s12 + $0x130] sm:$0xff] }
 0x52f   : > { %v2320_v1 = vld [vmem:[%s6774_s12 + $0x140] sm:$0xff] }
 0x530   : > { %v1272_v3 = vpack.c.bf16 %v1271_v6, %v1270_v19  ;;  %v2317_v19 = vld [vmem:[%s6774_s12 + $0x128] sm:$0xff] }
 0x531   : > { %v2321_v6 = vld [vmem:[%s6774_s12 + $0x148] sm:$0xff] }
 0x532   : > { %4181 = vmatmul.mubr.bf16.vlgmr.msra.gmra.mrb[20].mxu0 %v1272_v3  ;;  %v2323_v3 = vld [vmem:[%s6774_s12 + $0x158] sm:$0xff] }
 0x533   : > { %4216 = vmatprep.mubr.msk.bf16.mxu0 %vm1563_vm7, %v4617_v43 }
 0x605   : > { %v1378_v27 = vpop.f32.mrb[20].mxu0 }
 0x606   : > { %v1379_v31 = vadd.f32 %v3718_v24, %v1378_v27  ;;  %v4182_v32 = vpop.f32.mrb[21].mxu0  ;;  %v2326_v27 = vld [vmem:[%s6774_s12 + $0x170] sm:$0xff] }
 0x607   : > { %v1381_v33 = vpop.f32.mrb[22].mxu0  ;;  %v2764_v32 = vld [vmem:[%s6774_s12 + $0x190] sm:$0xff] }
 0x608   : > { %v5216_v34 = vadd.f32 %v1385_v26, %v1379_v31  ;;  %v1382_v35 = vadd.f32 %v3718_v24, %v1381_v33  ;;  %v4183_v36 = vpop.f32.mrb[23].mxu0  ;;  %v2325_v24 = vld [vmem:[%s6774_s12 + $0x168] sm:$0xff]  ;;  %v2327_v26 = vld [vmem:[%s6774_s12 + $0x178] sm:$0xff] }
 0x609   : > { %v2765_v31 = vld [vmem:[%s6774_s12 + $0x198] sm:$0xff]  ;;  %v2767_v33 = vld [vmem:[%s6774_s12 + $0x1a8] sm:$0xff] }
 0x60a   : > { %v5218_v37 = vadd.f32 %v1386_v29, %v1382_v35  ;;  %v2762_v29 = vld [vmem:[%s6774_s12 + $0x180] sm:$0xff]  ;;  %v2769_v36 = vld [vmem:[%s6774_s12 + $0x1b8] sm:$0xff] }
 0x60b   : > { %v2766_v35 = vld [vmem:[%s6774_s12 + $0x1a0] sm:$0xff] }
 0x60c   : > { %v4555_v38 = vpack.i.bf16 %v5218_v37, %v5216_v34 }
 0x60e   : > { %4556 = vrot.lane.b32.xlu1 %v4555_v38, %s6865_s20  ;;  %4551 = vrot.lane.b32.xlu0 %v4555_v38, %s6785_s0 }
 0x612   : > { %4561 = vrot.lane.b32.xlu1 %v4555_v38, %s4739_s27  ;;  %1799 = vperm.xlu0 %4565, %v1781_v39   ;;  %v2768_v38 = vld [vmem:[%s6774_s12 + $0x1b0] sm:$0xff]  ;;  %v2771_v39 = vld [vmem:[%s6774_s12 + $0x1c8] sm:$0xff] }
 0x616   : > { %1804 = vperm.xlu1 %4566, %v1782_v40   ;;  %1814 = vperm.xlu0 %4565, %v1784_v41  }
 0x61a   : > { %1809 = vperm.xlu1 %4566, %v1783_v44   ;;  %1824 = vperm.xlu0 %4565, %v1786_v45  }
 0x61e   : > { %1819 = vperm.xlu1 %4566, %v1785_v46   ;;  %1834 = vperm.xlu0 %4565, %v1788_v47   ;;  %v5414_v47 = vpack.c.bf16 %v5218_v37, %v5216_v34 }
 0x622   : > { %1829 = vperm.xlu1 %4566, %v1787_v48   ;;  %1844 = vperm.xlu0 %4565, %v1790_v49   ;;  %v2770_v48 = vld [vmem:[%s6774_s12 + $0x1c0] sm:$0xff]  ;;  %v2773_v49 = vld [vmem:[%s6774_s12 + $0x1d8] sm:$0xff] }
 0x626   : > { %1839 = vperm.xlu1 %4566, %v1789_v50   ;;  %1854 = vperm.xlu0 %4565, %v1792_v51  }
 0x62a   : > { %1849 = vperm.xlu1 %4566, %v1791_v52   ;;  %1864 = vperm.xlu0 %4565, %v1794_v53  }
 0x62e   : > { %1859 = vperm.xlu1 %4566, %v1793_v54   ;;  %1874 = vperm.xlu0 %4565, %v1796_v55   ;;  %v2772_v54 = vld [vmem:[%s6774_s12 + $0x1d0] sm:$0xff]  ;;  %v2775_v55 = vld [vmem:[%s6774_s12 + $0x1e8] sm:$0xff] }
 0x632   : > { %1869 = vperm.xlu1 %4566, %v1795_v56   ;;  %1450 = vperm.xlu0 %4565, %v1428_v57   ;;  %v2774_v57 = vld [vmem:[%s6774_s12 + $0x1e0] sm:$0xff] }
 0x636   : > { %1445 = vperm.xlu1 %4566, %v1427_v58   ;;  %1460 = vperm.xlu0 %4565, %v1430_v59   ;;  %v2777_v58 = vld [vmem:[%s6774_s12 + $0x1f8] sm:$0xff]  ;;  %v4618_v59 = vld [vmem:[%s6773_s11 + $0x8] sm:$0xff]  }
 0x63a   : > { %1455 = vperm.xlu1 %4566, %v1429_v60   ;;  %1470 = vperm.xlu0 %4565, %v1432_v61   ;;  %v4619_v60 = vld [vmem:[%s6773_s11 + $0x48] sm:$0xff]   ;;  %v2776_v61 = vld [vmem:[%s6774_s12 + $0x1f0] sm:$0xff] }
 0x63e   : > { %1465 = vperm.xlu1 %4566, %v1431_v62   ;;  %1480 = vperm.xlu0 %4565, %v1434_v63   ;;  %v4620_v62 = vld [vmem:[%s6773_s11 + $0x10] sm:$0xff]  }
 0x63f   : > { %v4621_v63 = vld [vmem:[%s6773_s11 + $0x50] sm:$0xff]  }
 0x642   : > { %1475 = vperm.xlu1 %4566, %v1433_v2   ;;  %1490 = vperm.xlu0 %4565, %v1436_v4   ;;  %v4622_v2 = vld [vmem:[%s6773_s11 + $0x18] sm:$0xff]  }
 0x643   : > { %v4623_v4 = vld [vmem:[%s6773_s11 + $0x58] sm:$0xff]  }
 0x646   : > { %1485 = vperm.xlu1 %4566, %v1435_v5   ;;  %1500 = vperm.xlu0 %4565, %v1438_v7   ;;  %v4624_v5 = vld [vmem:[%s6773_s11 + $0x20] sm:$0xff]  }
 0x647   : > { %v4625_v7 = vld [vmem:[%s6773_s11 + $0x60] sm:$0xff]  }
 0x64a   : > { %1495 = vperm.xlu1 %4566, %v1437_v8   ;;  %1510 = vperm.xlu0 %4565, %v1440_v9   ;;  %v4626_v8 = vld [vmem:[%s6773_s11 + $0x28] sm:$0xff]  }
 0x64b   : > { %v4627_v9 = vld [vmem:[%s6773_s11 + $0x68] sm:$0xff]  }
 0x64e   : > { %1505 = vperm.xlu1 %4566, %v1439_v10   ;;  %1520 = vperm.xlu0 %4565, %v1442_v11   ;;  %v4628_v10 = vld [vmem:[%s6773_s11 + $0x30] sm:$0xff]  }
 0x64f   : > { %v4629_v11 = vld [vmem:[%s6773_s11 + $0x70] sm:$0xff]  }
 0x652   : > { %1515 = vperm.xlu1 %4566, %v1441_v12   ;;  %2335 = vperm.xlu0 %4565, %v2313_v14   ;;  %v4630_v12 = vld [vmem:[%s6773_s11 + $0x38] sm:$0xff]  }
 0x653   : > { %v4631_v14 = vld [vmem:[%s6773_s11 + $0x78] sm:$0xff]  }
 0x656   : > { %2330 = vperm.xlu1 %4566, %v2312_v15   ;;  %2345 = vperm.xlu0 %4565, %v2315_v17   ;;  %v4632_v15 = vld [vmem:[%s6773_s11 + $0x80] sm:$0xff]   ;;  %v4633_v17 = vld [vmem:[%s6773_s11 + $0x88] sm:$0xff]  }
 0x65a   : > { %2340 = vperm.xlu1 %4566, %v2314_v18   ;;  %2355 = vperm.xlu0 %4565, %v2317_v19   ;;  %v4634_v18 = vld [vmem:[%s6773_s11 + $0x90] sm:$0xff]   ;;  %v4635_v19 = vld [vmem:[%s6773_s11 + $0x98] sm:$0xff]  }
 0x65e   : > { %2350 = vperm.xlu1 %4566, %v2316_v21   ;;  %2365 = vperm.xlu0 %4565, %v2319_v22   ;;  %v4636_v21 = vld [vmem:[%s6773_s11 + $0xa0] sm:$0xff]   ;;  %v4638_v22 = vld [vmem:[%s6773_s11 + $0xb0] sm:$0xff]  }
 0x662   : > { %2360 = vperm.xlu1 %4566, %v2318_v0   ;;  %2375 = vperm.xlu0 %4565, %v2321_v6   ;;  %v4640_v0 = vld [vmem:[%s6773_s11 + $0xc0] sm:$0xff]   ;;  %v4642_v6 = vld [vmem:[%s6773_s11 + $0xd0] sm:$0xff]  }
 0x666   : > { %2370 = vperm.xlu1 %4566, %v2320_v1   ;;  %2385 = vperm.xlu0 %4565, %v2323_v3   ;;  %v4643_v1 = vld [vmem:[%s6773_s11 + $0xd8] sm:$0xff]   ;;  %v4644_v3 = vld [vmem:[%s6773_s11 + $0xe0] sm:$0xff]  }
 0x66a   : > { %2380 = vperm.xlu1 %4566, %v2322_v23   ;;  %2395 = vperm.xlu0 %4565, %v2325_v24   ;;  %v4645_v23 = vld [vmem:[%s6773_s11 + $0xe8] sm:$0xff]   ;;  %v4646_v24 = vld [vmem:[%s6773_s11 + $0xf0] sm:$0xff]  }
 0x66e   : > { %2390 = vperm.xlu1 %4566, %v2324_v25   ;;  %2405 = vperm.xlu0 %4565, %v2327_v26   ;;  %v4647_v25 = vld [vmem:[%s6773_s11 + $0xf8] sm:$0xff]  }
 0x672   : > { %2400 = vperm.xlu1 %4566, %v2326_v27   ;;  %2785 = vperm.xlu0 %4565, %v2763_v28  }
 0x676   : > { %2780 = vperm.xlu1 %4566, %v2762_v29   ;;  %2795 = vperm.xlu0 %4565, %v2765_v31  }
 0x67a   : > { %2790 = vperm.xlu1 %4566, %v2764_v32   ;;  %2805 = vperm.xlu0 %4565, %v2767_v33  }
 0x67e   : > { %2800 = vperm.xlu1 %4566, %v2766_v35   ;;  %2815 = vperm.xlu0 %4565, %v2769_v36  }
 0x680   : > { %v4557_v40 = vpop.permute.xlu1 %4556  ;;  %v4552_v41 = vpop.permute.xlu0 %4551 }
 0x681   : > { %v4554_v42 = vunpack.i.h.bf16 %v4552_v41  ;;  %v4553_v43 = vunpack.i.l.bf16 %v4552_v41  ;;  %v4559_v45 = vunpack.i.h.bf16 %v4557_v40  ;;  %v4558_v46 = vunpack.i.l.bf16 %v4557_v40 }
 0x682   : > { %2810 = vperm.xlu1 %4566, %v2768_v38   ;;  %2825 = vperm.xlu0 %4565, %v2771_v39   ;;  %v4648_v39 = vld [vmem:[%s6775_s13 + $0x4] ss:$16 sps:$4 sm:$0xff]  }
 0x683   : > { %v5404_v44 = vpack.c.bf16 %v4554_v42, %v4553_v43  ;;  %v5430_v51 = vpack.c.bf16 %v4559_v45, %v4558_v46 }
 0x684   : > { %v4562_v50 = vpop.permute.xlu1 %4561 }
 0x685   : > { %4184 = vmatprep.subr.msk.bf16.mxu1 %vm4973_vm2, %v5404_v44  ;;  %4208 = vmatprep.subr.msk.bf16.mxu0 %vm4973_vm2, %v5404_v44  ;;  %v4564_v52 = vunpack.i.h.bf16 %v4562_v50  ;;  %v4563_v53 = vunpack.i.l.bf16 %v4562_v50 }
 0x686   : > { %4185 = vmatpush3.bf16.msk.msra.mxu1 %vm4973_vm2, %v5404_v44  ;;  %4209 = vmatpush3.bf16.msk.msra.mxu0 %vm4973_vm2, %v5404_v44 }
 0x687   : > { %4186 = vmatprep.subr.bf16.mxu1 %v5414_v47  ;;  %4210 = vmatprep.subr.bf16.mxu0 %v5414_v47  ;;  %v5446_v56 = vpack.c.bf16 %v4564_v52, %v4563_v53 }
 0x688   : > { %2820 = vperm.xlu1 %4566, %v2770_v48   ;;  %2835 = vperm.xlu0 %4565, %v2773_v49  }
 0x68a   : > { %4187 = vmatpush3.bf16.msra.mxu1 %v5414_v47  ;;  %4211 = vmatpush3.bf16.msra.mxu0 %v5414_v47 }
 0x68b   : > { %4188 = vmatprep.subr.msk.bf16.mxu1 %vm4941_vm1, %v5430_v51  ;;  %4212 = vmatprep.subr.msk.bf16.mxu0 %vm4941_vm1, %v5430_v51 }
 0x68c   : > { %2830 = vperm.xlu1 %4566, %v2772_v54   ;;  %2845 = vperm.xlu0 %4565, %v2775_v55  }
 0x68e   : > { %4189 = vmatpush3.bf16.msk.msra.mxu1 %vm4941_vm1, %v5430_v51  ;;  %4213 = vmatpush3.bf16.msk.msra.mxu0 %vm4941_vm1, %v5430_v51 }
 0x68f   : > { %4190 = vmatprep.subr.msk.bf16.mxu1 %vm4952_vm5, %v5446_v56  ;;  %4214 = vmatprep.subr.msk.bf16.mxu0 %vm4952_vm5, %v5446_v56 }
 0x690   : > { %2840 = vperm.xlu1 %4566, %v2774_v57   ;;  %2855 = vperm.xlu0 %4565, %v2777_v58  }
 0x691   : > { %v1800_v27 = vpop.permute.xlu0 %1799 }
 0x692   : > { %4191 = vmatpush3.bf16.msk.msra.mxu1 %vm4952_vm5, %v5446_v56  ;;  %4215 = vmatpush3.bf16.msk.msra.mxu0 %vm4952_vm5, %v5446_v56 }
 0x693   : > { %4280 = vmatprep.subr.msk.bf16.mxu0 %vm4973_vm2, %v5404_v44 }
 0x694   : > { %2850 = vperm.xlu1 %4566, %v2776_v61  }
 0x695   : > { %4193 = vmatmul.mubr.msk.bf16.vlgmr.msra.gmra.mrb[16].mxu1 %vm1563_vm7, %v4618_v59  ;;  %4217 = vmatmul.mubr.msk.bf16.vlgmr.msra.gmra.mrb[24].mxu0 %vm1563_vm7, %v4619_v60  ;;  %v1805_v26 = vpop.permute.xlu1 %1804  ;;  %v1815_v29 = vpop.permute.xlu0 %1814  ;;  %v4657_v60 = vld [vmem:[%s6775_s13 + $0xc] ss:$16 sps:$4 sm:$0xff]  }
 0x696   : > { %4281 = vmatpush3.bf16.msk.msra.mxu0 %vm4973_vm2, %v5404_v44  ;;  %4196 = vmatprep.mubr.msk.bf16.mxu1 %vm1563_vm7, %v4620_v62 }
 0x697   : > { %4282 = vmatprep.subr.bf16.mxu0 %v5414_v47  ;;  %4220 = vmatprep.mubr.msk.bf16.mxu0 %vm1563_vm7, %v4621_v63 }
 0x699   : > { %v1810_v28 = vpop.permute.xlu1 %1809  ;;  %v5637_v32 = vpop.permute.xlu0 %1824 }
 0x69a   : > { %4283 = vmatpush3.bf16.msra.mxu0 %v5414_v47 }
 0x69b   : > { %4284 = vmatprep.subr.msk.bf16.mxu0 %vm4941_vm1, %v5430_v51 }
 0x69d   : > { %4197 = vmatmul.mubr.msk.bf16.gmra.mrb[20].mxu1 %vm1563_vm7, %v4622_v2  ;;  %4221 = vmatmul.mubr.msk.bf16.gmra.mrb[28].mxu0 %vm1563_vm7, %v4623_v4  ;;  %v5635_v31 = vpop.permute.xlu1 %1819  ;;  %v1835_v35 = vpop.permute.xlu0 %1834 }
 0x69e   : > { %4285 = vmatpush3.bf16.msk.msra.mxu0 %vm4941_vm1, %v5430_v51  ;;  %4200 = vmatprep.mubr.msk.bf16.mxu1 %vm1563_vm7, %v4624_v5 }
 0x69f   : > { %4286 = vmatprep.subr.msk.bf16.mxu0 %vm4952_vm5, %v5446_v56  ;;  %4224 = vmatprep.mubr.msk.bf16.mxu0 %vm1563_vm7, %v4625_v7 }
 0x6a1   : > { %v5639_v33 = vpop.permute.xlu1 %1829  ;;  %v5643_v38 = vpop.permute.xlu0 %1844 }
 0x6a2   : > { %4287 = vmatpush3.bf16.msk.msra.mxu0 %vm4952_vm5, %v5446_v56 }
 0x6a3   : > { %4328 = vmatprep.subr.msk.bf16.mxu0 %vm4973_vm2, %v5404_v44 }
 0x6a5   : > { %4201 = vmatmul.mubr.msk.bf16.gmra.mrb[24].mxu1 %vm1563_vm7, %v4626_v8  ;;  %4225 = vmatmul.mubr.msk.bf16.gmra.mrb[32].mxu0 %vm1563_vm7, %v4627_v9  ;;  %v5641_v36 = vpop.permute.xlu1 %1839  ;;  %v5650_v41 = vpop.permute.xlu0 %1854 }
 0x6a6   : > { %4204 = vmatprep.mubr.msk.bf16.mxu1 %vm1563_vm7, %v4628_v10  ;;  %4228 = vmatprep.mubr.msk.bf16.mxu0 %vm1563_vm7, %v4629_v11 }
 0x6a9   : > { %v5648_v40 = vpop.permute.xlu1 %1849  ;;  %v5654_v43 = vpop.permute.xlu0 %1864 }
 0x6ad   : > { %4205 = vmatmul.mubr.msk.bf16.gmra.mrb[28].mxu1 %vm1563_vm7, %v4630_v12  ;;  %4229 = vmatmul.mubr.msk.bf16.gmra.mrb[36].mxu0 %vm1563_vm7, %v4631_v14  ;;  %v5652_v42 = vpop.permute.xlu1 %1859  ;;  %v5658_v45 = vpop.permute.xlu0 %1874 }
 0x6ae   : > { %4288 = vmatprep.mubr.msk.bf16.mxu0 %vm1563_vm7, %v4632_v15  ;;  %4248 = vmatprep.mubr.bf16.mxu1 %v4648_v39 }
 0x6b5   : > { %4289 = vmatmul.mubr.msk.bf16.vlgmr.msra.gmra.mrb[40].mxu0 %vm1563_vm7, %v4633_v17 }
 0x6b6   : > { %4329 = vmatpush3.bf16.msk.msra.mxu0 %vm4973_vm2, %v5404_v44  ;;  %4292 = vmatprep.mubr.msk.bf16.mxu0 %vm1563_vm7, %v4634_v18  ;;  %v5656_v44 = vpop.permute.xlu1 %1869 }
 0x6b7   : > { %4330 = vmatprep.subr.bf16.mxu0 %v5414_v47 }
 0x6ba   : > { %4331 = vmatpush3.bf16.msra.mxu0 %v5414_v47  ;;  %v5660_v46 = vpop.permute.xlu1 %1445  ;;  %v5662_v47 = vpop.permute.xlu0 %1450 }
 0x6bb   : > { %4332 = vmatprep.subr.msk.bf16.mxu0 %vm4941_vm1, %v5430_v51 }
 0x6bd   : > { %4293 = vmatmul.mubr.msk.bf16.gmra.mrb[44].mxu0 %vm1563_vm7, %v4635_v19 }
 0x6be   : > { %4333 = vmatpush3.bf16.msk.msra.mxu0 %vm4941_vm1, %v5430_v51  ;;  %4296 = vmatprep.mubr.msk.bf16.mxu0 %vm1563_vm7, %v4636_v21  ;;  %v5664_v48 = vpop.permute.xlu1 %1455  ;;  %v5666_v49 = vpop.permute.xlu0 %1460 }
 0x6bf   : > { %4334 = vmatprep.subr.msk.bf16.mxu0 %vm4952_vm5, %v5446_v56 }
 0x6c2   : > { %4335 = vmatpush3.bf16.msk.msra.mxu0 %vm4952_vm5, %v5446_v56  ;;  %v5668_v50 = vpop.permute.xlu1 %1465  ;;  %v5670_v51 = vpop.permute.xlu0 %1470 }
 0x6c5   : > { %4297 = vmatmul.mubr.msk.bf16.gmra.mrb[48].mxu0 %vm1563_vm7, %v4637_v16 }
 0x6c6   : > { %4300 = vmatprep.mubr.msk.bf16.mxu0 %vm1563_vm7, %v4638_v22  ;;  %v5672_v52 = vpop.permute.xlu1 %1475  ;;  %v5674_v53 = vpop.permute.xlu0 %1480 }
 0x6ca   : > { %v5676_v54 = vpop.permute.xlu1 %1485  ;;  %v5678_v55 = vpop.permute.xlu0 %1490 }
 0x6cd   : > { %4301 = vmatmul.mubr.msk.bf16.gmra.mrb[52].mxu0 %vm1563_vm7, %v4639_v20 }
 0x6ce   : > { %4336 = vmatprep.mubr.msk.bf16.mxu0 %vm1563_vm7, %v4640_v0  ;;  %v5680_v56 = vpop.permute.xlu1 %1495  ;;  %v5682_v57 = vpop.permute.xlu0 %1500 }
 0x6d2   : > { %v5684_v58 = vpop.permute.xlu1 %1505  ;;  %v5686_v59 = vpop.permute.xlu0 %1510 }
 0x6d5   : > { %4337 = vmatmul.mubr.msk.bf16.vlgmr.msra.gmra.mrb[56].mxu0 %vm1563_vm7, %v4641_v30 }
 0x6d6   : > { %4340 = vmatprep.mubr.msk.bf16.mxu0 %vm1563_vm7, %v4642_v6  ;;  %v5691_v61 = vpop.permute.xlu1 %1515  ;;  %v5693_v62 = vpop.permute.xlu0 %1520 }
 0x6da   : > { %v5695_v63 = vpop.permute.xlu1 %2330  ;;  %v5697_v2 = vpop.permute.xlu0 %2335 }
 0x6db   : > { %6866 = vst [vmem:[#allocation11_spill] sm:$0xff] %v5697_v2 }
 0x6dd   : > { %4341 = vmatmul.mubr.msk.bf16.gmra.mrb[60].mxu0 %vm1563_vm7, %v4643_v1 }
 0x6de   : > { %4344 = vmatprep.mubr.msk.bf16.mxu0 %vm1563_vm7, %v4644_v3  ;;  %v5699_v4 = vpop.permute.xlu1 %2340  ;;  %v5701_v5 = vpop.permute.xlu0 %2345 }
 0x6e2   : > { %v5712_v22 = vpop.permute.xlu1 %2350  ;;  %v5714_v20 = vpop.permute.xlu0 %2355 }
 0x6e3   : > { %6867 = vst [vmem:[#allocation12_spill] sm:$0xff] %v5712_v22  ;;  %6868 = vst [vmem:[#allocation13_spill] sm:$0xff] %v5714_v20 }
 0x6e5   : > { %4345 = vmatmul.mubr.msk.bf16.gmra.mrb[64].mxu0 %vm1563_vm7, %v4645_v23 }
 0x6e6   : > { %4348 = vmatprep.mubr.msk.bf16.mxu0 %vm1563_vm7, %v4646_v24  ;;  %v5735_v13 = vpop.permute.xlu0 %2365 }
 0x6e7   : > { %6871 = vst [vmem:[#allocation16_spill] sm:$0xff] %v5735_v13 }
 0x6ed   : > { %4349 = vmatmul.mubr.msk.bf16.gmra.mrb[68].mxu0 %vm1563_vm7, %v4647_v25 }
 0x6ee   : > { %4368 = vmatprep.mubr.bf16.mxu0 %v4657_v60 }
 0x768   : > { %v5703_v7 = vpop.f32.mrb[16].mxu1  ;;  %v4218_v8 = vpop.f32.mrb[24].mxu0 }
 0x769   : > { %v5705_v9 = vpop.f32.mrb[17].mxu1  ;;  %v1975_v10 = vpop.f32.mrb[25].mxu0  ;;  %v1984_v21 = vadd.f32 %v4218_v8, %v1810_v28 }
 0x76a   : > { %v5707_v11 = vpop.f32.mrb[18].mxu1  ;;  %v4219_v12 = vpop.f32.mrb[26].mxu0  ;;  %v1976_v14 = vadd.f32 %v1975_v10, %v1800_v27 }
 0x76b   : > { %v1987_v15 = vadd.f32 %v4219_v12, %v1815_v29  ;;  %v5709_v17 = vpop.f32.mrb[19].mxu1  ;;  %v1978_v18 = vpop.f32.mrb[27].mxu0  ;;  %v2040_v3 = vadd.f32 %v1984_v21, %v5216_v34 }
 0x76c   : > { %v1979_v19 = vadd.f32 %v1978_v18, %v1805_v26  ;;  %v2038_v0 = vadd.f32 %v1976_v14, %v5216_v34  ;;  %v5733_v21 = vpop.permute.xlu1 %2360 }
 0x76d   : > { %v2041_v30 = vadd.f32 %v1987_v15, %v5218_v37  ;;  %v2056_v14 = vmax.f32 %v2040_v3, 0.0  ;;  %6870 = vst [vmem:[#allocation15_spill] sm:$0xff] %v5733_v21 }
 0x76e   : > { %v2039_v16 = vadd.f32 %v1979_v19, %v5218_v37  ;;  %v2054_v28 = vmax.f32 %v2038_v0, 0.0 }
 0x76f   : > { %v2057_v29 = vmax.f32 %v2041_v30, 0.0 }
 0x770   : > { %v5718_v6 = vpop.f32.mrb[20].mxu1  ;;  %v4222_v1 = vpop.f32.mrb[28].mxu0  ;;  %v2055_v23 = vmax.f32 %v2039_v16, 0.0  ;;  %v5737_v20 = vadd.f32 %v2054_v28, %v2038_v0 }
 0x771   : > { %v5721_v24 = vpop.f32.mrb[21].mxu1  ;;  %v1991_v25 = vpop.f32.mrb[29].mxu0  ;;  %v2000_v18 = vadd.f32 %v4222_v1, %v5639_v33 }
 0x772   : > { %v5723_v26 = vpop.f32.mrb[22].mxu1  ;;  %v4223_v27 = vpop.f32.mrb[30].mxu0  ;;  %v1992_v39 = vadd.f32 %v1991_v25, %v5635_v31  ;;  %v5729_v15 = vadd.f32 %v2055_v23, %v2039_v16  ;;  %6872 = vst [vmem:[#allocation17_spill] sm:$0xff] %v5737_v20  ;;  %v5739_v31 = vadd.f32 %v2057_v29, %v2041_v30  ;;  %v5745_v23 = vadd.f32 %v2056_v14, %v2040_v3 }
 0x773   : > { %v2003_v60 = vadd.f32 %v4223_v27, %v1835_v35  ;;  %v5726_v8 = vpop.f32.mrb[23].mxu1  ;;  %v1994_v10 = vpop.f32.mrb[31].mxu0  ;;  %v2044_v33 = vadd.f32 %v2000_v18, %v5216_v34 }
 0x774   : > { %v1995_v12 = vadd.f32 %v1994_v10, %v5637_v32  ;;  %6869 = vst [vmem:[#allocation14_spill] sm:$0xff] %v5729_v15  ;;  %6873 = vst [vmem:[#allocation18_spill] sm:$0xff] %v5739_v31  ;;  %v2042_v35 = vadd.f32 %v1992_v39, %v5216_v34  ;;  %v2110_v27 = vpack.c.bf16 %v5729_v15, %v5737_v20  ;;  %v5763_v21 = vpop.permute.xlu1 %2370 }
 0x775   : > { %v2045_v25 = vadd.f32 %v2003_v60, %v5218_v37  ;;  %6874 = vst [vmem:[#allocation19_spill] sm:$0xff] %v5745_v23  ;;  %v2111_v60 = vpack.c.bf16 %v5739_v31, %v5745_v23  ;;  %v2060_v20 = vmax.f32 %v2044_v33, 0.0  ;;  %v5767_v23 = vpop.permute.xlu0 %2375 }
 0x776   : > { %v2043_v19 = vadd.f32 %v1995_v12, %v5218_v37  ;;  %v2058_v29 = vmax.f32 %v2042_v35, 0.0  ;;  %4232 = vmatprep.subr.bf16.mxu1 %v2110_v27 }
 0x777   : > { %v2061_v39 = vmax.f32 %v2045_v25, 0.0  ;;  %4233 = vmatpush3.bf16.msra.mxu1 %v2110_v27 }
 0x778   : > { %v5743_v32 = vpop.f32.mrb[24].mxu1  ;;  %v4226_v16 = vpop.f32.mrb[32].mxu0  ;;  %v2059_v1 = vmax.f32 %v2043_v19, 0.0  ;;  %4234 = vmatprep.subr.bf16.mxu1 %v2111_v60  ;;  %v5769_v2 = vadd.f32 %v2058_v29, %v2042_v35 }
 0x779   : > { %v5750_v10 = vpop.f32.mrb[25].mxu1  ;;  %v2007_v0 = vpop.f32.mrb[33].mxu0  ;;  %v2016_v13 = vadd.f32 %v4226_v16, %v5648_v40  ;;  %v5771_v27 = vadd.f32 %v2061_v39, %v2045_v25 }
 0x77a   : > { %v5752_v30 = vpop.f32.mrb[26].mxu1  ;;  %v4227_v28 = vpop.f32.mrb[34].mxu0  ;;  %v2008_v14 = vadd.f32 %v2007_v0, %v5641_v36  ;;  %v5761_v22 = vadd.f32 %v2059_v1, %v2043_v19  ;;  %6876 = vst [vmem:[#allocation21_spill] sm:$0xff] %v5769_v2  ;;  %v5777_v1 = vadd.f32 %v2060_v20, %v2044_v33 }
 0x77b   : > { %v5756_v3 = vpop.f32.mrb[27].mxu1  ;;  %v2010_v12 = vpop.f32.mrb[35].mxu0  ;;  %v2019_v18 = vadd.f32 %v4227_v28, %v5650_v41  ;;  %6877 = vst [vmem:[#allocation22_spill] sm:$0xff] %v5771_v27  ;;  %4235 = vmatpush3.bf16.msra.mxu1 %v2111_v60  ;;  %v2048_v35 = vadd.f32 %v2016_v13, %v5216_v34 }
 0x77c   : > { %v2011_v15 = vadd.f32 %v2010_v12, %v5643_v38  ;;  %6875 = vst [vmem:[#allocation20_spill] sm:$0xff] %v5761_v22  ;;  %v2046_v36 = vadd.f32 %v2008_v14, %v5216_v34  ;;  %6878 = vst [vmem:[#allocation23_spill] sm:$0xff] %v5777_v1  ;;  %v2112_v40 = vpack.c.bf16 %v5761_v22, %v5769_v2  ;;  %v5791_v60 = vpop.permute.xlu1 %2380  ;;  %v5796_v2 = vpop.permute.xlu0 %2385 }
 0x77d   : > { %v2049_v38 = vadd.f32 %v2019_v18, %v5218_v37  ;;  %v2113_v29 = vpack.c.bf16 %v5771_v27, %v5777_v1  ;;  %6879 = vst [vmem:[#allocation24_spill] sm:$0xff] %v5791_v60  ;;  %v2064_v27 = vmax.f32 %v2048_v35, 0.0 }
 0x77e   : > { %v2047_v31 = vadd.f32 %v2011_v15, %v5218_v37  ;;  %4236 = vmatprep.subr.bf16.mxu1 %v2112_v40  ;;  %v2062_v12 = vmax.f32 %v2046_v36, 0.0 }
 0x77f   : > { %v2065_v14 = vmax.f32 %v2049_v38, 0.0  ;;  %4237 = vmatpush3.bf16.msra.mxu1 %v2112_v40 }
 0x780   : > { %v5775_v41 = vpop.f32.mrb[28].mxu1  ;;  %v4230_v19 = vpop.f32.mrb[36].mxu0  ;;  %v2063_v25 = vmax.f32 %v2047_v31, 0.0  ;;  %4238 = vmatprep.subr.bf16.mxu1 %v2113_v29  ;;  %v5804_v40 = vadd.f32 %v2062_v12, %v2046_v36 }
 0x781   : > { %v5781_v15 = vpop.f32.mrb[29].mxu1  ;;  %v2023_v16 = vpop.f32.mrb[37].mxu0 }
 0x782   : > { %v5784_v0 = vpop.f32.mrb[30].mxu1  ;;  %v4231_v28 = vpop.f32.mrb[38].mxu0  ;;  %v2024_v39 = vadd.f32 %v2023_v16, %v5652_v42  ;;  %v5798_v1 = vadd.f32 %v2063_v25, %v2047_v31  ;;  %v2032_v42 = vadd.f32 %v4230_v19, %v5656_v44  ;;  %v1626_v16 = vadd.f32 %v5709_v17, %v5662_v47  ;;  %6881 = vst [vmem:[#allocation26_spill] sm:$0xff] %v5804_v40 }
 0x783   : > { %v5789_v20 = vpop.f32.mrb[31].mxu1  ;;  %v2026_v33 = vpop.f32.mrb[39].mxu0  ;;  %v2035_v13 = vadd.f32 %v4231_v28, %v5658_v45  ;;  %v5806_v45 = vadd.f32 %v2065_v14, %v2049_v38  ;;  %4239 = vmatpush3.bf16.msra.mxu1 %v2113_v29  ;;  %v1623_v44 = vadd.f32 %v5705_v9, %v5660_v46  ;;  %v5817_v47 = vadd.f32 %v2064_v27, %v2048_v35 }
 0x784   : > { %v2050_v18 = vadd.f32 %v2024_v39, %v5216_v34  ;;  %v2027_v22 = vadd.f32 %v2026_v33, %v5654_v43  ;;  %6880 = vst [vmem:[#allocation25_spill] sm:$0xff] %v5798_v1  ;;  %v5813_v25 = vpop.permute.xlu1 %2390  ;;  %v2052_v17 = vadd.f32 %v2032_v42, %v5216_v34  ;;  %v1634_v38 = vadd.f32 %v5707_v11, %v5666_v49  ;;  %v5830_v12 = vpop.permute.xlu0 %2395 }
 0x785   : > { %6882 = vst [vmem:[#allocation27_spill] sm:$0xff] %v5806_v45  ;;  %v2053_v39 = vadd.f32 %v2035_v13, %v5218_v37  ;;  %6883 = vst [vmem:[#allocation28_spill] sm:$0xff] %v5817_v47  ;;  %v1686_v46 = vadd.f32 %v1626_v16, %v5218_v37  ;;  %v2115_v35 = vpack.c.bf16 %v5806_v45, %v5817_v47 }
 0x786   : > { %v2051_v60 = vadd.f32 %v2027_v22, %v5218_v37  ;;  %v2066_v28 = vmax.f32 %v2050_v18, 0.0  ;;  %v2114_v22 = vpack.c.bf16 %v5798_v1, %v5804_v40  ;;  %v1631_v14 = vadd.f32 %v5703_v7, %v5664_v48 }
 0x787   : > { %v2069_v27 = vmax.f32 %v2053_v39, 0.0  ;;  %v1685_v49 = vadd.f32 %v1623_v44, %v5216_v34  ;;  %v2068_v11 = vmax.f32 %v2052_v17, 0.0  ;;  %v1702_v42 = vmax.f32 %v1686_v46, 0.0 }
 0x788   : > { %v5809_v43 = vpop.f32.mrb[40].mxu0  ;;  %v2067_v33 = vmax.f32 %v2051_v60, 0.0  ;;  %v5833_v9 = vadd.f32 %v2066_v28, %v2050_v18  ;;  %4240 = vmatprep.subr.bf16.mxu1 %v2114_v22  ;;  %v5842_v13 = vpop.permute.xlu1 %2400  ;;  %v1688_v18 = vadd.f32 %v1634_v38, %v5218_v37  ;;  %v1642_v16 = vadd.f32 %v5726_v8, %v5670_v51 }
 0x789   : > { %v5811_v31 = vpop.f32.mrb[41].mxu0  ;;  %4241 = vmatpush3.bf16.msra.mxu1 %v2114_v22  ;;  %v5847_v28 = vadd.f32 %v2069_v27, %v2053_v39  ;;  %v5853_v7 = vpop.permute.xlu0 %2405  ;;  %v1687_v44 = vadd.f32 %v1631_v14, %v5216_v34  ;;  %v1701_v22 = vmax.f32 %v1685_v49, 0.0  ;;  %v5858_v38 = vadd.f32 %v2068_v11, %v2052_v17 }
 0x78a   : > { %v5822_v36 = vpop.f32.mrb[42].mxu0  ;;  %v5826_v19 = vadd.f32 %v2067_v33, %v2051_v60  ;;  %6885 = vst [vmem:[#allocation30_spill] sm:$0xff] %v5833_v9  ;;  %4242 = vmatprep.subr.bf16.mxu1 %v2115_v35  ;;  %v1650_v51 = vadd.f32 %v5723_v26, %v5674_v53  ;;  %v1704_v39 = vmax.f32 %v1688_v18, 0.0  ;;  %v5866_v27 = vadd.f32 %v1702_v42, %v1686_v46 }
 0x78b   : > { %v5828_v29 = vpop.f32.mrb[43].mxu0  ;;  %6886 = vst [vmem:[#allocation31_spill] sm:$0xff] %v5847_v28  ;;  %6887 = vst [vmem:[#allocation32_spill] sm:$0xff] %v5858_v38  ;;  %v2117_v14 = vpack.c.bf16 %v5847_v28, %v5858_v38  ;;  %v1703_v17 = vmax.f32 %v1687_v44, 0.0  ;;  %v5875_v11 = vadd.f32 %v1701_v22, %v1685_v49  ;;  %v1658_v28 = vadd.f32 %v5756_v3, %v5678_v55 }
 0x78c   : > { %6884 = vst [vmem:[#allocation29_spill] sm:$0xff] %v5826_v19  ;;  %v2116_v60 = vpack.c.bf16 %v5826_v19, %v5833_v9  ;;  %v1639_v19 = vadd.f32 %v5721_v24, %v5668_v50  ;;  %6888 = vst [vmem:[#allocation33_spill] sm:$0xff] %v5866_v27  ;;  %v1647_v50 = vadd.f32 %v5718_v6, %v5672_v52  ;;  %v5873_v24 = vpop.permute.xlu1 %2780  ;;  %v4649_v6 = vld [vmem:[%s6775_s13 + $0x24] ss:$16 sps:$4 sm:$0xff]  }
 0x78d   : > { %4243 = vmatpush3.bf16.msra.mxu1 %v2115_v35  ;;  %v1690_v35 = vadd.f32 %v1642_v16, %v5218_v37  ;;  %v1692_v26 = vadd.f32 %v1650_v51, %v5218_v37  ;;  %v5879_v46 = vpop.permute.xlu0 %2785  ;;  %v5881_v42 = vadd.f32 %v1704_v39, %v1688_v18  ;;  %v1757_v52 = vpack.c.bf16 %v5866_v27, %v5875_v11  ;;  %v4650_v18 = vld [vmem:[%s6775_s13 + $0x44] ss:$16 sps:$4 sm:$0xff]  }
 0x78e   : > { %4244 = vmatprep.subr.bf16.mxu1 %v2116_v60  ;;  %v1689_v53 = vadd.f32 %v1639_v19, %v5216_v34  ;;  %v1691_v19 = vadd.f32 %v1647_v50, %v5216_v34  ;;  %v5898_v22 = vadd.f32 %v1703_v17, %v1687_v44  ;;  %v1655_v3 = vadd.f32 %v5750_v10, %v5676_v54 }
 0x78f   : > { %6889 = vst [vmem:[#allocation34_spill] sm:$0xff] %v5881_v42  ;;  %v1706_v16 = vmax.f32 %v1690_v35, 0.0  ;;  %v1708_v39 = vmax.f32 %v1692_v26, 0.0  ;;  %v1663_v50 = vadd.f32 %v5743_v32, %v5680_v56  ;;  %v1666_v44 = vadd.f32 %v5752_v30, %v5682_v57 }
 0x790   : > { %v5849_v33 = vpop.f32.mrb[44].mxu0  ;;  %v1705_v55 = vmax.f32 %v1689_v53, 0.0  ;;  %v5908_v1 = vpop.permute.xlu1 %2790  ;;  %v1694_v17 = vadd.f32 %v1658_v28, %v5218_v37  ;;  %v1758_v54 = vpack.c.bf16 %v5881_v42, %v5898_v22  ;;  %v1707_v10 = vmax.f32 %v1691_v19, 0.0 }
 0x791   : > { %v5851_v48 = vpop.f32.mrb[45].mxu0  ;;  %4245 = vmatpush3.bf16.msra.mxu1 %v2116_v60  ;;  %v5910_v27 = vadd.f32 %v1706_v16, %v1690_v35  ;;  %v1679_v38 = vadd.f32 %v5775_v41, %v5691_v61  ;;  %v1671_v56 = vadd.f32 %v5781_v15, %v5684_v58  ;;  %v5921_v32 = vpop.permute.xlu0 %2795  ;;  %v1693_v57 = vadd.f32 %v1655_v3, %v5216_v34 }
 0x792   : > { %v5860_v45 = vpop.f32.mrb[46].mxu0  ;;  %4246 = vmatprep.subr.bf16.mxu1 %v2117_v14  ;;  %v5923_v35 = vadd.f32 %v1705_v55, %v1689_v53  ;;  %v1682_v30 = vadd.f32 %v5784_v0, %v5693_v62  ;;  %v1674_v28 = vadd.f32 %v5789_v20, %v5686_v59  ;;  %v1695_v61 = vadd.f32 %v1663_v50, %v5216_v34  ;;  %v4651_v62 = vld [vmem:[%s6775_s13 + $0x64] ss:$16 sps:$4 sm:$0xff]  }
 0x793   : > { %v5864_v8 = vpop.f32.mrb[47].mxu0  ;;  %6890 = vst [vmem:[#allocation35_spill] sm:$0xff] %v5910_v27  ;;  %v5931_v41 = vadd.f32 %v1708_v39, %v1692_v26  ;;  %v1696_v58 = vadd.f32 %v1666_v44, %v5218_v37  ;;  %v1710_v15 = vmax.f32 %v1694_v17, 0.0  ;;  %v5941_v0 = vadd.f32 %v1707_v10, %v1691_v19 }
 0x794   : > { %v1759_v53 = vpack.c.bf16 %v5910_v27, %v5923_v35  ;;  %v1699_v59 = vadd.f32 %v1679_v38, %v5216_v34  ;;  %v1697_v20 = vadd.f32 %v1671_v56, %v5216_v34  ;;  %v1700_v55 = vadd.f32 %v1682_v30, %v5218_v37  ;;  %v6893_v27 = vld [vmem:[#allocation11_spill] sm:$0xff] }
 0x795   : > { %4247 = vmatpush3.bf16.msra.mxu1 %v2117_v14  ;;  %6891 = vst [vmem:[#allocation36_spill] sm:$0xff] %v5931_v41  ;;  %v1698_v3 = vadd.f32 %v1674_v28, %v5218_v37  ;;  %v2515_v19 = vadd.f32 %v5809_v43, %v5699_v4  ;;  %v1711_v39 = vmax.f32 %v1695_v61, 0.0  ;;  %v2507_v50 = vadd.f32 %v5811_v31, %v5695_v63 }
 0x796   : > { %4256 = vmatprep.subr.bf16.mxu1 %v1757_v52  ;;  %v1712_v10 = vmax.f32 %v1696_v58, 0.0  ;;  %v5964_v56 = vadd.f32 %v1710_v15, %v1694_v17  ;;  %v2518_v30 = vadd.f32 %v5822_v36, %v5701_v5  ;;  %v1760_v4 = vpack.c.bf16 %v5931_v41, %v5941_v0 }
 0x797   : > { %v1715_v43 = vmax.f32 %v1699_v59, 0.0  ;;  %v1713_v28 = vmax.f32 %v1697_v20, 0.0  ;;  %v2510_v42 = vadd.f32 %v5828_v29, %v6893_v27  ;;  %v1716_v31 = vmax.f32 %v1700_v55, 0.0 }
 0x798   : > { %v5890_v49 = vpop.f32.mrb[48].mxu0  ;;  %4249 = vmatmul.mubr.bf16.vlgmr.msra.gmra.mrb[32].mxu1 %v4649_v6  ;;  %v5950_v6 = vpop.permute.xlu1 %2800  ;;  %6892 = vst [vmem:[#allocation37_spill] sm:$0xff] %v5964_v56  ;;  %v1714_v9 = vmax.f32 %v1698_v3, 0.0  ;;  %v2571_v17 = vadd.f32 %v2515_v19, %v5216_v34  ;;  %v2569_v5 = vadd.f32 %v2507_v50, %v5216_v34  ;;  %v5976_v15 = vadd.f32 %v1711_v39, %v1695_v61 }
 0x799   : > { %v5893_v60 = vpop.f32.mrb[49].mxu0  ;;  %4257 = vmatpush3.bf16.msra.mxu1 %v1757_v52  ;;  %4252 = vmatprep.mubr.bf16.mxu1 %v4650_v18  ;;  %v4652_v52 = vld [vmem:[%s6775_s13] ss:$16 sps:$4 sm:$0xff]   ;;  %v1709_v18 = vmax.f32 %v1693_v57, 0.0  ;;  %v2572_v41 = vadd.f32 %v2518_v30, %v5218_v37  ;;  %v5989_v39 = vadd.f32 %v1716_v31, %v1700_v55 }
 0x79a   : > { %v5902_v51 = vpop.f32.mrb[50].mxu0  ;;  %4258 = vmatprep.subr.bf16.mxu1 %v1758_v54  ;;  %v2587_v50 = vmax.f32 %v2571_v17, 0.0 }
 0x79b   : > { %v5906_v14 = vpop.f32.mrb[51].mxu0  ;;  %v5972_v63 = vadd.f32 %v1709_v18, %v1693_v57  ;;  %v5983_v57 = vadd.f32 %v1715_v43, %v1699_v59  ;;  %6895 = vst [vmem:[#allocation38_spill] sm:$0xff] %v5989_v39  ;;  %v2585_v59 = vmax.f32 %v2569_v5, 0.0  ;;  %v6897_v43 = vld [vmem:[#allocation16_spill] sm:$0xff] }
 0x79c   : > { %v2811_v36 = vpop.permute.xlu1 %2810 }
 0x79d   : > { %4259 = vmatpush3.bf16.msra.mxu1 %v1758_v54  ;;  %v5962_v54 = vpop.permute.xlu0 %2805  ;;  %v1761_v29 = vpack.c.bf16 %v5964_v56, %v5972_v63 }
 0x79e   : > { %4260 = vmatprep.subr.bf16.mxu1 %v1759_v53 }
 0x7a0   : > { %v5936_v16 = vpop.f32.mrb[52].mxu0  ;;  %4253 = vmatmul.mubr.bf16.gmra.mrb[36].mxu1 %v4651_v62  ;;  %v5978_v62 = vadd.f32 %v1712_v10, %v1696_v58  ;;  %v5991_v58 = vadd.f32 %v1714_v9, %v1698_v3 }
 0x7a1   : > { %v5945_v26 = vpop.f32.mrb[53].mxu0  ;;  %4261 = vmatpush3.bf16.msra.mxu1 %v1759_v53  ;;  %4272 = vmatprep.mubr.bf16.mxu1 %v4652_v52  ;;  %v5985_v53 = vadd.f32 %v1713_v28, %v1697_v20  ;;  %v2570_v52 = vadd.f32 %v2510_v42, %v5218_v37  ;;  %v2816_v61 = vpop.permute.xlu0 %2815  ;;  %v2534_v20 = vadd.f32 %v5860_v45, %v6897_v43  ;;  %v2588_v28 = vmax.f32 %v2572_v41, 0.0 }
 0x7a2   : > { %v5956_v38 = vpop.f32.mrb[54].mxu0  ;;  %4262 = vmatprep.subr.bf16.mxu1 %v1760_v4  ;;  %6894 = vst [vmem:[#allocation11_spill] sm:$0xff] %v5978_v62  ;;  %6896 = vst [vmem:[#allocation39_spill] sm:$0xff] %v5991_v58  ;;  %v1762_v55 = vpack.c.bf16 %v5978_v62, %v5976_v15  ;;  %v6021_v62 = vadd.f32 %v2585_v59, %v2569_v5 }
 0x7a3   : > { %v5960_v44 = vpop.f32.mrb[55].mxu0  ;;  %v2586_v31 = vmax.f32 %v2570_v52, 0.0 }
 0x7a5   : > { %4263 = vmatpush3.bf16.msra.mxu1 %v1760_v4  ;;  %v6025_v47 = vadd.f32 %v2586_v31, %v2570_v52 }
 0x7a6   : > { %4264 = vmatprep.subr.bf16.mxu1 %v1761_v29 }
 0x7a8   : > { %v4338_v27 = vpop.f32.mrb[56].mxu0 }
 0x7a9   : > { %v2965_v18 = vadd.f32 %v4338_v27, %v5908_v1  ;;  %v2956_v19 = vpop.f32.mrb[57].mxu0  ;;  %4265 = vmatpush3.bf16.msra.mxu1 %v1761_v29 }
 0x7aa   : > { %v2957_v10 = vadd.f32 %v2956_v19, %v5873_v24  ;;  %v4339_v30 = vpop.f32.mrb[58].mxu0  ;;  %v6898_v24 = vld [vmem:[#allocation15_spill] sm:$0xff]  ;;  %v6899_v19 = vld [vmem:[#allocation12_spill] sm:$0xff]  ;;  %4266 = vmatprep.subr.bf16.mxu1 %v1762_v55 }
 0x7ab   : > { %v3021_v42 = vadd.f32 %v2965_v18, %v5216_v34  ;;  %v2968_v4 = vadd.f32 %v4339_v30, %v5921_v32  ;;  %v2959_v1 = vpop.f32.mrb[59].mxu0  ;;  %v2531_v27 = vadd.f32 %v5849_v33, %v6898_v24  ;;  %v2523_v45 = vadd.f32 %v5851_v48, %v6899_v19  ;;  %v6007_v32 = vpop.permute.xlu1 %2820  ;;  %6902 = vst [vmem:[#allocation15_spill] sm:$0xff] %v6025_v47 }
 0x7ac   : > { %v3019_v9 = vadd.f32 %v2957_v10, %v5216_v34  ;;  %v2960_v3 = vadd.f32 %v2959_v1, %v5879_v46  ;;  %v1763_v10 = vpack.c.bf16 %v5991_v58, %v5985_v53  ;;  %v1764_v46 = vpack.c.bf16 %v5989_v39, %v5983_v57  ;;  %v6900_v1 = vld [vmem:[#allocation13_spill] sm:$0xff] }
 0x7ad   : > { %v3022_v18 = vadd.f32 %v2968_v4, %v5218_v37  ;;  %v2576_v33 = vadd.f32 %v2534_v20, %v5218_v37  ;;  %v2526_v48 = vadd.f32 %v5864_v8, %v6900_v1  ;;  %v3037_v29 = vmax.f32 %v3021_v42, 0.0  ;;  %v6017_v4 = vpop.permute.xlu0 %2825  ;;  %4267 = vmatpush3.bf16.msra.mxu1 %v1762_v55 }
 0x7ae   : > { %v3035_v30 = vmax.f32 %v3019_v9, 0.0  ;;  %v3020_v43 = vadd.f32 %v2960_v3, %v5218_v37  ;;  %v6019_v19 = vadd.f32 %v2587_v50, %v2571_v17  ;;  %v6023_v3 = vadd.f32 %v2588_v28, %v2572_v41  ;;  %4268 = vmatprep.subr.bf16.mxu1 %v1763_v10 }
 0x7af   : > { %v3038_v24 = vmax.f32 %v3022_v18, 0.0  ;;  %v6028_v39 = vadd.f32 %v2531_v27, %v5216_v34  ;;  %v6031_v20 = vadd.f32 %v2523_v45, %v5216_v34  ;;  %v2592_v50 = vmax.f32 %v2576_v33, 0.0  ;;  %v2831_v55 = vpop.permute.xlu1 %2830 }
 0x7b0   : > { %6901 = vst [vmem:[#allocation16_spill] sm:$0xff] %v6023_v3  ;;  %v3036_v56 = vmax.f32 %v3020_v43, 0.0  ;;  %v4342_v58 = vpop.f32.mrb[60].mxu0  ;;  %v6033_v40 = vadd.f32 %v3035_v30, %v3019_v9  ;;  %v2574_v59 = vadd.f32 %v2526_v48, %v5218_v37  ;;  %v6041_v28 = vadd.f32 %v3037_v29, %v3021_v42 }
 0x7b1   : > { %v2981_v8 = vadd.f32 %v4342_v58, %v2811_v36  ;;  %v2972_v1 = vpop.f32.mrb[61].mxu0  ;;  %v6035_v17 = vadd.f32 %v3038_v24, %v3022_v18  ;;  %4269 = vmatpush3.bf16.msra.mxu1 %v1763_v10  ;;  %v2836_v45 = vpop.permute.xlu0 %2835  ;;  %v2539_v10 = vadd.f32 %v5893_v60, %v5763_v21  ;;  %v2589_v29 = vmax.f32 %v6031_v20, 0.0 }
 0x7b2   : > { %v6037_v5 = vadd.f32 %v3036_v56, %v3020_v43  ;;  %v2973_v41 = vadd.f32 %v2972_v1, %v5950_v6  ;;  %v4343_v52 = vpop.f32.mrb[62].mxu0  ;;  %v2542_v6 = vadd.f32 %v5906_v14, %v5767_v23  ;;  %4270 = vmatprep.subr.bf16.mxu1 %v1764_v46  ;;  %v6063_v23 = vpack.c.bf16 %v6023_v3, %v6019_v19 }
 0x7b3   : > { %6903 = vst [vmem:[#allocation12_spill] sm:$0xff] %v6035_v17  ;;  %v2984_v31 = vadd.f32 %v4343_v52, %v2816_v61  ;;  %v2975_v27 = vpop.f32.mrb[63].mxu0  ;;  %v3025_v58 = vadd.f32 %v2981_v8, %v5216_v34  ;;  %v2641_v61 = vpack.c.bf16 %v6025_v47, %v6021_v62  ;;  %v6057_v18 = vpack.c.bf16 %v6035_v17, %v6041_v28  ;;  %v2841_v17 = vpop.permute.xlu1 %2840 }
 0x7b4   : > { %6904 = vst [vmem:[#allocation13_spill] sm:$0xff] %v6037_v5  ;;  %v6045_v36 = vpack.c.bf16 %v6037_v5, %v6033_v40  ;;  %v3023_v56 = vadd.f32 %v2973_v41, %v5216_v34  ;;  %v2976_v9 = vadd.f32 %v2975_v27, %v5962_v54  ;;  %v2591_v14 = vmax.f32 %v6028_v39, 0.0  ;;  %v4653_v41 = vld [vmem:[%s6775_s13 + $0x20] ss:$16 sps:$4 sm:$0xff]  }
 0x7b5   : > { %v3026_v42 = vadd.f32 %v2984_v31, %v5218_v37  ;;  %v2590_v54 = vmax.f32 %v2574_v59, 0.0  ;;  %v6070_v24 = vadd.f32 %v2592_v50, %v2576_v33  ;;  %v3041_v8 = vmax.f32 %v3025_v58, 0.0  ;;  %v6905_v31 = vld [vmem:[#allocation24_spill] sm:$0xff]  ;;  %4271 = vmatpush3.bf16.msra.mxu1 %v1764_v46 }
 0x7b6   : > { %v3039_v30 = vmax.f32 %v3023_v56, 0.0  ;;  %v3024_v43 = vadd.f32 %v2976_v9, %v5218_v37  ;;  %4352 = vmatprep.subr.bf16.mxu0 %v6045_v36  ;;  %v2547_v27 = vadd.f32 %v5890_v49, %v6905_v31  ;;  %v2550_v21 = vadd.f32 %v5902_v51, %v5796_v2  ;;  %v4654_v9 = vld [vmem:[%s6775_s13 + $0x40] ss:$16 sps:$4 sm:$0xff]   ;;  %4304 = vmatprep.subr.bf16.mxu1 %v2641_v61 }
 0x7b7   : > { %v3042_v48 = vmax.f32 %v3026_v42, 0.0  ;;  %4353 = vmatpush3.bf16.msra.mxu0 %v6045_v36  ;;  %v2578_v60 = vadd.f32 %v2542_v6, %v5218_v37  ;;  %v6091_v51 = vadd.f32 %v2590_v54, %v2574_v59  ;;  %v2577_v46 = vadd.f32 %v2539_v10, %v5216_v34 }
 0x7b8   : > { %v3040_v1 = vmax.f32 %v3024_v43, 0.0  ;;  %v4346_v52 = vpop.f32.mrb[64].mxu0  ;;  %4354 = vmatprep.subr.bf16.mxu0 %v6057_v18  ;;  %v6084_v5 = vadd.f32 %v3039_v30, %v3023_v56  ;;  %v2846_v56 = vpop.permute.xlu0 %2845  ;;  %v6096_v30 = vadd.f32 %v3041_v8, %v3025_v58  ;;  %4273 = vmatmul.mubr.bf16.vlgmr.msra.gmra.mrb[32].mxu1 %v4653_v41  ;;  %v6110_v58 = vadd.f32 %v2589_v29, %v6031_v20 }
 0x7b9   : > { %v2997_v33 = vadd.f32 %v4346_v52, %v2831_v55  ;;  %v2988_v50 = vpop.f32.mrb[65].mxu0  ;;  %v6086_v3 = vadd.f32 %v3042_v48, %v3026_v42  ;;  %v2594_v54 = vmax.f32 %v2578_v60, 0.0  ;;  %4305 = vmatpush3.bf16.msra.mxu1 %v2641_v61  ;;  %4276 = vmatprep.mubr.bf16.mxu1 %v4654_v9  ;;  %v2558_v61 = vadd.f32 %v5960_v44, %v5830_v12  ;;  %v2851_v20 = vpop.permute.xlu1 %2850  ;;  %v4655_v12 = vld [vmem:[%s6775_s13 + $0x60] ss:$16 sps:$4 sm:$0xff]  }
 0x7ba   : > { %v6088_v47 = vadd.f32 %v3040_v1, %v3024_v43  ;;  %v2989_v49 = vadd.f32 %v2988_v50, %v6007_v32  ;;  %v4347_v2 = vpop.f32.mrb[66].mxu0  ;;  %v6105_v43 = vadd.f32 %v2591_v14, %v6028_v39  ;;  %4306 = vmatprep.subr.bf16.mxu1 %v6063_v23  ;;  %v2579_v14 = vadd.f32 %v2547_v27, %v5216_v34 }
 0x7bb   : > { %6906 = vst [vmem:[#allocation24_spill] sm:$0xff] %v6086_v3  ;;  %v3029_v55 = vadd.f32 %v2997_v33, %v5216_v34  ;;  %v3000_v6 = vadd.f32 %v4347_v2, %v2836_v45  ;;  %v2991_v52 = vpop.f32.mrb[67].mxu0  ;;  %4355 = vmatpush3.bf16.msra.mxu0 %v6057_v18  ;;  %v2580_v45 = vadd.f32 %v2550_v21, %v5218_v37  ;;  %v2593_v29 = vmax.f32 %v2577_v46, 0.0  ;;  %v4656_v2 = vld [vmem:[%s6775_s13 + $0x8] ss:$16 sps:$4 sm:$0xff]  }
 0x7bc   : > { %v6100_v42 = vpack.c.bf16 %v6088_v47, %v6084_v5  ;;  %v3027_v32 = vadd.f32 %v2989_v49, %v5216_v34  ;;  %v2992_v59 = vadd.f32 %v2991_v52, %v6017_v4  ;;  %v6114_v48 = vpack.c.bf16 %v6086_v3, %v6096_v30 }
 0x7bd   : > { %v3030_v10 = vadd.f32 %v3000_v6, %v5218_v37  ;;  %v3045_v8 = vmax.f32 %v3029_v55, 0.0  ;;  %v2643_v31 = vpack.c.bf16 %v6091_v51, %v6110_v58  ;;  %v2644_v21 = vpack.c.bf16 %v6070_v24, %v6105_v43  ;;  %4307 = vmatpush3.bf16.msra.mxu1 %v6063_v23  ;;  %v2856_v6 = vpop.permute.xlu0 %2855 }
 0x7be   : > { %v3043_v4 = vmax.f32 %v3027_v32, 0.0  ;;  %v3028_v39 = vadd.f32 %v2992_v59, %v5218_v37  ;;  %4356 = vmatprep.subr.bf16.mxu0 %v6100_v42  ;;  %v2596_v44 = vmax.f32 %v2580_v45, 0.0  ;;  %v6131_v27 = vadd.f32 %v2594_v54, %v2578_v60 }
 0x7bf   : > { %v3046_v1 = vmax.f32 %v3030_v10, 0.0  ;;  %4357 = vmatpush3.bf16.msra.mxu0 %v6100_v42  ;;  %v2555_v50 = vadd.f32 %v5945_v26, %v5813_v25  ;;  %4308 = vmatprep.subr.bf16.mxu1 %v2643_v31  ;;  %v2566_v25 = vadd.f32 %v5956_v38, %v5853_v7  ;;  %v2582_v26 = vadd.f32 %v2558_v61, %v5218_v37 }
 0x7c0   : > { %v3044_v41 = vmax.f32 %v3028_v39, 0.0  ;;  %v4350_v33 = vpop.f32.mrb[68].mxu0  ;;  %4358 = vmatprep.subr.bf16.mxu0 %v6114_v48  ;;  %v6139_v52 = vadd.f32 %v3043_v4, %v3027_v32  ;;  %v6148_v23 = vadd.f32 %v3045_v8, %v3029_v55  ;;  %4277 = vmatmul.mubr.bf16.gmra.mrb[36].mxu1 %v4655_v12  ;;  %v6157_v7 = vadd.f32 %v2593_v29, %v2577_v46 }
 0x7c1   : > { %v3013_v9 = vadd.f32 %v4350_v33, %v2851_v20  ;;  %v3004_v49 = vpop.f32.mrb[69].mxu0  ;;  %v6141_v59 = vadd.f32 %v3046_v1, %v3030_v10  ;;  %v2563_v38 = vadd.f32 %v5936_v16, %v5842_v13  ;;  %4309 = vmatpush3.bf16.msra.mxu1 %v2643_v31  ;;  %4320 = vmatprep.mubr.bf16.mxu1 %v4656_v2 }
 0x7c2   : > { %v6143_v3 = vadd.f32 %v3044_v41, %v3028_v39  ;;  %v3005_v60 = vadd.f32 %v3004_v49, %v2841_v17  ;;  %v4351_v54 = vpop.f32.mrb[70].mxu0  ;;  %v2595_v39 = vmax.f32 %v2579_v14, 0.0  ;;  %v2581_v61 = vadd.f32 %v2555_v50, %v5216_v34  ;;  %4310 = vmatprep.subr.bf16.mxu1 %v2644_v21 }
 0x7c3   : > { %v3016_v20 = vadd.f32 %v4351_v54, %v2856_v6  ;;  %v3007_v33 = vpop.f32.mrb[71].mxu0  ;;  %4359 = vmatpush3.bf16.msra.mxu0 %v6114_v48  ;;  %v3033_v10 = vadd.f32 %v3013_v9, %v5216_v34  ;;  %v6165_v8 = vpack.c.bf16 %v6141_v59, %v6148_v23  ;;  %v6169_v46 = vadd.f32 %v2596_v44, %v2580_v45 }
 0x7c4   : > { %v6153_v32 = vpack.c.bf16 %v6143_v3, %v6139_v52  ;;  %v3031_v17 = vadd.f32 %v3005_v60, %v5216_v34  ;;  %v3008_v4 = vadd.f32 %v3007_v33, %v2846_v56  ;;  %v2645_v13 = vpack.c.bf16 %v6131_v27, %v6157_v7 }
 0x7c5   : > { %v3034_v55 = vadd.f32 %v3016_v20, %v5218_v37  ;;  %v2584_v16 = vadd.f32 %v2566_v25, %v5218_v37  ;;  %v2598_v41 = vmax.f32 %v2582_v26, 0.0  ;;  %v3049_v31 = vmax.f32 %v3033_v10, 0.0  ;;  %4311 = vmatpush3.bf16.msra.mxu1 %v2644_v21 }
 0x7c6   : > { %v3047_v1 = vmax.f32 %v3031_v17, 0.0  ;;  %v3032_v56 = vadd.f32 %v3008_v4, %v5218_v37  ;;  %4360 = vmatprep.subr.bf16.mxu0 %v6153_v32  ;;  %v6176_v50 = vadd.f32 %v2595_v39, %v2579_v14  ;;  %v2583_v9 = vadd.f32 %v2563_v38, %v5216_v34  ;;  %4312 = vmatprep.subr.bf16.mxu1 %v2645_v13  ;;  %v4658_v4 = vld [vmem:[%s6775_s13 + $0x28] ss:$16 sps:$4 sm:$0xff]  }
 0x7c7   : > { %v3050_v29 = vmax.f32 %v3034_v55, 0.0  ;;  %4361 = vmatpush3.bf16.msra.mxu0 %v6153_v32  ;;  %v2597_v45 = vmax.f32 %v2581_v61, 0.0  ;;  %v2600_v6 = vmax.f32 %v2584_v16, 0.0  ;;  %v6188_v60 = vadd.f32 %v2598_v41, %v2582_v26  ;;  %v4660_v39 = vld [vmem:[%s6775_s13 + $0x48] ss:$16 sps:$4 sm:$0xff]  }
 0x7c8   : > { %v3048_v12 = vmax.f32 %v3032_v56, 0.0  ;;  %4362 = vmatprep.subr.bf16.mxu0 %v6165_v8  ;;  %v6179_v44 = vadd.f32 %v3047_v1, %v3031_v17  ;;  %v2646_v37 = vpack.c.bf16 %v6169_v46, %v6176_v50  ;;  %v6190_v14 = vadd.f32 %v3049_v31, %v3033_v10  ;;  %v4659_v10 = vld [vmem:[%s6775_s13 + $0x2c] ss:$16 sps:$4 sm:$0xff]   ;;  %v4661_v38 = vld [vmem:[%s6775_s13 + $0x68] ss:$16 sps:$4 sm:$0xff]  }
 0x7c9   : > { %v6181_v49 = vadd.f32 %v3050_v29, %v3034_v55  ;;  %4313 = vmatpush3.bf16.msra.mxu1 %v2645_v13  ;;  %v2599_v21 = vmax.f32 %v2583_v9, 0.0  ;;  %v6194_v54 = vadd.f32 %v2597_v45, %v2581_v61  ;;  %v6198_v20 = vadd.f32 %v2600_v6, %v2584_v16  ;;  %v4662_v55 = vld [vmem:[%s6775_s13 + $0x4c] ss:$16 sps:$4 sm:$0xff]   ;;  %v3843_v6 = vld [vmem:[%s6776_s14] ss:$0 sm:$0xff] }
 0x7ca   : > { %v6183_v2 = vadd.f32 %v3048_v12, %v3032_v56  ;;  %4314 = vmatprep.subr.bf16.mxu1 %v2646_v37 }
 0x7cb   : > { %4363 = vmatpush3.bf16.msra.mxu0 %v6165_v8  ;;  %v3098_v25 = vpack.c.bf16 %v6181_v49, %v6190_v14  ;;  %v2647_v26 = vpack.c.bf16 %v6188_v60, %v6194_v54  ;;  %v6202_v33 = vadd.f32 %v2599_v21, %v2583_v9 }
 0x7cc   : > { %v3097_v34 = vpack.c.bf16 %v6183_v2, %v6179_v44 }
 0x7cd   : > { %4315 = vmatpush3.bf16.msra.mxu1 %v2646_v37  ;;  %v2648_v17 = vpack.c.bf16 %v6198_v20, %v6202_v33 }
 0x7ce   : > { %4364 = vmatprep.subr.bf16.mxu0 %v3097_v34  ;;  %4316 = vmatprep.subr.bf16.mxu1 %v2647_v26 }
 0x7cf   : > { %4365 = vmatpush3.bf16.msra.mxu0 %v3097_v34 }
 0x7d0   : > { %4366 = vmatprep.subr.bf16.mxu0 %v3098_v25 }
 0x7d1   : > { %4317 = vmatpush3.bf16.msra.mxu1 %v2647_v26 }
 0x7d2   : > { %4318 = vmatprep.subr.bf16.mxu1 %v2648_v17 }
 0x7d3   : > { %4367 = vmatpush3.bf16.msra.mxu0 %v3098_v25 }
 0x7d5   : > { %4319 = vmatpush3.bf16.msra.mxu1 %v2648_v17 }
 0x7d6   : > { %4369 = vmatmul.mubr.bf16.vlgmr.msra.gmra.mrb[72].mxu0 %v4659_v10  ;;  %4376 = vmatprep.subr.bf16.mxu1 %v6045_v36 }
 0x7d8   : > { %4321 = vmatmul.mubr.bf16.vlgmr.msra.gmra.mrb[32].mxu1 %v4658_v4 }
 0x7d9   : > { %4384 = vmatpush3.bf16.msra.mxu1 %v6045_v36  ;;  %4324 = vmatprep.mubr.bf16.mxu1 %v4660_v39  ;;  %v4663_v36 = vld [vmem:[%s6775_s13 + $0x6c] ss:$16 sps:$4 sm:$0xff]  }
 0x7da   : > { %4377 = vmatprep.subr.bf16.mxu1 %v6057_v18 }
 0x7dd   : > { %4385 = vmatpush3.bf16.msra.mxu1 %v6057_v18 }
 0x7de   : > { %4378 = vmatprep.subr.bf16.mxu1 %v6100_v42 }
 0x7e0   : > { %4325 = vmatmul.mubr.bf16.gmra.mrb[36].mxu1 %v4661_v38 }
 0x7e1   : > { %4386 = vmatpush3.bf16.msra.mxu1 %v6100_v42  ;;  %4372 = vmatprep.mubr.bf16.mxu1 %v4662_v55 }
 0x7e2   : > { %4379 = vmatprep.subr.bf16.mxu1 %v6114_v48 }
 0x7e5   : > { %4387 = vmatpush3.bf16.msra.mxu1 %v6114_v48 }
 0x7e6   : > { %4380 = vmatprep.subr.bf16.mxu1 %v6153_v32 }
 0x7e9   : > { %4388 = vmatpush3.bf16.msra.mxu1 %v6153_v32 }
 0x7ea   : > { %4381 = vmatprep.subr.bf16.mxu1 %v6165_v8 }
 0x7ed   : > { %4389 = vmatpush3.bf16.msra.mxu1 %v6165_v8 }
 0x7ee   : > { %4382 = vmatprep.subr.bf16.mxu1 %v3097_v34 }
 0x7f1   : > { %4390 = vmatpush3.bf16.msra.mxu1 %v3097_v34 }
 0x7f2   : > { %4383 = vmatprep.subr.bf16.mxu1 %v3098_v25 }
 0x7f5   : > { %4391 = vmatpush3.bf16.msra.mxu1 %v3098_v25 }
 0x7f8   : > { %4373 = vmatmul.mubr.bf16.vlgmr.msra.gmra.mrb[36].mxu1 %v4663_v36 }
 0x8a9   : > { %v4370_v18 = vpop.f32.mrb[72].mxu0 }
 0x8aa   : > { %v3157_v42 = vpop.f32.mrb[73].mxu0 }
 0x8ab   : > { %v4371_v48 = vpop.f32.mrb[74].mxu0  ;;  %v4322_v1 = vpop.f32.mrb[32].mxu1 }
 0x8ac   : > { %v3160_v61 = vpop.f32.mrb[75].mxu0  ;;  %v4392_v56 = vadd.f32 %v4370_v18, %v4322_v1  ;;  %v2707_v32 = vpop.f32.mrb[33].mxu1 }
 0x8ad   : > { %v4393_v29 = vadd.f32 %v3157_v42, %v2707_v32  ;;  %v4323_v13 = vpop.f32.mrb[34].mxu1 }
 0x8ae   : > { %v4394_v16 = vadd.f32 %v4371_v48, %v4323_v13  ;;  %v2710_v8 = vpop.f32.mrb[35].mxu1  ;;  %v3203_v26 = vadd.f32 %v4392_v56, %v3843_v6 }
 0x8af   : > { %v4395_v41 = vadd.f32 %v3160_v61, %v2710_v8  ;;  %3205 = vrot.lane.b32.xlu1 %v4393_v29, %s6907_s26 }
 0x8b0   : > { %v3204_v55 = vadd.f32 %v4394_v16, %v3843_v6 }
 0x8b1   : > { %3207 = vrot.lane.b32.xlu0 %v4395_v41, %s6907_s26  ;;  %s4756_s26 = smov [#allocation2]  }
 0x8b2   : > { %s4678_s23 = sshll.u32 %s4756_s26, 4  ;;  %s4679_s23 = int_to_ptr.vmem [resolvable:$false] %s4678_s23 }
 0x8b3   : > { %s4680_s0 = scalar_lea.vmem %s4679_s23, 16384 }
 0x8cb   : > { %v4374_v31 = vpop.f32.mrb[36].mxu1 }
 0x8cc   : > { %v3173_v12 = vpop.f32.mrb[37].mxu1 }
 0x8cd   : > { %3213 = vrot.lane.b32.xlu1 %v3173_v12, %s6865_s20  ;;  %v4375_v9 = vpop.f32.mrb[38].mxu1 }
 0x8ce   : > { %v3176_v45 = vpop.f32.mrb[39].mxu1 }
 0x8cf   : > { %3215 = vrot.lane.b32.xlu0 %v3176_v45, %s6865_s20 }
 0x8d1   : > { %3221 = vrot.lane.b32.xlu1 %v4374_v31, %s4739_s27 }
 0x8d3   : > { %3223 = vrot.lane.b32.xlu0 %v4375_v9, %s4739_s27  ;;  %s485_s27 = sand.u32 1, %s4728_s19  }
 0x8d4   : > { %s3629_s20 = sshll.u32 %s485_s27, 9  ;;  %s6721_s25 = scalar_lea.sflag [#allocation3], %s485_s27 }
 0x8d5   : > { %s6515_s30 = scalar_lea.vmem [#allocation2], %s3629_s20 }
 0x8d6   : > { %s3563_s16 = sshll.u32 %s6515_s30, 4  ;;  %s6707_s16 = int_to_ptr.vmem [resolvable:$true] %s3563_s16 }
 0x8d7   : > { %s4674_s18 = scalar_lea.vmem %s6707_s16, 8192  ;;  %p4681_p0 = scmp.lt.s32.totalorder %s6707_s16, %s4679_s23 }
 0x8d8   : > { %p4675_p11 = scmp.ne.s32.totalorder %s6707_s16, %s4674_s18  ;;  %p4682_p1 = scmp.lt.s32.totalorder %s4680_s0, %s4674_s18 }
 0x8da   : > { %p4676_p12 = pnand %p4675_p11, %p4877_p5  ;;  %p4683_p2 = por %p4682_p1, %p4681_p0 }
 0x8dc   : > { %p4677_p13 = pneg %p4676_p12 }
 0x8de   : > { %p4684_p3 = pnand %p4683_p2, %p4677_p13 }
 0x921   : > { %v3206_v37 = vpop.permute.xlu1 %3205 }
 0x922   : > { %v3209_v25 = vsel %vm550_vm14, %v3206_v37, 0.0 }
 0x923   : > { %v3208_v34 = vpop.permute.xlu0 %3207  ;;  %v3211_v4 = vadd.f32 %v3209_v25, %v3203_v26 }
 0x924   : > { %v3210_v39 = vsel %vm550_vm14, %v3208_v34, 0.0 }
 0x925   : > { %v3212_v48 = vadd.f32 %v3210_v39, %v3204_v55 }
 0x93f   : > { %v3214_v10 = vpop.permute.xlu1 %3213 }
 0x940   : > { %v3217_v17 = vsel %vm559_vm0, %v3214_v10, 0.0  ;;  %v6918_v10 = vld [vmem:[#allocation32_spill] sm:$0xff] }
 0x941   : > { %v3216_v38 = vpop.permute.xlu0 %3215  ;;  %v3219_v36 = vadd.f32 %v3217_v17, %v3211_v4 }
 0x942   : > { %v3218_v18 = vsel %vm559_vm0, %v3216_v38, 0.0 }
 0x943   : > { %v3222_v42 = vpop.permute.xlu1 %3221  ;;  %v3220_v32 = vadd.f32 %v3218_v18, %v3212_v48  ;;  %v6943_v48 = vld [vmem:[#allocation25_spill] sm:$0xff] }
 0x944   : > { %v3225_v61 = vsel %vm567_vm3, %v3222_v42, 0.0 }
 0x945   : > { %v3227_v1 = vadd.f32 %v3225_v61, %v3219_v36  ;;  %v3224_v56 = vpop.permute.xlu0 %3223  ;;  %v6939_v61 = vld [vmem:[#allocation18_spill] sm:$0xff] }
 0x946   : > { %v3226_v29 = vsel %vm567_vm3, %v3224_v56, 0.0 }
 0x947   : > { %v6258_v13 = vadd.f32 %v3227_v1, %v5875_v11  ;;  %v6261_v16 = vadd.f32 %v3227_v1, %v5898_v22  ;;  %v6264_v8 = vadd.f32 %v3227_v1, %v5923_v35  ;;  %v6267_v41 = vadd.f32 %v3227_v1, %v5941_v0  ;;  %v6911_v22 = vld [vmem:[#allocation17_spill] sm:$0xff]  ;;  %v6912_v35 = vld [vmem:[#allocation19_spill] sm:$0xff] }
 0x948   : > { %v6270_v31 = vadd.f32 %v3227_v1, %v5972_v63  ;;  %v6273_v12 = vadd.f32 %v3227_v1, %v5976_v15  ;;  %v6276_v9 = vadd.f32 %v3227_v1, %v5985_v53  ;;  %v6279_v11 = vadd.f32 %v3227_v1, %v5983_v57  ;;  %v6913_v0 = vld [vmem:[#allocation21_spill] sm:$0xff]  ;;  %v6914_v63 = vld [vmem:[#allocation23_spill] sm:$0xff]  ;;  %v6915_v15 = vld [vmem:[#allocation26_spill] sm:$0xff] }
 0x949   : > { %v6282_v45 = vadd.f32 %v3227_v1, %v6911_v22  ;;  %v6285_v37 = vadd.f32 %v3227_v1, %v6912_v35  ;;  %v6288_v6 = vadd.f32 %v3227_v1, %v6913_v0  ;;  %v6291_v34 = vadd.f32 %v3227_v1, %v6914_v63  ;;  %v6916_v53 = vld [vmem:[#allocation28_spill] sm:$0xff]  ;;  %v6917_v57 = vld [vmem:[#allocation30_spill] sm:$0xff]  ;;  %v6933_v63 = vld [vmem:[#allocation37_spill] sm:$0xff] }
 0x94a   : > { %6909 = vst [vmem:[#allocation10_spill] sm:$0xff] %v6273_v12  ;;  %6910 = vst [vmem:[#allocation40_spill] sm:$0xff] %v6276_v9  ;;  %v6294_v21 = vadd.f32 %v3227_v1, %v6915_v15  ;;  %v6297_v25 = vadd.f32 %v3227_v1, %v6916_v53  ;;  %v6300_v26 = vadd.f32 %v3227_v1, %v6917_v57  ;;  %v6932_v35 = vld [vmem:[#allocation36_spill] sm:$0xff]  ;;  %v6934_v53 = vld [vmem:[#allocation11_spill] sm:$0xff] }
 0x94b   : > { %v6303_v17 = vadd.f32 %v3227_v1, %v6918_v10  ;;  %v6306_v4 = vadd.f32 %v3227_v1, %v6021_v62  ;;  %v6309_v39 = vadd.f32 %v3227_v1, %v6019_v19  ;;  %v6312_v38 = vadd.f32 %v3227_v1, %v6110_v58  ;;  %v6935_v10 = vld [vmem:[#allocation39_spill] sm:$0xff]  ;;  %v6946_v12 = vld [vmem:[#allocation29_spill] sm:$0xff] }
 0x94c   : > { %v6315_v55 = vadd.f32 %v3227_v1, %v6105_v43  ;;  %v6318_v36 = vadd.f32 %v3227_v1, %v6157_v7  ;;  %v6321_v18 = vadd.f32 %v3227_v1, %v6176_v50  ;;  %v6324_v42 = vadd.f32 %v3227_v1, %v6194_v54  ;;  %v6944_v9 = vld [vmem:[#allocation27_spill] sm:$0xff] }
 0x94d   : > { %6919 = vst [vmem:[#allocation17_spill] sm:$0xff] %v6306_v4  ;;  %6920 = vst [vmem:[#allocation19_spill] sm:$0xff] %v6312_v38  ;;  %v6327_v62 = vadd.f32 %v3227_v1, %v6202_v33  ;;  %v6330_v19 = vadd.f32 %v3227_v1, %v6033_v40  ;;  %v6333_v58 = vadd.f32 %v3227_v1, %v6041_v28 }
 0x94e   : > { %v6336_v43 = vadd.f32 %v3227_v1, %v6084_v5  ;;  %v6339_v7 = vadd.f32 %v3227_v1, %v6096_v30  ;;  %v6342_v50 = vadd.f32 %v3227_v1, %v6139_v52  ;;  %v6345_v54 = vadd.f32 %v3227_v1, %v6148_v23  ;;  %v6937_v52 = vld [vmem:[#allocation14_spill] sm:$0xff]  ;;  %v6940_v30 = vld [vmem:[#allocation20_spill] sm:$0xff] }
 0x94f   : > { %6921 = vst [vmem:[#allocation21_spill] sm:$0xff] %v6330_v19  ;;  %6922 = vst [vmem:[#allocation23_spill] sm:$0xff] %v6333_v58  ;;  %v6348_v33 = vadd.f32 %v3227_v1, %v6179_v44  ;;  %v6351_v40 = vadd.f32 %v3227_v1, %v6190_v14  ;;  %v3228_v28 = vadd.f32 %v3226_v29, %v3220_v32  ;;  %v6929_v44 = vld [vmem:[#allocation33_spill] sm:$0xff]  ;;  %v6930_v14 = vld [vmem:[#allocation34_spill] sm:$0xff]  ;;  %v6960_v58 = vmax.f32 %v6267_v41, 0.0 }
 0x950   : > { %6923 = vst [vmem:[#allocation26_spill] sm:$0xff] %v6336_v43  ;;  %6924 = vst [vmem:[#allocation28_spill] sm:$0xff] %v6339_v7  ;;  %v6931_v32 = vld [vmem:[#allocation35_spill] sm:$0xff]  ;;  %v6942_v5 = vld [vmem:[#allocation22_spill] sm:$0xff] }
 0x951   : > { %6925 = vst [vmem:[#allocation30_spill] sm:$0xff] %v6342_v50  ;;  %6926 = vst [vmem:[#allocation32_spill] sm:$0xff] %v6345_v54  ;;  %v6361_v22 = vadd.f32 %v3228_v28, %v6929_v44  ;;  %v6364_v1 = vadd.f32 %v3228_v28, %v6930_v14  ;;  %v6367_v29 = vadd.f32 %v3228_v28, %v6931_v32  ;;  %v6936_v44 = vld [vmem:[#allocation38_spill] sm:$0xff]  ;;  %v6959_v50 = vmax.f32 %v6264_v8, 0.0 }
 0x952   : > { %6927 = vst [vmem:[#allocation41_spill] sm:$0xff] %v6348_v33  ;;  %6928 = vst [vmem:[#allocation42_spill] sm:$0xff] %v6351_v40  ;;  %v6370_v0 = vadd.f32 %v3228_v28, %v6932_v35  ;;  %v6373_v15 = vadd.f32 %v3228_v28, %v6933_v63  ;;  %v6376_v57 = vadd.f32 %v3228_v28, %v6934_v53  ;;  %v6958_v40 = vmax.f32 %v6261_v16, 0.0 }
 0x953   : > { %v6379_v56 = vadd.f32 %v3228_v28, %v6935_v10  ;;  %v6382_v23 = vadd.f32 %v3228_v28, %v6936_v44  ;;  %v6386_v32 = vadd.f32 %v3228_v28, %v6937_v52  ;;  %v6389_v35 = vadd.f32 %v3228_v28, %v6939_v61  ;;  %v6948_v52 = vld [vmem:[#allocation31_spill] sm:$0xff] }
 0x954   : > { %v6392_v63 = vadd.f32 %v3228_v28, %v6940_v30  ;;  %v6395_v53 = vadd.f32 %v3228_v28, %v6942_v5  ;;  %v6398_v10 = vadd.f32 %v3228_v28, %v6943_v48  ;;  %v6401_v44 = vadd.f32 %v3228_v28, %v6944_v9 }
 0x955   : > { %6938 = vst [vmem:[#allocation33_spill] sm:$0xff] %v6386_v32  ;;  %v6404_v14 = vadd.f32 %v3228_v28, %v6946_v12  ;;  %v6407_v32 = vadd.f32 %v3228_v28, %v6948_v52  ;;  %v6424_v30 = vadd.f32 %v3228_v28, %v6091_v51  ;;  %v6427_v5 = vadd.f32 %v3228_v28, %v6070_v24  ;;  %v6955_v24 = vld [vmem:[#allocation24_spill] sm:$0xff] }
 0x956   : > { %6941 = vst [vmem:[#allocation34_spill] sm:$0xff] %v6392_v63  ;;  %6945 = vst [vmem:[#allocation35_spill] sm:$0xff] %v6401_v44  ;;  %v6430_v48 = vadd.f32 %v3228_v28, %v6131_v27  ;;  %v6433_v9 = vadd.f32 %v3228_v28, %v6169_v46  ;;  %v6436_v12 = vadd.f32 %v3228_v28, %v6188_v60  ;;  %v3274_v60 = vmax.f32 %v6379_v56, 0.0 }
 0x957   : > { %6947 = vst [vmem:[#allocation36_spill] sm:$0xff] %v6404_v14  ;;  %6949 = vst [vmem:[#allocation37_spill] sm:$0xff] %v6407_v32  ;;  %v6950_v14 = vld [vmem:[#allocation15_spill] sm:$0xff]  ;;  %v6951_v32 = vld [vmem:[#allocation16_spill] sm:$0xff]  ;;  %v6457_v51 = vadd.f32 %v3228_v28, %v6088_v47  ;;  %v6460_v38 = vadd.f32 %v3228_v28, %v6955_v24  ;;  %v6463_v44 = vadd.f32 %v3228_v28, %v6143_v3  ;;  %v3270_v24 = vmax.f32 %v6373_v15, 0.0 }
 0x958   : > { %v6418_v52 = vadd.f32 %v3228_v28, %v6950_v14  ;;  %v6421_v61 = vadd.f32 %v3228_v28, %v6951_v32  ;;  %v6439_v14 = vadd.f32 %v3228_v28, %v6198_v20  ;;  %v6953_v20 = vld [vmem:[#allocation13_spill] sm:$0xff]  ;;  %v6954_v32 = vld [vmem:[#allocation12_spill] sm:$0xff]  ;;  %v6466_v46 = vadd.f32 %v3228_v28, %v6141_v59 }
 0x959   : > { %v6454_v4 = vadd.f32 %v3228_v28, %v6954_v32  ;;  %v6469_v63 = vadd.f32 %v3228_v28, %v6183_v2  ;;  %v6474_v32 = vadd.f32 %v3228_v28, %v6181_v49  ;;  %v3264_v49 = vmax.f32 %v6364_v1, 0.0 }
 0x95a   : > { %6952 = vst [vmem:[#allocation11_spill] sm:$0xff] %v6439_v14  ;;  %v6451_v14 = vadd.f32 %v3228_v28, %v6953_v20  ;;  %v3266_v28 = vmax.f32 %v6367_v29, 0.0  ;;  %v3268_v20 = vmax.f32 %v6370_v0, 0.0  ;;  %v3272_v3 = vmax.f32 %v6376_v57, 0.0 }
 0x95b   : > { %6956 = vst [vmem:[#allocation39_spill] sm:$0xff] %v6469_v63  ;;  %v3262_v63 = vmax.f32 %v6361_v22, 0.0  ;;  %v3276_v59 = vmax.f32 %v6382_v23, 0.0  ;;  %v6957_v2 = vmax.f32 %v6258_v13, 0.0  ;;  %v3279_v33 = vadd.f32 %v6958_v40, %v6261_v16  ;;  %v6962_v40 = vld [vmem:[#allocation10_spill] sm:$0xff] }
 0x95c   : > { %v3280_v54 = vadd.f32 %v3264_v49, %v6364_v1  ;;  %v3281_v7 = vadd.f32 %v6959_v50, %v6264_v8  ;;  %v3282_v43 = vadd.f32 %v3266_v28, %v6367_v29  ;;  %v3283_v19 = vadd.f32 %v6960_v58, %v6267_v41  ;;  %v6964_v41 = vld [vmem:[#allocation40_spill] sm:$0xff] }
 0x95d   : > { %v3277_v27 = vadd.f32 %v6957_v2, %v6258_v13  ;;  %v3278_v47 = vadd.f32 %v3262_v63, %v6361_v22  ;;  %v3284_v13 = vadd.f32 %v3268_v20, %v6370_v0  ;;  %v6961_v22 = vmax.f32 %v6270_v31, 0.0  ;;  %3295 = vst [vmem:[%s6515_s30 + $0x10] sm:$0xff] %v3279_v33 }
 0x95e   : > { %v3286_v16 = vadd.f32 %v3270_v24, %v6373_v15  ;;  %v6963_v1 = vmax.f32 %v6962_v40, 0.0  ;;  %v3288_v8 = vadd.f32 %v3272_v3, %v6376_v57  ;;  %v3290_v50 = vadd.f32 %v3274_v60, %v6379_v56  ;;  %3296 = vst [vmem:[%s6515_s30 + $0x18] sm:$0xff] %v3280_v54  ;;  %3297 = vst [vmem:[%s6515_s30 + $0x20] sm:$0xff] %v3281_v7  ;;  %v6967_v15 = vld [vmem:[#allocation33_spill] sm:$0xff]  ;;  %v6970_v54 = vld [vmem:[#allocation36_spill] sm:$0xff] }
 0x95f   : > { %v3285_v63 = vadd.f32 %v6961_v22, %v6270_v31  ;;  %3293 = vst [vmem:[%s6515_s30] sm:$0xff] %v3277_v27  ;;  %3294 = vst [vmem:[%s6515_s30 + $0x8] sm:$0xff] %v3278_v47  ;;  %v6965_v31 = vmax.f32 %v6964_v41, 0.0  ;;  %v6966_v29 = vmax.f32 %v6279_v11, 0.0  ;;  %v3292_v33 = vadd.f32 %v3276_v59, %v6382_v23  ;;  %v6968_v27 = vld [vmem:[#allocation34_spill] sm:$0xff]  ;;  %v6971_v47 = vld [vmem:[#allocation37_spill] sm:$0xff] }
 0x960   : > { %v3287_v2 = vadd.f32 %v6963_v1, %v6962_v40  ;;  %3298 = vst [vmem:[%s6515_s30 + $0x28] sm:$0xff] %v3282_v43  ;;  %3299 = vst [vmem:[%s6515_s30 + $0x30] sm:$0xff] %v3283_v19  ;;  %v3342_v57 = vmax.f32 %v6967_v15, 0.0  ;;  %v3344_v56 = vmax.f32 %v6389_v35, 0.0  ;;  %v3346_v60 = vmax.f32 %v6968_v27, 0.0  ;;  %v6969_v43 = vld [vmem:[#allocation35_spill] sm:$0xff] }
 0x961   : > { %v3289_v58 = vadd.f32 %v6965_v31, %v6964_v41  ;;  %v3291_v0 = vadd.f32 %v6966_v29, %v6279_v11  ;;  %3300 = vst [vmem:[%s6515_s30 + $0x38] sm:$0xff] %v3284_v13  ;;  %3301 = vst [vmem:[%s6515_s30 + $0x40] sm:$0xff] %v3285_v63  ;;  %v3348_v11 = vmax.f32 %v6395_v53, 0.0  ;;  %v3350_v19 = vmax.f32 %v6398_v10, 0.0 }
 0x962   : > { %3302 = vst [vmem:[%s6515_s30 + $0x48] sm:$0xff] %v3286_v16  ;;  %3303 = vst [vmem:[%s6515_s30 + $0x50] sm:$0xff] %v3287_v2  ;;  %v3352_v7 = vmax.f32 %v6969_v43, 0.0  ;;  %v3354_v23 = vmax.f32 %v6970_v54, 0.0  ;;  %v3356_v20 = vmax.f32 %v6971_v47, 0.0  ;;  %v6972_v24 = vmax.f32 %v6282_v45, 0.0 }
 0x963   : > { %3304 = vst [vmem:[%s6515_s30 + $0x58] sm:$0xff] %v3288_v8  ;;  %3305 = vst [vmem:[%s6515_s30 + $0x60] sm:$0xff] %v3289_v58  ;;  %v3358_v59 = vadd.f32 %v3342_v57, %v6967_v15  ;;  %v6973_v49 = vmax.f32 %v6285_v37, 0.0  ;;  %v3360_v13 = vadd.f32 %v3344_v56, %v6389_v35  ;;  %v6974_v22 = vmax.f32 %v6288_v6, 0.0  ;;  %v6980_v15 = vld [vmem:[#allocation11_spill] sm:$0xff]  ;;  %v6981_v56 = vld [vmem:[#allocation17_spill] sm:$0xff] }
 0x964   : > { %3306 = vst [vmem:[%s6515_s30 + $0x68] sm:$0xff] %v3290_v50  ;;  %3307 = vst [vmem:[%s6515_s30 + $0x70] sm:$0xff] %v3291_v0  ;;  %v3357_v3 = vadd.f32 %v6972_v24, %v6282_v45  ;;  %v3362_v16 = vadd.f32 %v3346_v60, %v6968_v27  ;;  %v6975_v45 = vmax.f32 %v6291_v34, 0.0  ;;  %v3364_v1 = vadd.f32 %v3348_v11, %v6395_v53 }
 0x965   : > { %3308 = vst [vmem:[%s6515_s30 + $0x78] sm:$0xff] %v3292_v33  ;;  %v3359_v28 = vadd.f32 %v6973_v49, %v6285_v37  ;;  %v3361_v63 = vadd.f32 %v6974_v22, %v6288_v6  ;;  %v6976_v37 = vmax.f32 %v6294_v21, 0.0  ;;  %v3366_v2 = vadd.f32 %v3350_v19, %v6398_v10  ;;  %3374 = vst [vmem:[%s6515_s30 + $0x88] sm:$0xff] %v3358_v59 }
 0x966   : > { %v3363_v40 = vadd.f32 %v6975_v45, %v6291_v34  ;;  %v6977_v6 = vmax.f32 %v6297_v25, 0.0  ;;  %3373 = vst [vmem:[%s6515_s30 + $0x80] sm:$0xff] %v3357_v3  ;;  %v3368_v34 = vadd.f32 %v3352_v7, %v6969_v43  ;;  %v6978_v53 = vmax.f32 %v6300_v26, 0.0  ;;  %3376 = vst [vmem:[%s6515_s30 + $0x98] sm:$0xff] %v3360_v13 }
 0x967   : > { %v3365_v35 = vadd.f32 %v6976_v37, %v6294_v21  ;;  %3375 = vst [vmem:[%s6515_s30 + $0x90] sm:$0xff] %v3359_v28  ;;  %v3370_v21 = vadd.f32 %v3354_v23, %v6970_v54  ;;  %v6979_v10 = vmax.f32 %v6303_v17, 0.0  ;;  %3377 = vst [vmem:[%s6515_s30 + $0xa0] sm:$0xff] %v3361_v63  ;;  %v3424_v58 = vmax.f32 %v6421_v61, 0.0  ;;  %v6984_v54 = vld [vmem:[#allocation19_spill] sm:$0xff] }
 0x968   : > { %v3367_v8 = vadd.f32 %v6977_v6, %v6297_v25  ;;  %v3369_v41 = vadd.f32 %v6978_v53, %v6300_v26  ;;  %3378 = vst [vmem:[%s6515_s30 + $0xa8] sm:$0xff] %v3362_v16  ;;  %3379 = vst [vmem:[%s6515_s30 + $0xb0] sm:$0xff] %v3363_v40  ;;  %v3372_v25 = vadd.f32 %v3356_v20, %v6971_v47  ;;  %v3422_v26 = vmax.f32 %v6418_v52, 0.0  ;;  %v6991_v16 = vld [vmem:[#allocation39_spill] sm:$0xff] }
 0x969   : > { %v3371_v31 = vadd.f32 %v6979_v10, %v6303_v17  ;;  %3380 = vst [vmem:[%s6515_s30 + $0xb8] sm:$0xff] %v3364_v1  ;;  %3381 = vst [vmem:[%s6515_s30 + $0xc0] sm:$0xff] %v3365_v35  ;;  %v3426_v50 = vmax.f32 %v6424_v30, 0.0  ;;  %v3428_v17 = vmax.f32 %v6427_v5, 0.0  ;;  %v3430_v29 = vmax.f32 %v6430_v48, 0.0  ;;  %v6992_v1 = vld [vmem:[#allocation21_spill] sm:$0xff] }
 0x96a   : > { %3382 = vst [vmem:[%s6515_s30 + $0xc8] sm:$0xff] %v3366_v2  ;;  %3383 = vst [vmem:[%s6515_s30 + $0xd0] sm:$0xff] %v3367_v8  ;;  %v3432_v0 = vmax.f32 %v6433_v9, 0.0  ;;  %v3434_v33 = vmax.f32 %v6436_v12, 0.0  ;;  %v3436_v57 = vmax.f32 %v6980_v15, 0.0  ;;  %v6982_v27 = vmax.f32 %v6981_v56, 0.0 }
 0x96b   : > { %3384 = vst [vmem:[%s6515_s30 + $0xd8] sm:$0xff] %v3368_v34  ;;  %3385 = vst [vmem:[%s6515_s30 + $0xe0] sm:$0xff] %v3369_v41  ;;  %v3438_v11 = vadd.f32 %v3422_v26, %v6418_v52  ;;  %v6983_v19 = vmax.f32 %v6309_v39, 0.0  ;;  %v3440_v7 = vadd.f32 %v3424_v58, %v6421_v61  ;;  %v6985_v23 = vmax.f32 %v6984_v54, 0.0  ;;  %v6994_v6 = vld [vmem:[#allocation23_spill] sm:$0xff]  ;;  %v6996_v41 = vld [vmem:[#allocation26_spill] sm:$0xff] }
 0x96c   : > { %3386 = vst [vmem:[%s6515_s30 + $0xe8] sm:$0xff] %v3370_v21  ;;  %3387 = vst [vmem:[%s6515_s30 + $0xf0] sm:$0xff] %v3371_v31  ;;  %v3437_v60 = vadd.f32 %v6982_v27, %v6981_v56  ;;  %v3442_v20 = vadd.f32 %v3426_v50, %v6424_v30  ;;  %v6986_v24 = vmax.f32 %v6315_v55, 0.0  ;;  %v3444_v3 = vadd.f32 %v3428_v17, %v6427_v5  ;;  %v7000_v50 = vld [vmem:[#allocation30_spill] sm:$0xff] }
 0x96d   : > { %3388 = vst [vmem:[%s6515_s30 + $0xf8] sm:$0xff] %v3372_v25  ;;  %v3439_v43 = vadd.f32 %v6983_v19, %v6309_v39  ;;  %v3441_v47 = vadd.f32 %v6985_v23, %v6984_v54  ;;  %v6987_v39 = vmax.f32 %v6318_v36, 0.0  ;;  %v3446_v59 = vadd.f32 %v3430_v29, %v6430_v48  ;;  %3454 = vst [vmem:[%s6515_s30 + $0x108] sm:$0xff] %v3438_v11  ;;  %v6998_v25 = vld [vmem:[#allocation28_spill] sm:$0xff]  ;;  %v7006_v27 = vld [vmem:[#allocation42_spill] sm:$0xff] }
 0x96e   : > { %v3443_v52 = vadd.f32 %v6986_v24, %v6315_v55  ;;  %v6988_v49 = vmax.f32 %v6321_v18, 0.0  ;;  %3453 = vst [vmem:[%s6515_s30 + $0x100] sm:$0xff] %v3437_v60  ;;  %v3448_v55 = vadd.f32 %v3432_v0, %v6433_v9  ;;  %v6989_v5 = vmax.f32 %v6324_v42, 0.0  ;;  %3456 = vst [vmem:[%s6515_s30 + $0x118] sm:$0xff] %v3440_v7  ;;  %v7002_v0 = vld [vmem:[#allocation32_spill] sm:$0xff] }
 0x96f   : > { %v3445_v61 = vadd.f32 %v6987_v39, %v6318_v36  ;;  %3455 = vst [vmem:[%s6515_s30 + $0x110] sm:$0xff] %v3439_v43  ;;  %v3450_v36 = vadd.f32 %v3434_v33, %v6436_v12  ;;  %v6990_v48 = vmax.f32 %v6327_v62, 0.0  ;;  %3457 = vst [vmem:[%s6515_s30 + $0x120] sm:$0xff] %v3441_v47  ;;  %v3504_v9 = vmax.f32 %v6454_v4, 0.0 }
 0x970   : > { %v3447_v30 = vadd.f32 %v6988_v49, %v6321_v18  ;;  %v3449_v28 = vadd.f32 %v6989_v5, %v6324_v42  ;;  %3458 = vst [vmem:[%s6515_s30 + $0x128] sm:$0xff] %v3442_v20  ;;  %3459 = vst [vmem:[%s6515_s30 + $0x130] sm:$0xff] %v3443_v52  ;;  %v3452_v18 = vadd.f32 %v3436_v57, %v6980_v15  ;;  %v3502_v42 = vmax.f32 %v6451_v14, 0.0 }
 0x971   : > { %v3451_v13 = vadd.f32 %v6990_v48, %v6327_v62  ;;  %3460 = vst [vmem:[%s6515_s30 + $0x138] sm:$0xff] %v3444_v3  ;;  %3461 = vst [vmem:[%s6515_s30 + $0x140] sm:$0xff] %v3445_v61  ;;  %v3506_v62 = vmax.f32 %v6457_v51, 0.0  ;;  %v3508_v12 = vmax.f32 %v6460_v38, 0.0  ;;  %v3510_v22 = vmax.f32 %v6463_v44, 0.0 }
 0x972   : > { %3462 = vst [vmem:[%s6515_s30 + $0x148] sm:$0xff] %v3446_v59  ;;  %3463 = vst [vmem:[%s6515_s30 + $0x150] sm:$0xff] %v3447_v30  ;;  %v3512_v63 = vmax.f32 %v6466_v46, 0.0  ;;  %v3514_v45 = vmax.f32 %v6991_v16, 0.0  ;;  %v3516_v40 = vmax.f32 %v6474_v32, 0.0  ;;  %v6993_v37 = vmax.f32 %v6992_v1, 0.0 }
 0x973   : > { %3464 = vst [vmem:[%s6515_s30 + $0x158] sm:$0xff] %v3448_v55  ;;  %3465 = vst [vmem:[%s6515_s30 + $0x160] sm:$0xff] %v3449_v28  ;;  %v3518_v2 = vadd.f32 %v3502_v42, %v6451_v14  ;;  %v6995_v8 = vmax.f32 %v6994_v6, 0.0  ;;  %v3520_v53 = vadd.f32 %v3504_v9, %v6454_v4  ;;  %v6997_v21 = vmax.f32 %v6996_v41, 0.0 }
 0x974   : > { %3466 = vst [vmem:[%s6515_s30 + $0x168] sm:$0xff] %v3450_v36  ;;  %3467 = vst [vmem:[%s6515_s30 + $0x170] sm:$0xff] %v3451_v13  ;;  %v3517_v35 = vadd.f32 %v6993_v37, %v6992_v1  ;;  %v3522_v31 = vadd.f32 %v3506_v62, %v6457_v51  ;;  %v6999_v14 = vmax.f32 %v6998_v25, 0.0  ;;  %v3524_v58 = vadd.f32 %v3508_v12, %v6460_v38  ;;  %v7004_v51 = vld [vmem:[#allocation41_spill] sm:$0xff] }
 0x975   : > { %3468 = vst [vmem:[%s6515_s30 + $0x178] sm:$0xff] %v3452_v18  ;;  %v3519_v34 = vadd.f32 %v6995_v8, %v6994_v6  ;;  %v3521_v10 = vadd.f32 %v6997_v21, %v6996_v41  ;;  %v7001_v17 = vmax.f32 %v7000_v50, 0.0  ;;  %v3526_v4 = vadd.f32 %v3510_v22, %v6463_v44  ;;  %3534 = vst [vmem:[%s6515_s30 + $0x188] sm:$0xff] %v3518_v2 }
 0x976   : > { %v3523_v26 = vadd.f32 %v6999_v14, %v6998_v25  ;;  %v7003_v33 = vmax.f32 %v7002_v0, 0.0  ;;  %3533 = vst [vmem:[%s6515_s30 + $0x180] sm:$0xff] %v3517_v35  ;;  %v3528_v38 = vadd.f32 %v3512_v63, %v6466_v46  ;;  %v7005_v57 = vmax.f32 %v7004_v51, 0.0  ;;  %3536 = vst [vmem:[%s6515_s30 + $0x198] sm:$0xff] %v3520_v53 }
 0x977   : > { %v3525_v29 = vadd.f32 %v7001_v17, %v7000_v50  ;;  %3535 = vst [vmem:[%s6515_s30 + $0x190] sm:$0xff] %v3519_v34  ;;  %v3530_v44 = vadd.f32 %v3514_v45, %v6991_v16  ;;  %v7007_v60 = vmax.f32 %v7006_v27, 0.0  ;;  %3537 = vst [vmem:[%s6515_s30 + $0x1a0] sm:$0xff] %v3521_v10  ;;  %v3532_v46 = vadd.f32 %v3516_v40, %v6474_v32 }
 0x978   : > { %v3527_v15 = vadd.f32 %v7003_v33, %v7002_v0  ;;  %v3529_v56 = vadd.f32 %v7005_v57, %v7004_v51  ;;  %3538 = vst [vmem:[%s6515_s30 + $0x1a8] sm:$0xff] %v3522_v31  ;;  %3539 = vst [vmem:[%s6515_s30 + $0x1b0] sm:$0xff] %v3523_v26 }
 0x979   : > { %v3531_v11 = vadd.f32 %v7007_v60, %v7006_v27  ;;  %3540 = vst [vmem:[%s6515_s30 + $0x1b8] sm:$0xff] %v3524_v58  ;;  %3541 = vst [vmem:[%s6515_s30 + $0x1c0] sm:$0xff] %v3525_v29 }
 0x97a   : > { %3542 = vst [vmem:[%s6515_s30 + $0x1c8] sm:$0xff] %v3526_v4  ;;  %3543 = vst [vmem:[%s6515_s30 + $0x1d0] sm:$0xff] %v3527_v15 }
 0x97b   : > { %3544 = vst [vmem:[%s6515_s30 + $0x1d8] sm:$0xff] %v3528_v38  ;;  %3545 = vst [vmem:[%s6515_s30 + $0x1e0] sm:$0xff] %v3529_v56 }
 0x97c   : > { %3546 = vst [vmem:[%s6515_s30 + $0x1e8] sm:$0xff] %v3530_v44  ;;  %3547 = vst [vmem:[%s6515_s30 + $0x1f0] sm:$0xff] %v3531_v11 }
 0x97d   : > { %3548 = vst [vmem:[%s6515_s30 + $0x1f8] sm:$0xff] %v3532_v46 }
 0x97e   : > { %4687 = shalt.err (!%p4684_p3)
}
 0x97f   : > { %s4688_s27 = scalar_lea.hbm %s6705_s29, 8192  ;;  %s4692_s17 = scalar_lea.hbm %s6777_s15, 16384 }
 0x980   : > { %p4689_p4 = scmp.ne.s32.totalorder %s6705_s29, %s4688_s27  ;;  %p4693_p9 = scmp.lt.u32.totalorder %s6705_s29, %s6777_s15 }
 0x981   : > { %p4694_p10 = scmp.lt.u32.totalorder %s4692_s17, %s4688_s27  ;;  %p4696_p12 = scmp.lt.u32.totalorder %s4688_s27, %s6705_s29 }
 0x982   : > { %p4690_p7 = pnand %p4689_p4, %p4877_p5 }
 0x983   : > { %p4695_p11 = por %p4694_p10, %p4693_p9 }
 0x984   : > { %p4691_p8 = pneg %p4690_p7 }
 0x985   : > { %p4697_p13 = por %p4696_p12, %p4695_p11 }
 0x987   : > { %p4698_p0 = pnand %p4697_p13, %p4691_p8 }
 0x989   : > { %4701 = shalt.err (!%p4698_p0)
}
 0x98a   : > { %s4757_s18 = smov 128   ;;  %s4758_s26 = smov 8  }
 0x98b   : > { %4416 = dma.vmem_to_hbm [thread:$0]  (%p4877_p5), %s6707_s16, 8192, %s6705_s29, %s6721_s25, %s4757_s18, %s4757_s18, %s4758_s26  }
 0x98c PF: > { %s7008_s23 = sld [smem:[#allocation5_spill]]  ;;  %p4422_p1 = scmp.ge.s32.totalorder %s4736_s21, 2 }
 0x98e   : > { %p4419_p2 = pnand %p4422_p1, %p4881_p6 }
 0x992   : > { %s3578_s20 = sand.u32 1, %s7008_s23  }
 0x993   : > { %s3579_s27 = scalar_lea.sflag [#allocation3], %s3578_s20 }
 0x994   : > { %4719 = dma.done.wait (!%p4419_p2), %s3579_s27, 8192  }
 0x995   : > { %4721 = vsyncadd (!%p4419_p2), %s3579_s27, 4294959104  ;;  %s7010_s21 = sld [smem:[#allocation7_spill]]  ;;  %s7011_s30 = sld [smem:[#allocation6_spill]] }
 0x996   : > { %s7012_s20 = sld [smem:[#allocation8_spill]]  ;;  %s7013_s18 = smov %s4728_s19 }
 0x99b   : > { %p25_p3 = scmp.ge.s32.totalorder %s7010_s21, 4   ;;  %s7014_s19 = smov %s7011_s30 }
 0x99d   :  { %27 = sbr.rel (!%p25_p3) target bundleno = 5 (0x5), region = 115 }
 0x9a4   :  { %3584 = vsyncpa [#allocation3], 1 }
 0x9a5   :  { %3586 = vsyncpa [#allocation3 + $0x1], 1 }

</bundles_post_ra>
